<compile_context>
chip_gen: v7x
topology: tpu7x:2x2x1
jax: 0.10.0
libtpu: 0.0.40
codegen_flags: <defaults>
</compile_context>

<pallas_src>
import functools

import jax
import jax.numpy as jnp
from jax.experimental import pallas as pl
from jax.experimental.pallas import tpu as pltpu

NEG_SLOPE = 0.01  # torch.nn.LeakyReLU default


def _leaky_relu(x):
    return jnp.where(x > 0, x, NEG_SLOPE * x)


def gnn_kernel(a_ref, x_ref, e_ref,
               we_ref, be_ref, wn_ref, bn_ref,
               w1_ref, b1_ref, w2_ref, b2_ref,
               wo_ref, bo_ref,
               out_ref, *, n_layers, eps, use_bf16_matmul):
    G, N, _ = a_ref.shape
    H = wn_ref.shape[1]

    def mm(x, w):
        # MXU matmul; optionally cast operands to bf16 (2x MXU throughput on
        # v6e/v7x), accumulation stays f32.
        if use_bf16_matmul:
            x = x.astype(jnp.bfloat16)
            w = w.astype(jnp.bfloat16)
        return jnp.dot(x, w, preferred_element_type=jnp.float32)

    A = a_ref[...]                                   # (G, N, N)
    # Hoisted adjacency broadcast: created once, reused by every layer.
    A4 = A[..., None]                                # (G, N, N, 1)

    # linear_edges: Linear(1, H) -> Ef with H on the lane dim.
    we = we_ref[...].reshape(1, 1, 1, H)
    be = be_ref[...].reshape(1, 1, 1, H)
    # TODO(synk): for large N, tile the neighbor axis j in chunks instead of
    # materializing the full (G, N, N, H) Ef/M buffers (VMEM on v7x is 64 MiB).
    Ef = e_ref[...][..., None] * we + be             # (G, N, N, H)

    # linear_nodes: Linear(5, H); graphs folded into the matmul M dimension.
    Xf = mm(x_ref[...].reshape(G * N, 5), wn_ref[...]) + bn_ref[...]  # (G*N, H)
    Xf = Xf.reshape(G, N, H)

    # GIN layers (static Python unroll over n_layers).
    for l in range(n_layers):
        # message: relu(X_j + E_ij)                  (G, N, N, H)
        M = jnp.maximum(Xf[:, None, :, :] + Ef, 0.0)
        # aggregate: sum_j A_ij * M_ij               (G, N, H)
        agg = jnp.sum(A4 * M, axis=2)
        h = (1.0 + eps[l]) * Xf + agg
        # MLP: Linear -> ReLU -> Linear, as (G*N, H) @ (H, H) MXU matmuls.
        hf = h.reshape(G * N, H)
        hf = jnp.maximum(mm(hf, w1_ref[l]) + b1_ref[l], 0.0)
        Xf = (mm(hf, w2_ref[l]) + b2_ref[l]).reshape(G, N, H)

    # readout: mean over nodes -> Linear(H, 1) as a lane reduce -> 1 + leaky_relu
    pooled = jnp.mean(Xf, axis=1)                                     # (G, H)
    logit = jnp.sum(pooled * wo_ref[...], axis=-1, keepdims=True)     # (G, 1)
    logit = logit + bo_ref[...]
    out_ref[0] = 1.0 + _leaky_relu(logit)


def _pick_graphs_per_step(B, target=16):
    """Largest divisor of B that is <= target, preferring a grid of >= 2."""
    divs = [d for d in range(1, B + 1) if B % d == 0]
    cands = [d for d in divs if d <= target and B // d >= 2]
    if not cands:
        cands = [d for d in divs if d <= target] or [B]
    return max(cands)


def gnn_forward(A, X, E, params, *, n_layers, eps, graphs_per_step=None,
                use_bf16_matmul=False):
    B, N, _ = A.shape
    H = params["wn"].shape[1]

    # Squeeze E's trailing singleton so the E tile is lane-dense (N on lanes).
    if E.ndim == 4:
        E = E[..., 0]                                # (B, N, N)

    G = graphs_per_step if graphs_per_step is not None else _pick_graphs_per_step(B)
    assert B % G == 0, (B, G)
    n_blocks = B // G

    wo_t = params["wo"].T                            # (1, H) — readout as lane reduce

    kernel = functools.partial(
        gnn_kernel, n_layers=n_layers,
        eps=tuple(float(e) for e in eps),            # NOTE: static -> recompile on eps change
        use_bf16_matmul=use_bf16_matmul)

    out = pl.pallas_call(
        kernel,
        out_shape=jax.ShapeDtypeStruct((n_blocks, G, 1), jnp.float32),
        grid_spec=pltpu.PrefetchScalarGridSpec(
            num_scalar_prefetch=0,
            grid=(n_blocks,),
            in_specs=[
                pl.BlockSpec((G, N, N), lambda b: (b, 0, 0)),          # A
                pl.BlockSpec((G, N, 5), lambda b: (b, 0, 0)),          # X
                pl.BlockSpec((G, N, N), lambda b: (b, 0, 0)),          # E (squeezed)
                pl.BlockSpec((1, H), lambda b: (0, 0)),                # we
                pl.BlockSpec((1, H), lambda b: (0, 0)),                # be
                pl.BlockSpec((5, H), lambda b: (0, 0)),                # wn
                pl.BlockSpec((1, H), lambda b: (0, 0)),                # bn
                pl.BlockSpec((n_layers, H, H), lambda b: (0, 0, 0)),   # w1
                pl.BlockSpec((n_layers, 1, H), lambda b: (0, 0, 0)),   # b1
                pl.BlockSpec((n_layers, H, H), lambda b: (0, 0, 0)),   # w2
                pl.BlockSpec((n_layers, 1, H), lambda b: (0, 0, 0)),   # b2
                pl.BlockSpec((1, H), lambda b: (0, 0)),                # wo (transposed)
                pl.BlockSpec((1, 1), lambda b: (0, 0)),                # bo
            ],
            out_specs=pl.BlockSpec((1, G, 1), lambda b: (b, 0, 0)),
        ),
        compiler_params=pltpu.CompilerParams(
            dimension_semantics=("parallel",)),
    )(A, X, E,
      params["we"], params["be"], params["wn"], params["bn"],
      params["w1"], params["b1"], params["w2"], params["b2"],
      wo_t, params["bo"])

    return out.reshape(B, 1)


def gnn_reference(A, X, E, params, *, n_layers, eps):
    """Pure-JAX reference mirroring the PyTorch forward."""
    Ef = E * params["we"] + params["be"]                    # (B, N, N, H)
    Xf = X @ params["wn"] + params["bn"]                    # (B, N, H)
    for l in range(n_layers):
        M = jnp.maximum(Xf[:, None, :, :] + Ef, 0.0)        # (B, N, N, H)
        agg = jnp.sum(A[..., None] * M, axis=2)             # (B, N, H)
        h = (1.0 + eps[l]) * Xf + agg
        h = jnp.maximum(h @ params["w1"][l] + params["b1"][l], 0.0)
        Xf = h @ params["w2"][l] + params["b2"][l]
    pooled = Xf.mean(axis=1)                                # (B, H)
    out = pooled @ params["wo"] + params["bo"]              # (B, 1)
    return 1.0 + _leaky_relu(out)


def init_params(key, node_size, n_layers):
    """Deterministic PyTorch-Linear-style init (uniform +/- 1/sqrt(fan_in))."""
    keys = jax.random.split(key, 3 + 2 * n_layers)

    def lin(k, fan_in, fan_out):
        kw, kb = jax.random.split(k)
        bound = 1.0 / float(fan_in) ** 0.5
        w = jax.random.uniform(kw, (fan_in, fan_out), jnp.float32, -bound, bound)
        b = jax.random.uniform(kb, (1, fan_out), jnp.float32, -bound, bound)
        return w, b

    we, be = lin(keys[0], 1, node_size)
    wn, bn = lin(keys[1], 5, node_size)
    w1s, b1s, w2s, b2s = [], [], [], []
    for l in range(n_layers):
        w1, b1 = lin(keys[2 + 2 * l], node_size, node_size)
        w2, b2 = lin(keys[3 + 2 * l], node_size, node_size)
        w1s.append(w1); b1s.append(b1)
        w2s.append(w2); b2s.append(b2)
    wo, bo = lin(keys[-1], node_size, 1)
    return {
        "we": we, "be": be, "wn": wn, "bn": bn,
        "w1": jnp.stack(w1s), "b1": jnp.stack(b1s),   # (L,H,H), (L,1,H)
        "w2": jnp.stack(w2s), "b2": jnp.stack(b2s),
        "wo": wo, "bo": bo,
    }


if __name__ == "__main__":
    B, N, H, L = 8, 16, 32, 2
    eps = (0.0,) * L

    key = jax.random.PRNGKey(0)
    k1, k2, k3, k4 = jax.random.split(key, 4)
    A = (jax.random.uniform(k1, (B, N, N)) < 0.3).astype(jnp.float32)
    A = jnp.maximum(A, jnp.transpose(A, (0, 2, 1)))       # symmetric adjacency
    X = jax.random.normal(k2, (B, N, 5), jnp.float32)
    E = jax.random.normal(k3, (B, N, N, 1), jnp.float32)
    params = init_params(k4, H, L)

    out = gnn_forward(A, X, E, params, n_layers=L, eps=eps)
    out = jax.block_until_ready(out)

    ref = gnn_reference(A, X, E, params, n_layers=L, eps=eps)
    assert out.shape == (B, 1), out.shape
    assert jnp.allclose(out, ref, rtol=1e-3, atol=1e-3), (out, ref)

    print("KERNEL_OK")
</pallas_src>

<mosaic_0001>
module attributes {stable_mosaic.version = 11 : i64} {
  func.func @gnn_kernel(%arg0: i32, %arg1: memref<4x16x16xf32, #tpu.memory_space<vmem>>, %arg2: memref<4x16x5xf32, #tpu.memory_space<vmem>>, %arg3: memref<4x16x16xf32, #tpu.memory_space<vmem>>, %arg4: memref<1x32xf32, #tpu.memory_space<vmem>>, %arg5: memref<1x32xf32, #tpu.memory_space<vmem>>, %arg6: memref<5x32xf32, #tpu.memory_space<vmem>>, %arg7: memref<1x32xf32, #tpu.memory_space<vmem>>, %arg8: memref<2x32x32xf32, #tpu.memory_space<vmem>>, %arg9: memref<2x1x32xf32, #tpu.memory_space<vmem>>, %arg10: memref<2x32x32xf32, #tpu.memory_space<vmem>>, %arg11: memref<2x1x32xf32, #tpu.memory_space<vmem>>, %arg12: memref<1x32xf32, #tpu.memory_space<vmem>>, %arg13: memref<1x1xf32, #tpu.memory_space<vmem>>, %arg14: memref<1x4x1xf32, #tpu.memory_space<vmem>>) attributes {dimension_semantics = [#tpu.dimension_semantics<parallel>], iteration_bounds = array<i64: 2>, scalar_prefetch = 0 : i64, scratch_operands = 0 : i64, tpu.core_type = #tpu.core_type<tc>, window_params = [{transform_indices = @transform_0, window_bounds = array<i64: 4, 16, 16>}, {transform_indices = @transform_1, window_bounds = array<i64: 4, 16, 5>}, {transform_indices = @transform_2, window_bounds = array<i64: 4, 16, 16>}, {pipeline_mode = #tpu.pipeline_mode<synchronous>, transform_indices = @transform_3, window_bounds = array<i64: 1, 32>}, {pipeline_mode = #tpu.pipeline_mode<synchronous>, transform_indices = @transform_4, window_bounds = array<i64: 1, 32>}, {pipeline_mode = #tpu.pipeline_mode<synchronous>, transform_indices = @transform_5, window_bounds = array<i64: 5, 32>}, {pipeline_mode = #tpu.pipeline_mode<synchronous>, transform_indices = @transform_6, window_bounds = array<i64: 1, 32>}, {pipeline_mode = #tpu.pipeline_mode<synchronous>, transform_indices = @transform_7, window_bounds = array<i64: 2, 32, 32>}, {pipeline_mode = #tpu.pipeline_mode<synchronous>, transform_indices = @transform_8, window_bounds = array<i64: 2, 1, 32>}, {pipeline_mode = #tpu.pipeline_mode<synchronous>, transform_indices = @transform_9, window_bounds = array<i64: 2, 32, 32>}, {pipeline_mode = #tpu.pipeline_mode<synchronous>, transform_indices = @transform_10, window_bounds = array<i64: 2, 1, 32>}, {pipeline_mode = #tpu.pipeline_mode<synchronous>, transform_indices = @transform_11, window_bounds = array<i64: 1, 32>}, {pipeline_mode = #tpu.pipeline_mode<synchronous>, transform_indices = @transform_12, window_bounds = array<i64: 1, 1>}, {transform_indices = @transform_13, window_bounds = array<i64: 1, 4, 1>}]} {
    %c0 = arith.constant 0 : index
    %c0_0 = arith.constant 0 : index
    %c0_1 = arith.constant 0 : index
    %0 = vector.load %arg1[%c0, %c0_0, %c0_1] : memref<4x16x16xf32, #tpu.memory_space<vmem>>, vector<4x16x16xf32>
    %1 = vector.shape_cast %0 : vector<4x16x16xf32> to vector<4x16x16x1xf32>
    %c0_2 = arith.constant 0 : index
    %c0_3 = arith.constant 0 : index
    %2 = vector.load %arg4[%c0_2, %c0_3] : memref<1x32xf32, #tpu.memory_space<vmem>>, vector<1x32xf32>
    %3 = vector.shape_cast %2 : vector<1x32xf32> to vector<1x1x1x32xf32>
    %c0_4 = arith.constant 0 : index
    %c0_5 = arith.constant 0 : index
    %4 = vector.load %arg5[%c0_4, %c0_5] : memref<1x32xf32, #tpu.memory_space<vmem>>, vector<1x32xf32>
    %5 = vector.shape_cast %4 : vector<1x32xf32> to vector<1x1x1x32xf32>
    %c0_6 = arith.constant 0 : index
    %c0_7 = arith.constant 0 : index
    %c0_8 = arith.constant 0 : index
    %6 = vector.load %arg3[%c0_6, %c0_7, %c0_8] : memref<4x16x16xf32, #tpu.memory_space<vmem>>, vector<4x16x16xf32>
    %7 = vector.shape_cast %6 : vector<4x16x16xf32> to vector<4x16x16x1xf32>
    %8 = vector.broadcast %7 : vector<4x16x16x1xf32> to vector<4x16x16x32xf32>
    %9 = vector.broadcast %3 : vector<1x1x1x32xf32> to vector<4x16x16x32xf32>
    %10 = arith.mulf %8, %9 : vector<4x16x16x32xf32>
    %11 = vector.broadcast %5 : vector<1x1x1x32xf32> to vector<4x16x16x32xf32>
    %12 = arith.addf %10, %11 : vector<4x16x16x32xf32>
    %c0_9 = arith.constant 0 : index
    %c0_10 = arith.constant 0 : index
    %c0_11 = arith.constant 0 : index
    %13 = vector.load %arg2[%c0_9, %c0_10, %c0_11] : memref<4x16x5xf32, #tpu.memory_space<vmem>>, vector<4x16x5xf32>
    %14 = vector.shape_cast %13 : vector<4x16x5xf32> to vector<64x5xf32>
    %c0_12 = arith.constant 0 : index
    %c0_13 = arith.constant 0 : index
    %15 = vector.load %arg6[%c0_12, %c0_13] : memref<5x32xf32, #tpu.memory_space<vmem>>, vector<5x32xf32>
    %cst = arith.constant dense<0.000000e+00> : vector<64x32xf32>
    %16 = tpu.matmul %14, %15, %cst {dimension_numbers = #tpu.dot_dimension_numbers<[1], [0], [0], [1], [0, 0, 1, 1], [], []>} : vector<64x5xf32>, vector<5x32xf32>, vector<64x32xf32> -> vector<64x32xf32>
    %c0_14 = arith.constant 0 : index
    %c0_15 = arith.constant 0 : index
    %17 = vector.load %arg7[%c0_14, %c0_15] : memref<1x32xf32, #tpu.memory_space<vmem>>, vector<1x32xf32>
    %18 = vector.broadcast %17 : vector<1x32xf32> to vector<64x32xf32>
    %19 = arith.addf %16, %18 : vector<64x32xf32>
    %20 = vector.shape_cast %19 : vector<64x32xf32> to vector<4x16x32xf32>
    %21 = vector.shape_cast %20 : vector<4x16x32xf32> to vector<4x1x16x32xf32>
    %22 = vector.broadcast %21 : vector<4x1x16x32xf32> to vector<4x16x16x32xf32>
    %23 = arith.addf %22, %12 : vector<4x16x16x32xf32>
    %cst_16 = arith.constant 0.000000e+00 : f32
    %24 = vector.broadcast %cst_16 : f32 to vector<4x16x16x32xf32>
    %25 = arith.maximumf %23, %24 : vector<4x16x16x32xf32>
    %26 = vector.broadcast %1 : vector<4x16x16x1xf32> to vector<4x16x16x32xf32>
    %27 = arith.mulf %26, %25 : vector<4x16x16x32xf32>
    %cst_17 = arith.constant dense<0.000000e+00> : vector<4x16x32xf32>
    %28 = vector.multi_reduction <add>, %27, %cst_17 [2] : vector<4x16x16x32xf32> to vector<4x16x32xf32>
    %cst_18 = arith.constant 1.000000e+00 : f32
    %29 = vector.broadcast %cst_18 : f32 to vector<4x16x32xf32>
    %30 = arith.mulf %29, %20 : vector<4x16x32xf32>
    %31 = arith.addf %30, %28 : vector<4x16x32xf32>
    %32 = vector.shape_cast %31 : vector<4x16x32xf32> to vector<64x32xf32>
    %c0_19 = arith.constant 0 : index
    %c0_20 = arith.constant 0 : index
    %c0_21 = arith.constant 0 : index
    %33 = vector.load %arg8[%c0_19, %c0_20, %c0_21] : memref<2x32x32xf32, #tpu.memory_space<vmem>>, vector<1x32x32xf32>
    %34 = vector.shape_cast %33 : vector<1x32x32xf32> to vector<32x32xf32>
    %cst_22 = arith.constant dense<0.000000e+00> : vector<64x32xf32>
    %35 = tpu.matmul %32, %34, %cst_22 {dimension_numbers = #tpu.dot_dimension_numbers<[1], [0], [0], [1], [0, 0, 1, 1], [], []>} : vector<64x32xf32>, vector<32x32xf32>, vector<64x32xf32> -> vector<64x32xf32>
    %c0_23 = arith.constant 0 : index
    %c0_24 = arith.constant 0 : index
    %c0_25 = arith.constant 0 : index
    %36 = vector.load %arg9[%c0_23, %c0_24, %c0_25] : memref<2x1x32xf32, #tpu.memory_space<vmem>>, vector<1x1x32xf32>
    %37 = vector.shape_cast %36 : vector<1x1x32xf32> to vector<1x32xf32>
    %38 = vector.broadcast %37 : vector<1x32xf32> to vector<64x32xf32>
    %39 = arith.addf %35, %38 : vector<64x32xf32>
    %cst_26 = arith.constant 0.000000e+00 : f32
    %40 = vector.broadcast %cst_26 : f32 to vector<64x32xf32>
    %41 = arith.maximumf %39, %40 : vector<64x32xf32>
    %c0_27 = arith.constant 0 : index
    %c0_28 = arith.constant 0 : index
    %c0_29 = arith.constant 0 : index
    %42 = vector.load %arg10[%c0_27, %c0_28, %c0_29] : memref<2x32x32xf32, #tpu.memory_space<vmem>>, vector<1x32x32xf32>
    %43 = vector.shape_cast %42 : vector<1x32x32xf32> to vector<32x32xf32>
    %cst_30 = arith.constant dense<0.000000e+00> : vector<64x32xf32>
    %44 = tpu.matmul %41, %43, %cst_30 {dimension_numbers = #tpu.dot_dimension_numbers<[1], [0], [0], [1], [0, 0, 1, 1], [], []>} : vector<64x32xf32>, vector<32x32xf32>, vector<64x32xf32> -> vector<64x32xf32>
    %c0_31 = arith.constant 0 : index
    %c0_32 = arith.constant 0 : index
    %c0_33 = arith.constant 0 : index
    %45 = vector.load %arg11[%c0_31, %c0_32, %c0_33] : memref<2x1x32xf32, #tpu.memory_space<vmem>>, vector<1x1x32xf32>
    %46 = vector.shape_cast %45 : vector<1x1x32xf32> to vector<1x32xf32>
    %47 = vector.broadcast %46 : vector<1x32xf32> to vector<64x32xf32>
    %48 = arith.addf %44, %47 : vector<64x32xf32>
    %49 = vector.shape_cast %48 : vector<64x32xf32> to vector<4x16x32xf32>
    %50 = vector.shape_cast %49 : vector<4x16x32xf32> to vector<4x1x16x32xf32>
    %51 = vector.broadcast %50 : vector<4x1x16x32xf32> to vector<4x16x16x32xf32>
    %52 = arith.addf %51, %12 : vector<4x16x16x32xf32>
    %cst_34 = arith.constant 0.000000e+00 : f32
    %53 = vector.broadcast %cst_34 : f32 to vector<4x16x16x32xf32>
    %54 = arith.maximumf %52, %53 : vector<4x16x16x32xf32>
    %55 = vector.broadcast %1 : vector<4x16x16x1xf32> to vector<4x16x16x32xf32>
    %56 = arith.mulf %55, %54 : vector<4x16x16x32xf32>
    %cst_35 = arith.constant dense<0.000000e+00> : vector<4x16x32xf32>
    %57 = vector.multi_reduction <add>, %56, %cst_35 [2] : vector<4x16x16x32xf32> to vector<4x16x32xf32>
    %cst_36 = arith.constant 1.000000e+00 : f32
    %58 = vector.broadcast %cst_36 : f32 to vector<4x16x32xf32>
    %59 = arith.mulf %58, %49 : vector<4x16x32xf32>
    %60 = arith.addf %59, %57 : vector<4x16x32xf32>
    %61 = vector.shape_cast %60 : vector<4x16x32xf32> to vector<64x32xf32>
    %c1 = arith.constant 1 : index
    %c0_37 = arith.constant 0 : index
    %c0_38 = arith.constant 0 : index
    %62 = vector.load %arg8[%c1, %c0_37, %c0_38] : memref<2x32x32xf32, #tpu.memory_space<vmem>>, vector<1x32x32xf32>
    %63 = vector.shape_cast %62 : vector<1x32x32xf32> to vector<32x32xf32>
    %cst_39 = arith.constant dense<0.000000e+00> : vector<64x32xf32>
    %64 = tpu.matmul %61, %63, %cst_39 {dimension_numbers = #tpu.dot_dimension_numbers<[1], [0], [0], [1], [0, 0, 1, 1], [], []>} : vector<64x32xf32>, vector<32x32xf32>, vector<64x32xf32> -> vector<64x32xf32>
    %c1_40 = arith.constant 1 : index
    %c0_41 = arith.constant 0 : index
    %c0_42 = arith.constant 0 : index
    %65 = vector.load %arg9[%c1_40, %c0_41, %c0_42] : memref<2x1x32xf32, #tpu.memory_space<vmem>>, vector<1x1x32xf32>
    %66 = vector.shape_cast %65 : vector<1x1x32xf32> to vector<1x32xf32>
    %67 = vector.broadcast %66 : vector<1x32xf32> to vector<64x32xf32>
    %68 = arith.addf %64, %67 : vector<64x32xf32>
    %cst_43 = arith.constant 0.000000e+00 : f32
    %69 = vector.broadcast %cst_43 : f32 to vector<64x32xf32>
    %70 = arith.maximumf %68, %69 : vector<64x32xf32>
    %c1_44 = arith.constant 1 : index
    %c0_45 = arith.constant 0 : index
    %c0_46 = arith.constant 0 : index
    %71 = vector.load %arg10[%c1_44, %c0_45, %c0_46] : memref<2x32x32xf32, #tpu.memory_space<vmem>>, vector<1x32x32xf32>
    %72 = vector.shape_cast %71 : vector<1x32x32xf32> to vector<32x32xf32>
    %cst_47 = arith.constant dense<0.000000e+00> : vector<64x32xf32>
    %73 = tpu.matmul %70, %72, %cst_47 {dimension_numbers = #tpu.dot_dimension_numbers<[1], [0], [0], [1], [0, 0, 1, 1], [], []>} : vector<64x32xf32>, vector<32x32xf32>, vector<64x32xf32> -> vector<64x32xf32>
    %c1_48 = arith.constant 1 : index
    %c0_49 = arith.constant 0 : index
    %c0_50 = arith.constant 0 : index
    %74 = vector.load %arg11[%c1_48, %c0_49, %c0_50] : memref<2x1x32xf32, #tpu.memory_space<vmem>>, vector<1x1x32xf32>
    %75 = vector.shape_cast %74 : vector<1x1x32xf32> to vector<1x32xf32>
    %76 = vector.broadcast %75 : vector<1x32xf32> to vector<64x32xf32>
    %77 = arith.addf %73, %76 : vector<64x32xf32>
    %78 = vector.shape_cast %77 : vector<64x32xf32> to vector<4x16x32xf32>
    %cst_51 = arith.constant dense<0.000000e+00> : vector<4x32xf32>
    %79 = vector.multi_reduction <add>, %78, %cst_51 [1] : vector<4x16x32xf32> to vector<4x32xf32>
    %cst_52 = arith.constant 1.600000e+01 : f32
    %80 = vector.broadcast %cst_52 : f32 to vector<4x32xf32>
    %81 = arith.divf %79, %80 : vector<4x32xf32>
    %c0_53 = arith.constant 0 : index
    %c0_54 = arith.constant 0 : index
    %82 = vector.load %arg12[%c0_53, %c0_54] : memref<1x32xf32, #tpu.memory_space<vmem>>, vector<1x32xf32>
    %83 = vector.broadcast %82 : vector<1x32xf32> to vector<4x32xf32>
    %84 = arith.mulf %81, %83 : vector<4x32xf32>
    %cst_55 = arith.constant dense<0.000000e+00> : vector<4xf32>
    %85 = vector.multi_reduction <add>, %84, %cst_55 [1] : vector<4x32xf32> to vector<4xf32>
    %86 = vector.shape_cast %85 : vector<4xf32> to vector<4x1xf32>
    %c0_56 = arith.constant 0 : index
    %c0_57 = arith.constant 0 : index
    %87 = vector.load %arg13[%c0_56, %c0_57] : memref<1x1xf32, #tpu.memory_space<vmem>>, vector<1x1xf32>
    %88 = vector.broadcast %87 : vector<1x1xf32> to vector<4x1xf32>
    %89 = arith.addf %86, %88 : vector<4x1xf32>
    %cst_58 = arith.constant 0.000000e+00 : f32
    %90 = vector.broadcast %cst_58 : f32 to vector<4x1xf32>
    %91 = arith.cmpf ogt, %89, %90 : vector<4x1xf32>
    %cst_59 = arith.constant 0.00999999977 : f32
    %92 = vector.broadcast %cst_59 : f32 to vector<4x1xf32>
    %93 = arith.mulf %92, %89 : vector<4x1xf32>
    %94 = arith.select %91, %89, %93 : vector<4x1xi1>, vector<4x1xf32>
    %cst_60 = arith.constant 1.000000e+00 : f32
    %95 = vector.broadcast %cst_60 : f32 to vector<4x1xf32>
    %96 = arith.addf %95, %94 : vector<4x1xf32>
    %c0_61 = arith.constant 0 : index
    %c0_62 = arith.constant 0 : index
    %c0_63 = arith.constant 0 : index
    %97 = vector.load %arg14[%c0_61, %c0_62, %c0_63] : memref<1x4x1xf32, #tpu.memory_space<vmem>>, vector<1x4x1xf32>
    %98 = vector.shape_cast %97 : vector<1x4x1xf32> to vector<4x1xf32>
    %99 = vector.shape_cast %96 : vector<4x1xf32> to vector<1x4x1xf32>
    tpu.vector_store %arg14[%c0_61, %c0_62, %c0_63], %99 {strides = array<i32>} : memref<1x4x1xf32, #tpu.memory_space<vmem>>, vector<1x4x1xf32>,
    return
  }
  func.func @transform_0(%arg0: i32) -> (i32, i32, i32) {
    %c0_i32 = arith.constant 0 : i32
    %c0_i32_0 = arith.constant 0 : i32
    %c0_i32_1 = arith.constant 0 : i32
    return %arg0, %c0_i32, %c0_i32_0 : i32, i32, i32
  }
  func.func @transform_1(%arg0: i32) -> (i32, i32, i32) {
    %c0_i32 = arith.constant 0 : i32
    %c0_i32_0 = arith.constant 0 : i32
    %c0_i32_1 = arith.constant 0 : i32
    return %arg0, %c0_i32, %c0_i32_0 : i32, i32, i32
  }
  func.func @transform_2(%arg0: i32) -> (i32, i32, i32) {
    %c0_i32 = arith.constant 0 : i32
    %c0_i32_0 = arith.constant 0 : i32
    %c0_i32_1 = arith.constant 0 : i32
    return %arg0, %c0_i32, %c0_i32_0 : i32, i32, i32
  }
  func.func @transform_3(%arg0: i32) -> (i32, i32) {
    %c0_i32 = arith.constant 0 : i32
    %c0_i32_0 = arith.constant 0 : i32
    %c0_i32_1 = arith.constant 0 : i32
    return %c0_i32, %c0_i32_0 : i32, i32
  }
  func.func @transform_4(%arg0: i32) -> (i32, i32) {
    %c0_i32 = arith.constant 0 : i32
    %c0_i32_0 = arith.constant 0 : i32
    %c0_i32_1 = arith.constant 0 : i32
    return %c0_i32, %c0_i32_0 : i32, i32
  }
  func.func @transform_5(%arg0: i32) -> (i32, i32) {
    %c0_i32 = arith.constant 0 : i32
    %c0_i32_0 = arith.constant 0 : i32
    %c0_i32_1 = arith.constant 0 : i32
    return %c0_i32, %c0_i32_0 : i32, i32
  }
  func.func @transform_6(%arg0: i32) -> (i32, i32) {
    %c0_i32 = arith.constant 0 : i32
    %c0_i32_0 = arith.constant 0 : i32
    %c0_i32_1 = arith.constant 0 : i32
    return %c0_i32, %c0_i32_0 : i32, i32
  }
  func.func @transform_7(%arg0: i32) -> (i32, i32, i32) {
    %c0_i32 = arith.constant 0 : i32
    %c0_i32_0 = arith.constant 0 : i32
    %c0_i32_1 = arith.constant 0 : i32
    %c0_i32_2 = arith.constant 0 : i32
    return %c0_i32, %c0_i32_0, %c0_i32_1 : i32, i32, i32
  }
  func.func @transform_8(%arg0: i32) -> (i32, i32, i32) {
    %c0_i32 = arith.constant 0 : i32
    %c0_i32_0 = arith.constant 0 : i32
    %c0_i32_1 = arith.constant 0 : i32
    %c0_i32_2 = arith.constant 0 : i32
    return %c0_i32, %c0_i32_0, %c0_i32_1 : i32, i32, i32
  }
  func.func @transform_9(%arg0: i32) -> (i32, i32, i32) {
    %c0_i32 = arith.constant 0 : i32
    %c0_i32_0 = arith.constant 0 : i32
    %c0_i32_1 = arith.constant 0 : i32
    %c0_i32_2 = arith.constant 0 : i32
    return %c0_i32, %c0_i32_0, %c0_i32_1 : i32, i32, i32
  }
  func.func @transform_10(%arg0: i32) -> (i32, i32, i32) {
    %c0_i32 = arith.constant 0 : i32
    %c0_i32_0 = arith.constant 0 : i32
    %c0_i32_1 = arith.constant 0 : i32
    %c0_i32_2 = arith.constant 0 : i32
    return %c0_i32, %c0_i32_0, %c0_i32_1 : i32, i32, i32
  }
  func.func @transform_11(%arg0: i32) -> (i32, i32) {
    %c0_i32 = arith.constant 0 : i32
    %c0_i32_0 = arith.constant 0 : i32
    %c0_i32_1 = arith.constant 0 : i32
    return %c0_i32, %c0_i32_0 : i32, i32
  }
  func.func @transform_12(%arg0: i32) -> (i32, i32) {
    %c0_i32 = arith.constant 0 : i32
    %c0_i32_0 = arith.constant 0 : i32
    %c0_i32_1 = arith.constant 0 : i32
    return %c0_i32, %c0_i32_0 : i32, i32
  }
  func.func @transform_13(%arg0: i32) -> (i32, i32, i32) {
    %c0_i32 = arith.constant 0 : i32
    %c0_i32_0 = arith.constant 0 : i32
    %c0_i32_1 = arith.constant 0 : i32
    return %arg0, %c0_i32, %c0_i32_0 : i32, i32, i32
  }
}

</mosaic_0001>

<bundles_post_ra>
// kernel: tpu_custom_call.1
= control target key start
LH: loop header
LB: loop body
LE: loop exit
PB: predicated region body
PF: predicated region fallthrough
CT: control target
= control target key end

     0   :  { %s9641_s0 = inlined_call_operand.vmem [shape: f32[8,16,16], index: 0, kind: input, shape index: {}]   ;;  %s9642_s1 = inlined_call_operand.vmem [shape: f32[8,16,5], index: 1, kind: input, shape index: {}]   ;;  %s9643_s2 = inlined_call_operand.hbm [shape: f32[8,16,16], index: 2, kind: input, shape index: {}]   ;;  %s9644_s3 = inlined_call_operand.hbm [shape: f32[1,32], index: 3, kind: input, shape index: {}]   ;;  %s9645_s4 = inlined_call_operand.hbm [shape: f32[1,32], index: 4, kind: input, shape index: {}]   ;;  %s9646_s5 = inlined_call_operand.hbm [shape: f32[5,32], index: 5, kind: input, shape index: {}]   ;;  %s9647_s6 = inlined_call_operand.hbm [shape: f32[1,32], index: 6, kind: input, shape index: {}]   ;;  %s9648_s7 = inlined_call_operand.vmem [shape: f32[2,32,32], index: 7, kind: input, shape index: {}]   ;;  %s9649_s8 = inlined_call_operand.vmem [shape: f32[2,1,32], index: 8, kind: input, shape index: {}]   ;;  %s9650_s9 = inlined_call_operand.hbm [shape: f32[2,32,32], index: 9, kind: input, shape index: {}]   ;;  %s9651_s10 = inlined_call_operand.vmem [shape: f32[2,1,32], index: 10, kind: input, shape index: {}]   ;;  %s9652_s11 = inlined_call_operand.vmem [shape: f32[1,32], index: 11, kind: input, shape index: {}]   ;;  %s9653_s12 = inlined_call_operand.<no memory space> [shape: f32[1,1], index: 12, kind: input, shape index: {}]   ;;  %s9654_s13 = inlined_call_operand.vmem [shape: f32[2,4,1], index: 13, kind: output, shape index: {}]  }
   0x1   :  { %9894 = sst [smem:[#allocation249_spill]] %s9651_s10  ;;  %v18_v0 = vstv %s9653_s12 }
   0x2   :  { %9895 = sst [smem:[#allocation250_spill]] %s9652_s11  ;;  %19 = vst [vmem:[#allocation2] sm:$0x1] %v18_v0 }
   0x3   :  { %9896 = sst [smem:[#allocation251_spill]] %s9654_s13 }
   0x4   :  { %20 = vsyncpa [#allocation4], 0 }
   0x5   :  { %22 = vsyncpa [#allocation4 + $0x1], 0 }
   0x6   :  { %23 = vsyncpa [#allocation6], 0 }
   0x7   :  { %24 = vsyncpa [#allocation9], 0 }
   0x8   :  { %25 = vsyncpa [#allocation12], 0  ;;  %s6096_s27 = smov 0   ;;  %s6098_s28 = smov 0  }
   0x9   :  { %s6100_s29 = smov 0   ;;  %s6102_s30 = smov 0  }
   0xa LB: > { %s6015_s12 = smov [#allocation5]   ;;  %s6117_s15 = sadd.s32 4294967295, %s6013_s30   ;;  %s6013_s30 = sphi %s6102_s30, %s10589_s30   ;;  %s6009_s29 = sphi %s6100_s29, %s10588_s29   ;;  %s6005_s28 = sphi %s6098_s28, %s10587_s28   ;;  %s6001_s27 = sphi %s6096_s27, %s10586_s27  }
   0xb   : > { %s363_s14 = sshll.u32 %s6015_s12, 4  ;;  %p5421_p0 = scmp.ge.s32.totalorder %s6013_s30, 1  ;;  %s6122_s14 = int_to_ptr.vmem [resolvable:$true] %s363_s14 }
   0xc   : > { %p9656_p1 = scmp.eq.s32.totalorder %s6117_s15, 0  ;;  %p350_p2 = scmp.lt.s32.totalorder %s6013_s30, 3 }
   0xd   : > { %s6016_s17 = smov [#allocation8]   ;;  %s6017_s19 = smov [#allocation7]  }
   0xe   : > { %p6124_p3 = pnand %p5421_p0, %p350_p2  ;;  %s385_s18 = sshll.u32 %s6016_s17, 4  ;;  %s6130_s18 = int_to_ptr.vmem [resolvable:$true] %s385_s18 }
   0xf   : > { %s374_s20 = sshll.u32 %s6017_s19, 4  ;;  %s6018_s22 = smov [#allocation10]   ;;  %s6138_s20 = int_to_ptr.vmem [resolvable:$true] %s374_s20 }
  0x10   : > { %s9897_s16 = scalar_select %p6124_p3, 1, 0 }
  0x11   : > { %p5715_p4 = pneg %p6124_p3  ;;  %s6140_s23 = sshll.u32 %s6018_s22, 4  ;;  %s397_s23 = int_to_ptr.vmem [resolvable:$true] %s6140_s23 }
  0x12   : > { %s5797_s26 = scalar_lea.hbm %s9644_s3, 16 }
  0x13   : > { %p6134_p5 = pnand %p5715_p4, %p9656_p1  ;;  %p5798_p6 = scmp.ne.s32.totalorder %s9644_s3, %s5797_s26 }
  0x14   : > { %p5804_p10 = scmp.lt.u32.totalorder %s5797_s26, %s9644_s3 }
  0x15   : > { %p6150_p7 = pneg %p6134_p5 }
  0x17   : > { %p5800_p8 = pnand %p6150_p7, %p5798_p6 }
  0x19   : > { %p5801_p9 = pneg %p5800_p8 }
  0x1b   : > { %p5806_p11 = pnand %p5804_p10, %p5801_p9 }
  0x1d   : > { %5809 = shalt.err (!%p5806_p11)
}
  0x1e   : > { %s5810_s24 = scalar_lea.vmem %s6122_s14, 16  ;;  %s5817_s25 = scalar_lea.vmem %s6122_s14, 32 }
  0x1f   : > { %p5811_p12 = scmp.ne.s32.totalorder %s6122_s14, %s5810_s24  ;;  %p5818_p2 = scmp.lt.s32.totalorder %s6122_s14, %s6122_s14 }
  0x20   : > { %p5819_p4 = scmp.lt.s32.totalorder %s5817_s25, %s5810_s24 }
  0x21   : > { %p5813_p13 = pnand %p5811_p12, %p6150_p7 }
  0x22   : > { %p5820_p6 = por %p5819_p4, %p5818_p2 }
  0x23   : > { %p5814_p0 = pneg %p5813_p13 }
  0x25   : > { %p5821_p8 = pnand %p5820_p6, %p5814_p0 }
  0x27   : > { %5824 = shalt.err (!%p5821_p8)
}
  0x28   : > { %5718 = dma.hbm_to_vmem [thread:$0]  (!%p6134_p5), %s9644_s3, 16, %s6122_s14, [#allocation6]  }
  0x29   : > { %s5825_s22 = scalar_lea.hbm %s9646_s5, 128 }
  0x2a   : > { %p5826_p9 = scmp.ne.s32.totalorder %s9646_s5, %s5825_s22  ;;  %p5832_p12 = scmp.lt.u32.totalorder %s5825_s22, %s9646_s5 }
  0x2c   : > { %p5828_p10 = pnand %p5826_p9, %p6150_p7 }
  0x2e   : > { %p5829_p11 = pneg %p5828_p10 }
  0x30   : > { %p5834_p13 = pnand %p5832_p12, %p5829_p11 }
  0x32   : > { %5837 = shalt.err (!%p5834_p13)
}
  0x33   : > { %s5838_s14 = scalar_lea.vmem %s6130_s18, 128  ;;  %p5846_p6 = scmp.lt.s32.totalorder %s6130_s18, %s6130_s18 }
  0x34   : > { %p5839_p0 = scmp.ne.s32.totalorder %s6130_s18, %s5838_s14  ;;  %p5847_p8 = scmp.lt.s32.totalorder %s5838_s14, %s5838_s14 }
  0x36   : > { %p5841_p2 = pnand %p5839_p0, %p6150_p7  ;;  %p5848_p9 = por %p5847_p8, %p5846_p6 }
  0x38   : > { %p5842_p4 = pneg %p5841_p2 }
  0x3a   : > { %p5849_p10 = pnand %p5848_p9, %p5842_p4 }
  0x3c   : > { %5852 = shalt.err (!%p5849_p10)
}
  0x3d   : > { %5724 = dma.hbm_to_vmem [thread:$0]  (!%p6134_p5), %s9646_s5, 128, %s6130_s18, [#allocation9]  }
  0x3e   : > { %s5853_s12 = scalar_lea.hbm %s9645_s4, 16 }
  0x3f   : > { %p5854_p11 = scmp.ne.s32.totalorder %s9645_s4, %s5853_s12  ;;  %p5860_p0 = scmp.lt.u32.totalorder %s5853_s12, %s9645_s4 }
  0x41   : > { %p5856_p12 = pnand %p5854_p11, %p6150_p7 }
  0x43   : > { %p5857_p13 = pneg %p5856_p12 }
  0x45   : > { %p5862_p2 = pnand %p5860_p0, %p5857_p13 }
  0x47   : > { %5865 = shalt.err (!%p5862_p2)
}
  0x48   : > { %s5866_s18 = scalar_lea.vmem %s6138_s20, 16  ;;  %s5873_s14 = scalar_lea.vmem %s6138_s20, 32 }
  0x49   : > { %p5867_p4 = scmp.ne.s32.totalorder %s6138_s20, %s5866_s18  ;;  %p5874_p9 = scmp.lt.s32.totalorder %s6138_s20, %s6138_s20 }
  0x4a   : > { %p5875_p10 = scmp.lt.s32.totalorder %s5873_s14, %s5866_s18 }
  0x4b   : > { %p5869_p6 = pnand %p5867_p4, %p6150_p7 }
  0x4c   : > { %p5876_p11 = por %p5875_p10, %p5874_p9 }
  0x4d   : > { %p5870_p8 = pneg %p5869_p6 }
  0x4f   : > { %p5877_p12 = pnand %p5876_p11, %p5870_p8 }
  0x51   : > { %5880 = shalt.err (!%p5877_p12)
}
  0x52   : > { %5721 = dma.hbm_to_vmem [thread:$0]  (!%p6134_p5), %s9645_s4, 16, %s6138_s20, [#allocation6]  }
  0x53   : > { %s6019_s13 = smov [#allocation11]   ;;  %s5881_s22 = scalar_lea.hbm %s9647_s6, 16 }
  0x54   : > { %s412_s26 = sshll.u32 %s6019_s13, 4  ;;  %p5882_p13 = scmp.ne.s32.totalorder %s9647_s6, %s5881_s22  ;;  %s413_s26 = int_to_ptr.vmem [resolvable:$true] %s412_s26 }
  0x55   : > { %p5888_p4 = scmp.lt.u32.totalorder %s5881_s22, %s9647_s6 }
  0x56   : > { %p5884_p0 = pnand %p5882_p13, %p6150_p7 }
  0x58   : > { %p5885_p2 = pneg %p5884_p0 }
  0x5a   : > { %p5890_p6 = pnand %p5888_p4, %p5885_p2 }
  0x5c   : > { %5893 = shalt.err (!%p5890_p6)
}
  0x5d   : > { %s5894_s20 = scalar_lea.vmem %s397_s23, 16  ;;  %s5901_s10 = scalar_lea.vmem %s397_s23, 32 }
  0x5e   : > { %p5895_p8 = scmp.ne.s32.totalorder %s397_s23, %s5894_s20  ;;  %p5902_p11 = scmp.lt.s32.totalorder %s397_s23, %s397_s23 }
  0x5f   : > { %p5903_p12 = scmp.lt.s32.totalorder %s5901_s10, %s5894_s20 }
  0x60   : > { %p5897_p9 = pnand %p5895_p8, %p6150_p7 }
  0x61   : > { %p5904_p1 = por %p5903_p12, %p5902_p11 }
  0x62   : > { %p5898_p10 = pneg %p5897_p9 }
  0x64   : > { %p5905_p3 = pnand %p5904_p1, %p5898_p10 }
  0x66   : > { %5908 = shalt.err (!%p5905_p3)
}
  0x67   : > { %5727 = dma.hbm_to_vmem [thread:$0]  (!%p6134_p5), %s9647_s6, 16, %s397_s23, [#allocation9]  }
  0x68   : > { %s5909_s22 = scalar_lea.hbm %s9650_s9, 1024 }
  0x69   : > { %p5910_p13 = scmp.ne.s32.totalorder %s9650_s9, %s5909_s22  ;;  %p5916_p3 = scmp.lt.u32.totalorder %s5909_s22, %s9650_s9 }
  0x6b   : > { %p5912_p0 = pnand %p5910_p13, %p6150_p7 }
  0x6d   : > { %p5913_p1 = pneg %p5912_p0 }
  0x6f   : > { %p5918_p2 = pnand %p5916_p3, %p5913_p1 }
  0x71   : > { %5921 = shalt.err (!%p5918_p2)
}
  0x72   : > { %s5922_s20 = scalar_lea.vmem %s413_s26, 1024  ;;  %p5930_p9 = scmp.lt.s32.totalorder %s413_s26, %s413_s26 }
  0x73   : > { %p5923_p4 = scmp.ne.s32.totalorder %s413_s26, %s5922_s20  ;;  %p5931_p10 = scmp.lt.s32.totalorder %s5922_s20, %s5922_s20 }
  0x75   : > { %p5925_p6 = pnand %p5923_p4, %p6150_p7  ;;  %p5932_p11 = por %p5931_p10, %p5930_p9 }
  0x77   : > { %p5926_p8 = pneg %p5925_p6 }
  0x79   : > { %p5933_p12 = pnand %p5932_p11, %p5926_p8 }
  0x7b   : > { %5936 = shalt.err (!%p5933_p12)
}
  0x7c   : > { %s6020_s23 = smov 128   ;;  %s6021_s19 = smov 8  }
  0x7d   : > { %5730 = dma.hbm_to_vmem [thread:$0]  (!%p6134_p5), %s9650_s9, 1024, %s413_s26, [#allocation12], %s6020_s23, %s6020_s23, %s6021_s19  }
  0x7e   : > { %s6260_s13 = sadd.s32 1, %s6013_s30   ;;  %s90_s17 = sadd.s32 1, %s6009_s29 }
  0x7f   : > { %s87_s12 = ssub.s32 %s6013_s30, %s6260_s13  ;;  %p97_p13 = scmp.ne.s32.totalorder %s6009_s29, %s6005_s28 }
  0x80   : > { %p88_p7 = scmp.eq.s32.totalorder %s87_s12, 0  ;;  %p98_p0 = scmp.eq.s32.totalorder %s6013_s30, 0 }
  0x81   : > { %p103_p1 = scmp.ne.s32.totalorder %s6005_s28, %s6001_s27  ;;  %p9900_p2 = scmp.eq.s32.totalorder %s6117_s15, 0 }
  0x82   : > { %s6271_s22 = scalar_select %p88_p7, %s6009_s29, %s90_s17  }
  0x83   : > { %p99_p3 = por %p98_p0, %p97_p13  ;;  %p6275_p4 = por %p9900_p2, %p103_p1 }
  0x84   : > { %p5740_p6 = scmp.lt.s32.totalorder %s6013_s30, 2  ;;  %s455_s24 = sand.u32 1, %s6009_s29  }
  0x85   : > { %s5428_s26 = sshll.u32 %s455_s24, 6  ;;  %s5505_s25 = sshll.u32 %s6013_s30, 10 }
  0x86   : > { %s6285_s20 = scalar_lea.hbm %s9643_s2, %s5505_s25  ;;  %s459_s27 = scalar_lea.vmem [#allocation3], %s5428_s26 }
  0x87   : > { %s467_s10 = sshll.u32 %s459_s27, 4  ;;  %p6289_p5 = pnand %p5740_p6, %p99_p3  ;;  %s6287_s10 = int_to_ptr.vmem [resolvable:$true] %s467_s10 }
  0x88   : > { %s6293_s30 = scalar_lea.sflag [#allocation4], %s455_s24  ;;  %s5937_s12 = scalar_lea.hbm %s6285_s20, 1024 }
  0x89   : > { %p5938_p8 = scmp.ne.s32.totalorder %s6285_s20, %s5937_s12  ;;  %p5939_p9 = pneg %p6289_p5 }
  0x8a   : > { %s5942_s25 = scalar_lea.hbm %s9643_s2, 2048  ;;  %p5943_p12 = scmp.lt.u32.totalorder %s6285_s20, %s9643_s2 }
  0x8b   : > { %p5940_p10 = pnand %p5939_p9, %p5938_p8  ;;  %p5944_p7 = scmp.lt.u32.totalorder %s5942_s25, %s5937_s12 }
  0x8c   : > { %p5946_p0 = scmp.lt.u32.totalorder %s5937_s12, %s6285_s20 }
  0x8d   : > { %p5941_p11 = pneg %p5940_p10  ;;  %p5945_p13 = por %p5944_p7, %p5943_p12 }
  0x8f   : > { %p5947_p1 = por %p5946_p0, %p5945_p13 }
  0x91   : > { %p5948_p3 = pnand %p5947_p1, %p5941_p11 }
  0x93   : > { %5951 = shalt.err (!%p5948_p3)
}
  0x94   : > { %s5952_s24 = scalar_lea.vmem %s6287_s10, 1024  ;;  %s6022_s27 = smov [#allocation3]  }
  0x95   : > { %p5953_p2 = scmp.ne.s32.totalorder %s6287_s10, %s5952_s24  ;;  %s5957_s17 = sshll.u32 %s6022_s27, 4  ;;  %s5958_s17 = int_to_ptr.vmem [resolvable:$false] %s5957_s17 }
  0x96   : > { %s5959_s26 = scalar_lea.vmem %s5958_s17, 2048  ;;  %p5960_p10 = scmp.lt.s32.totalorder %s6287_s10, %s5958_s17 }
  0x97   : > { %p5955_p6 = pnand %p5953_p2, %p5939_p9  ;;  %p5961_p12 = scmp.lt.s32.totalorder %s5959_s26, %s5952_s24 }
  0x99   : > { %p5956_p8 = pneg %p5955_p6  ;;  %p5962_p7 = por %p5961_p12, %p5960_p10 }
  0x9b   : > { %p5963_p13 = pnand %p5962_p7, %p5956_p8 }
  0x9d   : > { %5966 = shalt.err (!%p5963_p13)
}
  0x9e   : > { %5734 = dma.hbm_to_vmem [thread:$0]  (!%p6289_p5), %s6285_s20, 1024, %s6287_s10, %s6293_s30, %s6020_s23, %s6020_s23, %s6021_s19  }
  0x9f   : > { %p9903_p9 = scmp.ne.s32.totalorder %s9897_s16, 0 }
  0xa1   : > { %479 = sbr.rel (%p9903_p9) target bundleno = 1980 (0x7bc), region = 72 }
  0xa8   : > { %s481_s12 = sand.u32 1, %s6005_s28  }
  0xa9   : > { %s5433_s25 = sshll.u32 %s481_s12, 6  ;;  %s482_s18 = scalar_lea.sflag [#allocation4], %s481_s12 }
  0xaa   : > { %s6327_s14 = scalar_lea.vmem [#allocation3], %s5433_s25 }
  0xab   : > { %5984 = dma.done.wait (%p6275_p4), %s482_s18, 1024  }
  0xac   : > { %5986 = vsyncadd (%p6275_p4), %s482_s18, 4294966272  ;;  %p9904_p11 = scmp.eq.s32.totalorder %s6117_s15, 0 }
  0xae   : > { %5988 = dma.done.wait (%p9904_p11), [#allocation6], 32   ;;  %p9905_p5 = pmov %p9904_p11 }
  0xb0   : > { %5990 = vsyncadd (%p9905_p5), [#allocation6], 4294967264  ;;  %p9906_p0 = pmov %p9905_p5 }
  0xb2   : > { %5992 = dma.done.wait (%p9906_p0), [#allocation9], 144   ;;  %p9907_p1 = pmov %p9906_p0 }
  0xb3   : > { %p9908_p3 = pmov %p9906_p0 }
  0xb4   : > { %5994 = vsyncadd (%p9907_p1), [#allocation9], 4294967152 }
  0xb5   : > { %5996 = dma.done.wait (%p9908_p3), [#allocation12], 1024   ;;  %p9909_p2 = pmov %p9906_p0 }
  0xb6   : > { %s5439_s16 = sshll.u32 %s6117_s15, 2  ;;  %v586_v1 = vlaneseq  ;;  %vm2313_vm0 = vcmask 1044480   ;;  %vm2288_vm1 = vcmask 39936   ;;  %v2280_v5 = vld [vmem:[#allocation8] sm:$0x1f]  ;;  %v6415_v31 = vld [vmem:[%s6327_s14 + $0x10] sm:$0xff] }
  0xb7   : > { %5998 = vsyncadd (%p9909_p2), [#allocation12], 4294966272  ;;  %p560_p4 = scmp.lt.s32.totalorder %s5439_s16, 7  ;;  %5565 = vmatprep.subr.msk.mxu0 %vm2313_vm0, %v2280_v5  ;;  %v6365_v8 = vld [vmem:[%s6327_s14] sm:$0xff]  ;;  %5691 = vmatprep.subr.msk.mxu1 %vm2313_vm0, %v2280_v5  ;;  %v6385_v19 = vld [vmem:[%s6327_s14 + $0x8] sm:$0xff]  ;;  %vm2806_vm2 = vcmask 261120  }
  0xb8   : > { %v6346_v2 = vshrl.u32 %v586_v1, 7  ;;  %5566 = vmatpush3.msk.msra.mxu0 %vm2313_vm0, %v2280_v5  ;;  %5692 = vmatpush3.msk.msra.mxu1 %vm2313_vm0, %v2280_v5  ;;  %v6431_v38 = vld [vmem:[%s6327_s14 + $0x18] sm:$0xff]  ;;  %v6473_v54 = vld [vmem:[%s6327_s14 + $0x20] sm:$0xff]  ;;  %vm3447_vm3 = vcmask 1041409   ;;  %vm3449_vm4 = vcmask 1042434   ;;  %vm3451_vm5 = vcmask 1043459  }
  0xb9   : > { %s10591_s16 = smov (!%p560_p4, %s5439_s16), 7  ;;  %vm3453_vm6 = vcmask 1044484   ;;  %vm3455_vm7 = vcmask 1045509   ;;  %vm3457_vm8 = vcmask 1046534   ;;  %vm3459_vm9 = vcmask 1047559   ;;  %s10351_s12 = sld [smem:[#allocation249_spill]] }
  0xba   : > { %s5506_s23 = sshll.u32 %s10591_s16, 4  ;;  %v6352_v3 = vsub.s32 1, %v6346_v2  ;;  %v6355_v4 = vsub.s32 0, %v6346_v2  ;;  %v6376_v15 = vsub.s32 2, %v6346_v2  ;;  %v6394_v22 = vsub.s32 3, %v6346_v2  ;;  %s10584_s10 = sld [smem:[#allocation250_spill]] }
  0xbb   : > { %s571_s20 = scalar_lea.vmem %s9642_s1, %s5506_s23  ;;  %v6401_v25 = vsub.s32 4, %v6346_v2  ;;  %v6408_v28 = vsub.s32 5, %v6346_v2  ;;  %v6422_v34 = vsub.s32 6, %v6346_v2  ;;  %v6438_v41 = vsub.s32 7, %v6346_v2  ;;  %s6457_s30 = scalar_lea.vmem %s9641_s0, %s5506_s23 }
  0xbc   : > { %v2272_v6 = vld [vmem:[%s571_s20] sm:$0xff]  ;;  %v2273_v7 = vld [vmem:[%s571_s20 + $0x8] sm:$0xff]  ;;  %v1314_v9 = vrot.slane %v6365_v8, %v6352_v3  ;;  %v1303_v10 = vrot.slane %v6365_v8, %v6355_v4  ;;  %v2274_v11 = vld [vmem:[%s571_s20 + $0x10] sm:$0xff]  ;;  %v1325_v18 = vrot.slane %v6365_v8, %v6376_v15  ;;  %v1391_v20 = vrot.slane %v6385_v19, %v6355_v4  ;;  %p574_p6 = scmp.lt.s32.totalorder %s6117_s15, 1  ;;  %s10585_s27 = sld [smem:[#allocation251_spill]] }
  0xbd   : > { %5567 = vmatprep.mubr.msk.f32.mxu0 %vm2288_vm1, %v2272_v6  ;;  %v2276_v12 = vld [vmem:[%s571_s20 + $0x20] sm:$0xff]  ;;  %v2277_v13 = vld [vmem:[%s571_s20 + $0x28] sm:$0xff]  ;;  %v2275_v14 = vld [vmem:[%s571_s20 + $0x18] sm:$0xff]  ;;  %v1402_v21 = vrot.slane %v6385_v19, %v6352_v3  ;;  %v1336_v23 = vrot.slane %v6365_v8, %v6394_v22  ;;  %v1413_v24 = vrot.slane %v6385_v19, %v6376_v15  ;;  %v1347_v26 = vrot.slane %v6365_v8, %v6401_v25 }
  0xbe   : > { %5568 = vmatmul.mubr.msk.f32.vlgmr.msra.gmra.mrb[0].mxu0 %vm2288_vm1, %v2273_v7  ;;  %1316 = vbcast.lane.b32.xlu1 %v1314_v9, 256  ;;  %v2278_v16 = vld [vmem:[%s571_s20 + $0x30] sm:$0xff]  ;;  %v2279_v17 = vld [vmem:[%s571_s20 + $0x38] sm:$0xff]  ;;  %v1424_v27 = vrot.slane %v6385_v19, %v6394_v22  ;;  %v1358_v29 = vrot.slane %v6365_v8, %v6408_v28  ;;  %v1435_v30 = vrot.slane %v6385_v19, %v6401_v25  ;;  %v6462_v49 = vld [vmem:[%s6457_s30] sm:$0xff]  ;;  %vm5265_vm10 = vcmask 257024   ;;  %s10593_s15 = smov (!%p574_p6, %s6117_s15), 1 }
  0xbf   : > { %1305 = vbcast.lane.b32.xlu0 %v1303_v10, 256  ;;  %5570 = vmatprep.mubr.msk.f32.mxu0 %vm2288_vm1, %v2274_v11  ;;  %v1479_v32 = vrot.slane %v6415_v31, %v6355_v4  ;;  %v1490_v33 = vrot.slane %v6415_v31, %v6352_v3  ;;  %v1369_v35 = vrot.slane %v6365_v8, %v6422_v34  ;;  %v6490_v62 = vld [vmem:[%s6457_s30 + $0x8] sm:$0xff]  ;;  %s5445_s11 = sshll.u32 %s10593_s15, 2  ;;  %vm5281_vm12 = vcmask 3072  }
  0xc0   : > { %5573 = vmatprep.mubr.msk.f32.mxu1 %vm2288_vm1, %v2276_v12  ;;  %v1446_v36 = vrot.slane %v6385_v19, %v6408_v28  ;;  %v1501_v37 = vrot.slane %v6415_v31, %v6376_v15  ;;  %v1567_v39 = vrot.slane %v6431_v38, %v6355_v4  ;;  %v1578_v40 = vrot.slane %v6431_v38, %v6352_v3 }
  0xc1   : > { %5574 = vmatmul.mubr.msk.f32.vlgmr.msra.gmra.mrb[0].mxu1 %vm2288_vm1, %v2277_v13  ;;  %v1380_v42 = vrot.slane %v6365_v8, %v6438_v41  ;;  %v1457_v43 = vrot.slane %v6385_v19, %v6422_v34  ;;  %v1512_v44 = vrot.slane %v6415_v31, %v6394_v22  ;;  %v1589_v45 = vrot.slane %v6431_v38, %v6376_v15 }
  0xc2   : > { %5571 = vmatmul.mubr.msk.f32.gmra.mrb[2].mxu0 %vm2288_vm1, %v2275_v14  ;;  %1320 = vbcast.lane.b32.xlu1 %v1314_v9, 264  ;;  %v1468_v46 = vrot.slane %v6385_v19, %v6438_v41  ;;  %v1523_v47 = vrot.slane %v6415_v31, %v6401_v25  ;;  %v1600_v48 = vrot.slane %v6431_v38, %v6394_v22  ;;  %s577_s17 = scalar_lea.vmem %s10585_s27, %s5445_s11 }
  0xc3   : > { %1309 = vbcast.lane.b32.xlu0 %v1303_v10, 264  ;;  %5576 = vmatprep.mubr.msk.f32.mxu1 %vm2288_vm1, %v2278_v16  ;;  %v589_v50 = vrot.slane %v6462_v49, %v6355_v4  ;;  %v600_v51 = vrot.slane %v6462_v49, %v6352_v3  ;;  %v1534_v52 = vrot.slane %v6415_v31, %v6408_v28 }
  0xc4   : > { %v1611_v53 = vrot.slane %v6431_v38, %v6401_v25  ;;  %v1655_v55 = vrot.slane %v6473_v54, %v6355_v4  ;;  %v1666_v58 = vrot.slane %v6473_v54, %v6352_v3  ;;  %v611_v61 = vrot.slane %v6462_v49, %v6376_v15 }
  0xc5   : > { %5577 = vmatmul.mubr.msk.f32.gmra.mrb[2].mxu1 %vm2288_vm1, %v2279_v17  ;;  %v677_v1 = vrot.slane %v6490_v62, %v6355_v4  ;;  %v688_v6 = vrot.slane %v6490_v62, %v6352_v3  ;;  %v1545_v9 = vrot.slane %v6415_v31, %v6422_v34  ;;  %v1622_v12 = vrot.slane %v6431_v38, %v6408_v28  ;;  %v6523_v17 = vld [vmem:[%s6327_s14 + $0x28] sm:$0xff] }
  0xc6   : > { %1331 = vbcast.lane.b32.xlu1 %v1325_v18, 264  ;;  %v1677_v16 = vrot.slane %v6473_v54, %v6376_v15 }
  0xc7   : > { %1327 = vbcast.lane.b32.xlu0 %v1325_v18, 256 }
  0xca   : > { %1397 = vbcast.lane.b32.xlu1 %v1391_v20, 264 }
  0xcb   : > { %1393 = vbcast.lane.b32.xlu0 %v1391_v20, 256  ;;  %v1743_v20 = vrot.slane %v6523_v17, %v6355_v4 }
  0xce   : > { %1408 = vbcast.lane.b32.xlu1 %v1402_v21, 264 }
  0xcf   : > { %1404 = vbcast.lane.b32.xlu0 %v1402_v21, 256 }
  0xd2   : > { %1342 = vbcast.lane.b32.xlu1 %v1336_v23, 264 }
  0xd3   : > { %1338 = vbcast.lane.b32.xlu0 %v1336_v23, 256 }
  0xd6   : > { %1419 = vbcast.lane.b32.xlu1 %v1413_v24, 264 }
  0xd7   : > { %1415 = vbcast.lane.b32.xlu0 %v1413_v24, 256  ;;  %v1754_v24 = vrot.slane %v6523_v17, %v6352_v3 }
  0xda   : > { %1353 = vbcast.lane.b32.xlu1 %v1347_v26, 264 }
  0xdb   : > { %1349 = vbcast.lane.b32.xlu0 %v1347_v26, 256 }
  0xde   : > { %1430 = vbcast.lane.b32.xlu1 %v1424_v27, 264 }
  0xdf   : > { %1426 = vbcast.lane.b32.xlu0 %v1424_v27, 256 }
  0xe2   : > { %1364 = vbcast.lane.b32.xlu1 %v1358_v29, 264 }
  0xe3   : > { %1360 = vbcast.lane.b32.xlu0 %v1358_v29, 256  ;;  %v622_v29 = vrot.slane %v6462_v49, %v6394_v22 }
  0xe6   : > { %1441 = vbcast.lane.b32.xlu1 %v1435_v30, 264 }
  0xe7   : > { %1437 = vbcast.lane.b32.xlu0 %v1435_v30, 256 }
  0xea   : > { %1485 = vbcast.lane.b32.xlu1 %v1479_v32, 264 }
  0xeb   : > { %1481 = vbcast.lane.b32.xlu0 %v1479_v32, 256 }
  0xee   : > { %1496 = vbcast.lane.b32.xlu1 %v1490_v33, 264 }
  0xef   : > { %1492 = vbcast.lane.b32.xlu0 %v1490_v33, 256  ;;  %v699_v33 = vrot.slane %v6490_v62, %v6376_v15 }
  0xf2   : > { %1375 = vbcast.lane.b32.xlu1 %v1369_v35, 264 }
  0xf3   : > { %1371 = vbcast.lane.b32.xlu0 %v1369_v35, 256 }
  0xf6   : > { %1452 = vbcast.lane.b32.xlu1 %v1446_v36, 264 }
  0xf7   : > { %1448 = vbcast.lane.b32.xlu0 %v1446_v36, 256 }
  0xfa   : > { %1507 = vbcast.lane.b32.xlu1 %v1501_v37, 264 }
  0xfb   : > { %1503 = vbcast.lane.b32.xlu0 %v1501_v37, 256  ;;  %v1556_v37 = vrot.slane %v6415_v31, %v6438_v41 }
  0xfe   : > { %1573 = vbcast.lane.b32.xlu1 %v1567_v39, 264 }
  0xff   : > { %1569 = vbcast.lane.b32.xlu0 %v1567_v39, 256 }
 0x102   : > { %1584 = vbcast.lane.b32.xlu1 %v1578_v40, 264 }
 0x103   : > { %1580 = vbcast.lane.b32.xlu0 %v1578_v40, 256 }
 0x106   : > { %1386 = vbcast.lane.b32.xlu1 %v1380_v42, 264 }
 0x107   : > { %1382 = vbcast.lane.b32.xlu0 %v1380_v42, 256  ;;  %v1633_v42 = vrot.slane %v6431_v38, %v6422_v34 }
 0x10a   : > { %1463 = vbcast.lane.b32.xlu1 %v1457_v43, 264 }
 0x10b   : > { %1459 = vbcast.lane.b32.xlu0 %v1457_v43, 256 }
 0x10e   : > { %1518 = vbcast.lane.b32.xlu1 %v1512_v44, 264 }
 0x10f   : > { %1514 = vbcast.lane.b32.xlu0 %v1512_v44, 256 }
 0x112   : > { %1595 = vbcast.lane.b32.xlu1 %v1589_v45, 264 }
 0x113   : > { %1591 = vbcast.lane.b32.xlu0 %v1589_v45, 256  ;;  %v1688_v45 = vrot.slane %v6473_v54, %v6394_v22 }
 0x116   : > { %1474 = vbcast.lane.b32.xlu1 %v1468_v46, 264 }
 0x117   : > { %1470 = vbcast.lane.b32.xlu0 %v1468_v46, 256 }
 0x11a   : > { %1529 = vbcast.lane.b32.xlu1 %v1523_v47, 264 }
 0x11b   : > { %1525 = vbcast.lane.b32.xlu0 %v1523_v47, 256  ;;  %v1765_v47 = vrot.slane %v6523_v17, %v6376_v15 }
 0x11e   : > { %1606 = vbcast.lane.b32.xlu1 %v1600_v48, 264 }
 0x11f   : > { %1602 = vbcast.lane.b32.xlu0 %v1600_v48, 256 }
 0x122   : > { %595 = vbcast.lane.b32.xlu1 %v589_v50, 264 }
 0x123   : > { %591 = vbcast.lane.b32.xlu0 %v589_v50, 256 }
 0x126   : > { %606 = vbcast.lane.b32.xlu1 %v600_v51, 264 }
 0x127   : > { %602 = vbcast.lane.b32.xlu0 %v600_v51, 256  ;;  %v633_v51 = vrot.slane %v6462_v49, %v6401_v25 }
 0x12a   : > { %1540 = vbcast.lane.b32.xlu1 %v1534_v52, 264 }
 0x12b   : > { %1536 = vbcast.lane.b32.xlu0 %v1534_v52, 256 }
 0x12e   : > { %1617 = vbcast.lane.b32.xlu1 %v1611_v53, 264 }
 0x12f   : > { %1613 = vbcast.lane.b32.xlu0 %v1611_v53, 256 }
 0x130   : > { %v6477_v56 = vpop.permute.xlu1 %1316 }
 0x131   : > { %v6479_v57 = vpop.permute.xlu0 %1305 }
 0x132   : > { %1661 = vbcast.lane.b32.xlu1 %v1655_v55, 264 }
 0x133   : > { %1657 = vbcast.lane.b32.xlu0 %v1655_v55, 256  ;;  %v710_v55 = vrot.slane %v6490_v62, %v6394_v22 }
 0x134   : > { %v6483_v59 = vpop.permute.xlu1 %1320 }
 0x135   : > { %v6485_v60 = vpop.permute.xlu0 %1309 }
 0x136   : > { %1672 = vbcast.lane.b32.xlu1 %v1666_v58, 264 }
 0x137   : > { %1668 = vbcast.lane.b32.xlu0 %v1666_v58, 256 }
 0x138   : > { %v6492_v63 = vpop.permute.xlu1 %1331 }
 0x139   : > { %v6494_v0 = vpop.permute.xlu0 %1327 }
 0x13a   : > { %617 = vbcast.lane.b32.xlu1 %v611_v61, 264 }
 0x13b   : > { %613 = vbcast.lane.b32.xlu0 %v611_v61, 256 }
 0x13c   : > { %v6498_v2 = vpop.permute.xlu1 %1397 }
 0x13d   : > { %v6500_v5 = vpop.permute.xlu0 %1393 }
 0x13e   : > { %683 = vbcast.lane.b32.xlu1 %v677_v1, 264 }
 0x13f   : > { %679 = vbcast.lane.b32.xlu0 %v677_v1, 256  ;;  %v1644_v1 = vrot.slane %v6431_v38, %v6438_v41 }
 0x140   : > { %v6504_v7 = vpop.permute.xlu1 %1408 }
 0x141   : > { %v6506_v8 = vpop.permute.xlu0 %1404 }
 0x142   : > { %694 = vbcast.lane.b32.xlu1 %v688_v6, 264 }
 0x143   : > { %690 = vbcast.lane.b32.xlu0 %v688_v6, 256 }
 0x144   : > { %v6510_v10 = vpop.permute.xlu1 %1342 }
 0x145   : > { %v6512_v11 = vpop.permute.xlu0 %1338 }
 0x146   : > { %1551 = vbcast.lane.b32.xlu1 %v1545_v9, 264 }
 0x147   : > { %1547 = vbcast.lane.b32.xlu0 %v1545_v9, 256 }
 0x148   : > { %v6516_v13 = vpop.permute.xlu1 %1419 }
 0x149   : > { %v6518_v14 = vpop.permute.xlu0 %1415 }
 0x14a   : > { %1628 = vbcast.lane.b32.xlu1 %v1622_v12, 264 }
 0x14b   : > { %1624 = vbcast.lane.b32.xlu0 %v1622_v12, 256  ;;  %v1699_v12 = vrot.slane %v6473_v54, %v6401_v25 }
 0x14c   : > { %v6525_v18 = vpop.permute.xlu1 %1353 }
 0x14d   : > { %v6527_v19 = vpop.permute.xlu0 %1349 }
 0x14e   : > { %1683 = vbcast.lane.b32.xlu1 %v1677_v16, 264 }
 0x14f   : > { %1679 = vbcast.lane.b32.xlu0 %v1677_v16, 256 }
 0x150   : > { %v6531_v21 = vpop.permute.xlu1 %1430 }
 0x151   : > { %v6533_v23 = vpop.permute.xlu0 %1426 }
 0x152   : > { %1749 = vbcast.lane.b32.xlu1 %v1743_v20, 264 }
 0x153   : > { %1745 = vbcast.lane.b32.xlu0 %v1743_v20, 256 }
 0x154   : > { %v6537_v26 = vpop.permute.xlu1 %1364 }
 0x155   : > { %v6539_v27 = vpop.permute.xlu0 %1360 }
 0x156   : > { %1760 = vbcast.lane.b32.xlu1 %v1754_v24, 264 }
 0x157   : > { %1756 = vbcast.lane.b32.xlu0 %v1754_v24, 256  ;;  %v1776_v24 = vrot.slane %v6523_v17, %v6394_v22 }
 0x158   : > { %v6543_v30 = vpop.permute.xlu1 %1441 }
 0x159   : > { %v6545_v32 = vpop.permute.xlu0 %1437 }
 0x15a   : > { %628 = vbcast.lane.b32.xlu1 %v622_v29, 264 }
 0x15b   : > { %624 = vbcast.lane.b32.xlu0 %v622_v29, 256 }
 0x15c   : > { %v6549_v35 = vpop.permute.xlu1 %1485 }
 0x15d   : > { %v6551_v36 = vpop.permute.xlu0 %1481 }
 0x15e   : > { %705 = vbcast.lane.b32.xlu1 %v699_v33, 264 }
 0x15f   : > { %701 = vbcast.lane.b32.xlu0 %v699_v33, 256  ;;  %v644_v33 = vrot.slane %v6462_v49, %v6408_v28 }
 0x160   : > { %v6555_v39 = vpop.permute.xlu1 %1496 }
 0x161   : > { %v6557_v40 = vpop.permute.xlu0 %1492 }
 0x162   : > { %1562 = vbcast.lane.b32.xlu1 %v1556_v37, 264 }
 0x163   : > { %1558 = vbcast.lane.b32.xlu0 %v1556_v37, 256 }
 0x164   : > { %v6561_v43 = vpop.permute.xlu1 %1375 }
 0x165   : > { %v6563_v44 = vpop.permute.xlu0 %1371 }
 0x166   : > { %1639 = vbcast.lane.b32.xlu1 %v1633_v42, 264 }
 0x167   : > { %1635 = vbcast.lane.b32.xlu0 %v1633_v42, 256 }
 0x168   : > { %v6567_v46 = vpop.permute.xlu1 %1452 }
 0x169   : > { %9910 = vst [vmem:[#allocation17_spill] sm:$0xff] %v6567_v46  ;;  %v6569_v31 = vpop.permute.xlu0 %1448 }
 0x16a   : > { %9911 = vst [vmem:[#allocation18_spill] sm:$0xff] %v6569_v31  ;;  %1694 = vbcast.lane.b32.xlu1 %v1688_v45, 264 }
 0x16b   : > { %1690 = vbcast.lane.b32.xlu0 %v1688_v45, 256  ;;  %v721_v45 = vrot.slane %v6490_v62, %v6401_v25 }
 0x16c   : > { %v6573_v48 = vpop.permute.xlu1 %1507 }
 0x16d   : > { %9912 = vst [vmem:[#allocation19_spill] sm:$0xff] %v6573_v48  ;;  %v6575_v50 = vpop.permute.xlu0 %1503 }
 0x16e   : > { %9913 = vst [vmem:[#allocation20_spill] sm:$0xff] %v6575_v50  ;;  %1771 = vbcast.lane.b32.xlu1 %v1765_v47, 264  ;;  %v6695_v50 = vld [vmem:[%s6327_s14 + $0x30] sm:$0xff] }
 0x16f   : > { %1767 = vbcast.lane.b32.xlu0 %v1765_v47, 256  ;;  %v6616_v47 = vld [vmem:[%s6457_s30 + $0x10] sm:$0xff] }
 0x170   : > { %v6579_v52 = vpop.permute.xlu1 %1573 }
 0x171   : > { %9914 = vst [vmem:[#allocation21_spill] sm:$0xff] %v6579_v52  ;;  %v6581_v53 = vpop.permute.xlu0 %1569 }
 0x172   : > { %9915 = vst [vmem:[#allocation22_spill] sm:$0xff] %v6581_v53  ;;  %639 = vbcast.lane.b32.xlu1 %v633_v51, 264 }
 0x173   : > { %635 = vbcast.lane.b32.xlu0 %v633_v51, 256 }
 0x174   : > { %v6585_v58 = vpop.permute.xlu1 %1584 }
 0x175   : > { %9916 = vst [vmem:[#allocation23_spill] sm:$0xff] %v6585_v58  ;;  %v6587_v61 = vpop.permute.xlu0 %1580 }
 0x176   : > { %9917 = vst [vmem:[#allocation24_spill] sm:$0xff] %v6587_v61  ;;  %716 = vbcast.lane.b32.xlu1 %v710_v55, 264 }
 0x177   : > { %712 = vbcast.lane.b32.xlu0 %v710_v55, 256 }
 0x178   : > { %v6591_v6 = vpop.permute.xlu1 %1386 }
 0x179   : > { %9918 = vst [vmem:[#allocation25_spill] sm:$0xff] %v6591_v6  ;;  %v6593_v9 = vpop.permute.xlu0 %1382 }
 0x17a   : > { %9919 = vst [vmem:[#allocation26_spill] sm:$0xff] %v6593_v9  ;;  %1650 = vbcast.lane.b32.xlu1 %v1644_v1, 264 }
 0x17b   : > { %1646 = vbcast.lane.b32.xlu0 %v1644_v1, 256  ;;  %v765_v1 = vrot.slane %v6616_v47, %v6355_v4 }
 0x17c   : > { %v6597_v16 = vpop.permute.xlu1 %1463 }
 0x17d   : > { %9920 = vst [vmem:[#allocation27_spill] sm:$0xff] %v6597_v16  ;;  %v6599_v20 = vpop.permute.xlu0 %1459 }
 0x17e   : > { %9921 = vst [vmem:[#allocation28_spill] sm:$0xff] %v6599_v20  ;;  %1705 = vbcast.lane.b32.xlu1 %v1699_v12, 264 }
 0x17f   : > { %1701 = vbcast.lane.b32.xlu0 %v1699_v12, 256  ;;  %v6624_v12 = vld [vmem:[#allocation5] ss:$0 sm:$0xff] }
 0x180   : > { %v6603_v38 = vpop.permute.xlu1 %1518 }
 0x181   : > { %9922 = vst [vmem:[#allocation29_spill] sm:$0xff] %v6603_v38  ;;  %v6605_v29 = vpop.permute.xlu0 %1514 }
 0x182   : > { %9923 = vst [vmem:[#allocation30_spill] sm:$0xff] %v6605_v29  ;;  %1782 = vbcast.lane.b32.xlu1 %v1776_v24, 264 }
 0x183   : > { %1778 = vbcast.lane.b32.xlu0 %v1776_v24, 256 }
 0x184   : > { %v6609_v37 = vpop.permute.xlu1 %1595 }
 0x185   : > { %9924 = vst [vmem:[#allocation31_spill] sm:$0xff] %v6609_v37  ;;  %v6611_v42 = vpop.permute.xlu0 %1591  ;;  %v2011_v37 = vmul.f32 %v6624_v12, %v6485_v60 }
 0x186   : > { %9925 = vst [vmem:[#allocation32_spill] sm:$0xff] %v6611_v42  ;;  %650 = vbcast.lane.b32.xlu1 %v644_v33, 264 }
 0x187   : > { %646 = vbcast.lane.b32.xlu0 %v644_v33, 256  ;;  %v2013_v33 = vmul.f32 %v6624_v12, %v6483_v59 }
 0x188   : > { %v6618_v51 = vpop.permute.xlu1 %1474 }
 0x189   : > { %9926 = vst [vmem:[#allocation33_spill] sm:$0xff] %v6618_v51  ;;  %v6620_v55 = vpop.permute.xlu0 %1470  ;;  %v2010_v51 = vmul.f32 %v6624_v12, %v6479_v57 }
 0x18a   : > { %9927 = vst [vmem:[#allocation34_spill] sm:$0xff] %v6620_v55  ;;  %727 = vbcast.lane.b32.xlu1 %v721_v45, 264  ;;  %v2012_v55 = vmul.f32 %v6624_v12, %v6477_v56 }
 0x18b   : > { %723 = vbcast.lane.b32.xlu0 %v721_v45, 256  ;;  %v776_v45 = vrot.slane %v6616_v47, %v6352_v3 }
 0x18c   : > { %v6626_v24 = vpop.permute.xlu1 %1529 }
 0x18d   : > { %9928 = vst [vmem:[#allocation35_spill] sm:$0xff] %v6626_v24  ;;  %v6628_v42 = vpop.permute.xlu0 %1525  ;;  %v6640_v24 = vld [vmem:[#allocation10] ss:$0 sm:$0xff] }
 0x18e   : > { %9929 = vst [vmem:[#allocation36_spill] sm:$0xff] %v6628_v42  ;;  %771 = vbcast.lane.b32.xlu1 %v765_v1, 264  ;;  %v6642_v42 = vld [vmem:[#allocation7] ss:$0 sm:$0xff] }
 0x18f   : > { %767 = vbcast.lane.b32.xlu0 %v765_v1, 256  ;;  %v1710_v1 = vrot.slane %v6473_v54, %v6408_v28  ;;  %v6651_v38 = vadd.f32 %v6642_v42, %v2013_v33  ;;  %v6654_v56 = vadd.f32 %v6642_v42, %v2011_v37 }
 0x190   : > { %v6644_v29 = vpop.permute.xlu1 %1606 }
 0x191   : > { %9930 = vst [vmem:[#allocation37_spill] sm:$0xff] %v6644_v29  ;;  %v6646_v59 = vpop.permute.xlu0 %1602  ;;  %v5569_v60 = vpop.f32.mrb[0].mxu0  ;;  %9932 = vst [vmem:[#allocation39_spill] sm:$0xff] %v6651_v38  ;;  %v6660_v29 = vadd.f32 %v6642_v42, %v2012_v55 }
 0x192   : > { %9931 = vst [vmem:[#allocation38_spill] sm:$0xff] %v6646_v59  ;;  %9933 = vst [vmem:[#allocation40_spill] sm:$0xff] %v6654_v56  ;;  %v6657_v57 = vadd.f32 %v5569_v60, %v6640_v24  ;;  %v2383_v20 = vpop.f32.mrb[1].mxu0  ;;  %782 = vbcast.lane.b32.xlu1 %v776_v45, 264  ;;  %v6663_v59 = vadd.f32 %v6642_v42, %v2010_v51 }
 0x193   : > { %778 = vbcast.lane.b32.xlu0 %v776_v45, 256  ;;  %9934 = vst [vmem:[#allocation41_spill] sm:$0xff] %v6660_v29  ;;  %v6666_v16 = vadd.f32 %v6640_v24, %v2383_v20 }
 0x194   : > { %9935 = vst [vmem:[#allocation42_spill] sm:$0xff] %v6663_v59  ;;  %v5575_v33 = vpop.f32.mrb[0].mxu1  ;;  %v2423_v37 = vadd.f32 %v6657_v57, %v6654_v56  ;;  %v6670_v9 = vpop.permute.xlu1 %595  ;;  %v2425_v45 = vadd.f32 %v6657_v57, %v6651_v38  ;;  %v1787_v56 = vrot.slane %v6523_v17, %v6401_v25 }
 0x195   : > { %9936 = vst [vmem:[#allocation43_spill] sm:$0xff] %v6670_v9  ;;  %v6672_v60 = vpop.permute.xlu0 %591  ;;  %v6677_v55 = vadd.f32 %v5575_v33, %v6640_v24  ;;  %v2422_v51 = vadd.f32 %v6666_v16, %v6663_v59  ;;  %v5572_v20 = vpop.f32.mrb[2].mxu0  ;;  %v2424_v6 = vadd.f32 %v6666_v16, %v6660_v29 }
 0x196   : > { %9937 = vst [vmem:[#allocation44_spill] sm:$0xff] %v6672_v60  ;;  %v2403_v61 = vpop.f32.mrb[1].mxu1  ;;  %v2551_v58 = vmax.f32 %v2423_v37, 0.0  ;;  %v6686_v53 = vadd.f32 %v5572_v20, %v6640_v24  ;;  %v2393_v38 = vpop.f32.mrb[3].mxu0  ;;  %1716 = vbcast.lane.b32.xlu1 %v1710_v1, 264  ;;  %v2553_v33 = vmax.f32 %v2425_v45, 0.0 }
 0x197   : > { %9938 = vst [vmem:[#allocation45_spill] sm:$0xff] %v6677_v55  ;;  %1712 = vbcast.lane.b32.xlu0 %v1710_v1, 256  ;;  %v6689_v55 = vadd.f32 %v6640_v24, %v2403_v61  ;;  %v2550_v59 = vmax.f32 %v2422_v51, 0.0  ;;  %v6692_v52 = vadd.f32 %v6640_v24, %v2393_v38  ;;  %v2552_v29 = vmax.f32 %v2424_v6, 0.0 }
 0x198   : > { %v6697_v48 = vpop.f32.mrb[2].mxu1  ;;  %v2679_v37 = vmul.f32 %v2551_v58, %v6670_v9  ;;  %v6700_v20 = vpop.permute.xlu1 %606  ;;  %v1831_v38 = vrot.slane %v6695_v50, %v6355_v4 }
 0x199   : > { %9939 = vst [vmem:[#allocation46_spill] sm:$0xff] %v6689_v55  ;;  %9940 = vst [vmem:[#allocation47_spill] sm:$0xff] %v6700_v20  ;;  %v6702_v31 = vpop.permute.xlu0 %602  ;;  %v2678_v1 = vmul.f32 %v2550_v59, %v6672_v60  ;;  %v2681_v61 = vmul.f32 %v2553_v33, %v6700_v20  ;;  %v6707_v51 = vpop.f32.mrb[3].mxu1 }
 0x19a   : > { %9941 = vst [vmem:[#allocation48_spill] sm:$0xff] %v6702_v31  ;;  %v2680_v45 = vmul.f32 %v2552_v29, %v6702_v31  ;;  %v2808_v6 = vsel %vm2806_vm2, %v2679_v37, 0.0  ;;  %1793 = vbcast.lane.b32.xlu1 %v1787_v56, 264 }
 0x19b   : > { %1789 = vbcast.lane.b32.xlu0 %v1787_v56, 256  ;;  %v2807_v58 = vsel %vm2806_vm2, %v2678_v1, 0.0  ;;  %v2817_v9 = vsel %vm2806_vm2, %v2681_v61, 0.0  ;;  %v1842_v56 = vrot.slane %v6695_v50, %v6352_v3 }
 0x19c   : > { %v2816_v55 = vsel %vm2806_vm2, %v2680_v45, 0.0  ;;  %v2809_v59 = vadd.f32 %v2808_v6, %v2807_v58  ;;  %v6715_v33 = vpop.permute.xlu1 %1540 }
 0x19d   : > { %v2818_v60 = vadd.f32 %v2817_v9, %v2816_v55  ;;  %v6717_v29 = vpop.permute.xlu0 %1536  ;;  %v2015_v9 = vmul.f32 %v6624_v12, %v6492_v63  ;;  %v2014_v55 = vmul.f32 %v6624_v12, %v6494_v0 }
 0x19e   : > { %v2810_v20 = vrot.slane %v2809_v59, 4  ;;  %1837 = vbcast.lane.b32.xlu1 %v1831_v38, 264 }
 0x19f   : > { %v2819_v31 = vrot.slane %v2818_v60, 4  ;;  %1833 = vbcast.lane.b32.xlu0 %v1831_v38, 256  ;;  %v655_v38 = vrot.slane %v6462_v49, %v6422_v34  ;;  %v6738_v63 = vadd.f32 %v6642_v42, %v2015_v9  ;;  %v6741_v0 = vadd.f32 %v6642_v42, %v2014_v55 }
 0x1a0   : > { %v2811_v37 = vadd.f32 %v2810_v20, %v2809_v59  ;;  %v6721_v1 = vpop.permute.xlu1 %1617 }
 0x1a1   : > { %v2820_v46 = vadd.f32 %v2819_v31, %v2818_v60  ;;  %9942 = vst [vmem:[#allocation49_spill] sm:$0xff] %v6721_v1  ;;  %v6723_v61 = vpop.permute.xlu0 %1613  ;;  %v2027_v31 = vmul.f32 %v6624_v12, %v6498_v2  ;;  %9945 = vst [vmem:[#allocation52_spill] sm:$0xff] %v6738_v63  ;;  %v732_v2 = vrot.slane %v6490_v62, %v6408_v28 }
 0x1a2   : > { %9943 = vst [vmem:[#allocation50_spill] sm:$0xff] %v6723_v61  ;;  %v2812_v45 = vrot.slane %v2811_v37, 2  ;;  %1848 = vbcast.lane.b32.xlu1 %v1842_v56, 264  ;;  %9946 = vst [vmem:[#allocation53_spill] sm:$0xff] %v6741_v0 }
 0x1a3   : > { %v2821_v6 = vrot.slane %v2820_v46, 2  ;;  %1844 = vbcast.lane.b32.xlu0 %v1842_v56, 256  ;;  %v2026_v56 = vmul.f32 %v6624_v12, %v6500_v5  ;;  %v6752_v9 = vadd.f32 %v6642_v42, %v2027_v31  ;;  %v2029_v5 = vmul.f32 %v6624_v12, %v6504_v7 }
 0x1a4   : > { %v2813_v60 = vadd.f32 %v2812_v45, %v2811_v37  ;;  %v6733_v58 = vpop.permute.xlu1 %1661  ;;  %v2426_v37 = vadd.f32 %v6666_v16, %v6741_v0  ;;  %v787_v7 = vrot.slane %v6616_v47, %v6376_v15 }
 0x1a5   : > { %v2822_v20 = vadd.f32 %v2821_v6, %v2820_v46  ;;  %v6735_v59 = vpop.permute.xlu0 %1657  ;;  %v2427_v46 = vadd.f32 %v6657_v57, %v6738_v63  ;;  %9947 = vst [vmem:[#allocation54_spill] sm:$0xff] %v6752_v9  ;;  %v2028_v63 = vmul.f32 %v6624_v12, %v6506_v8  ;;  %v6778_v8 = vadd.f32 %v6642_v42, %v2029_v5 }
 0x1a6   : > { %9944 = vst [vmem:[#allocation51_spill] sm:$0xff] %v6735_v59  ;;  %v2814_v61 = vrot.slane %v2813_v60, 1  ;;  %661 = vbcast.lane.b32.xlu1 %v655_v38, 264  ;;  %v6761_v59 = vadd.f32 %v6642_v42, %v2026_v56  ;;  %v2554_v31 = vmax.f32 %v2426_v37, 0.0 }
 0x1a7   : > { %v2823_v1 = vrot.slane %v2822_v20, 1  ;;  %657 = vbcast.lane.b32.xlu0 %v655_v38, 256  ;;  %9950 = vst [vmem:[#allocation57_spill] sm:$0xff] %v6778_v8 }
 0x1a8   : > { %v2815_v55 = vadd.f32 %v2814_v61, %v2813_v60  ;;  %v6756_v6 = vpop.permute.xlu1 %1672  ;;  %9949 = vst [vmem:[#allocation56_spill] sm:$0xff] %v6761_v59  ;;  %v2555_v61 = vmax.f32 %v2427_v46, 0.0  ;;  %v2438_v60 = vadd.f32 %v6666_v16, %v6761_v59 }
 0x1a9   : > { %v2824_v45 = vadd.f32 %v2823_v1, %v2822_v20  ;;  %v6758_v38 = vpop.permute.xlu0 %1668  ;;  %v2439_v1 = vadd.f32 %v6657_v57, %v6752_v9  ;;  %v6775_v20 = vld [vmem:[%s6457_s30 + $0x18] sm:$0xff]  ;;  %v6795_v9 = vadd.f32 %v6640_v24, %v6707_v51 }
 0x1aa   : > { %9948 = vst [vmem:[#allocation55_spill] sm:$0xff] %v6758_v38  ;;  %738 = vbcast.lane.b32.xlu1 %v732_v2, 264  ;;  %v853_v59 = vrot.slane %v6775_v20, %v6355_v4 }
 0x1ab   : > { %v6766_v0 = vsel %vm3447_vm3, %v2824_v45, %v2815_v55  ;;  %734 = vbcast.lane.b32.xlu0 %v732_v2, 256  ;;  %v6786_v2 = vadd.f32 %v6697_v48, %v6640_v24  ;;  %v6789_v45 = vadd.f32 %v6642_v42, %v2028_v63  ;;  %9955 = vst [vmem:[#allocation62_spill] sm:$0xff] %v6795_v9  ;;  %v2567_v5 = vmax.f32 %v2439_v1, 0.0 }
 0x1ac   : > { %v6780_v56 = vpop.permute.xlu1 %617  ;;  %v2441_v48 = vadd.f32 %v6657_v57, %v6778_v8 }
 0x1ad   : > { %9951 = vst [vmem:[#allocation58_spill] sm:$0xff] %v6780_v56  ;;  %v6782_v55 = vpop.permute.xlu0 %613  ;;  %9953 = vst [vmem:[#allocation60_spill] sm:$0xff] %v6786_v2  ;;  %v2683_v46 = vmul.f32 %v2555_v61, %v6780_v56  ;;  %v2566_v61 = vmax.f32 %v2438_v60, 0.0 }
 0x1ae   : > { %9952 = vst [vmem:[#allocation59_spill] sm:$0xff] %v6782_v55  ;;  %9954 = vst [vmem:[#allocation61_spill] sm:$0xff] %v6789_v45  ;;  %v2682_v37 = vmul.f32 %v2554_v31, %v6782_v55  ;;  %793 = vbcast.lane.b32.xlu1 %v787_v7, 264  ;;  %v2440_v31 = vadd.f32 %v6666_v16, %v6789_v45  ;;  %v2569_v8 = vmax.f32 %v2441_v48, 0.0 }
 0x1af   : > { %789 = vbcast.lane.b32.xlu0 %v787_v7, 256  ;;  %v2826_v63 = vsel %vm2806_vm2, %v2683_v46, 0.0  ;;  %v864_v46 = vrot.slane %v6775_v20, %v6352_v3 }
 0x1b0   : > { %v2825_v2 = vsel %vm2806_vm2, %v2682_v37, 0.0  ;;  %v6805_v24 = vpop.permute.xlu1 %683 }
 0x1b1   : > { %v2827_v56 = vadd.f32 %v2826_v63, %v2825_v2  ;;  %9956 = vst [vmem:[#allocation63_spill] sm:$0xff] %v6805_v24  ;;  %v6807_v51 = vpop.permute.xlu0 %679  ;;  %v2695_v7 = vmul.f32 %v2567_v5, %v6805_v24  ;;  %v2568_v2 = vmax.f32 %v2440_v31, 0.0 }
 0x1b2   : > { %9957 = vst [vmem:[#allocation64_spill] sm:$0xff] %v6807_v51  ;;  %v2694_v1 = vmul.f32 %v2566_v61, %v6807_v51  ;;  %859 = vbcast.lane.b32.xlu1 %v853_v59, 264 }
 0x1b3   : > { %v2828_v55 = vrot.slane %v2827_v56, 4  ;;  %855 = vbcast.lane.b32.xlu0 %v853_v59, 256  ;;  %v2880_v60 = vsel %vm2806_vm2, %v2695_v7, 0.0  ;;  %v1721_v7 = vrot.slane %v6473_v54, %v6422_v34 }
 0x1b4   : > { %v2879_v37 = vsel %vm2806_vm2, %v2694_v1, 0.0  ;;  %v6815_v9 = vpop.permute.xlu1 %694 }
 0x1b5   : > { %v2829_v63 = vadd.f32 %v2828_v55, %v2827_v56  ;;  %v2881_v45 = vadd.f32 %v2880_v60, %v2879_v37  ;;  %9958 = vst [vmem:[#allocation65_spill] sm:$0xff] %v6815_v9  ;;  %v6817_v38 = vpop.permute.xlu0 %690  ;;  %v2697_v5 = vmul.f32 %v2569_v8, %v6815_v9 }
 0x1b6   : > { %9959 = vst [vmem:[#allocation66_spill] sm:$0xff] %v6817_v38  ;;  %v2696_v61 = vmul.f32 %v2568_v2, %v6817_v38  ;;  %870 = vbcast.lane.b32.xlu1 %v864_v46, 264 }
 0x1b7   : > { %v2830_v59 = vrot.slane %v2829_v63, 2  ;;  %v2882_v24 = vrot.slane %v2881_v45, 4  ;;  %866 = vbcast.lane.b32.xlu0 %v864_v46, 256  ;;  %v2889_v48 = vsel %vm2806_vm2, %v2697_v5, 0.0  ;;  %v1798_v46 = vrot.slane %v6523_v17, %v6408_v28 }
 0x1b8   : > { %v2888_v56 = vsel %vm2806_vm2, %v2696_v61, 0.0  ;;  %v6825_v60 = vpop.permute.xlu1 %1551 }
 0x1b9   : > { %v2831_v55 = vadd.f32 %v2830_v59, %v2829_v63  ;;  %v2883_v31 = vadd.f32 %v2882_v24, %v2881_v45  ;;  %v2890_v1 = vadd.f32 %v2889_v48, %v2888_v56  ;;  %v6827_v37 = vpop.permute.xlu0 %1547  ;;  %v6842_v48 = vld [vmem:[%s6327_s14 + $0x38] sm:$0xff] }
 0x1ba   : > { %1727 = vbcast.lane.b32.xlu1 %v1721_v7, 264 }
 0x1bb   : > { %v2832_v8 = vrot.slane %v2831_v55, 1  ;;  %v2884_v2 = vrot.slane %v2883_v31, 2  ;;  %v2891_v9 = vrot.slane %v2890_v1, 4  ;;  %1723 = vbcast.lane.b32.xlu0 %v1721_v7, 256  ;;  %v1853_v7 = vrot.slane %v6695_v50, %v6376_v15 }
 0x1bc   : > { %v6831_v63 = vpop.permute.xlu1 %1628 }
 0x1bd   : > { %v2833_v5 = vadd.f32 %v2832_v8, %v2831_v55  ;;  %v2885_v38 = vadd.f32 %v2884_v2, %v2883_v31  ;;  %v2892_v61 = vadd.f32 %v2891_v9, %v2890_v1  ;;  %v6833_v45 = vpop.permute.xlu0 %1624  ;;  %v2017_v1 = vmul.f32 %v6624_v12, %v6510_v10 }
 0x1be   : > { %1804 = vbcast.lane.b32.xlu1 %v1798_v46, 264  ;;  %v1919_v2 = vrot.slane %v6842_v48, %v6355_v4 }
 0x1bf   : > { %v6837_v24 = vsel %vm3449_vm4, %v2833_v5, %v6766_v0  ;;  %v2893_v59 = vrot.slane %v2892_v61, 2  ;;  %1800 = vbcast.lane.b32.xlu0 %v1798_v46, 256  ;;  %v2886_v56 = vrot.slane %v2885_v38, 1  ;;  %v2016_v0 = vmul.f32 %v6624_v12, %v6512_v11 }
 0x1c0   : > { %v6844_v31 = vpop.permute.xlu1 %1683  ;;  %v2031_v11 = vmul.f32 %v6624_v12, %v6516_v13 }
 0x1c1   : > { %v2894_v55 = vadd.f32 %v2893_v59, %v2892_v61  ;;  %v6846_v9 = vpop.permute.xlu0 %1679  ;;  %v2887_v46 = vadd.f32 %v2886_v56, %v2885_v38  ;;  %v6859_v59 = vadd.f32 %v6642_v42, %v2017_v1  ;;  %v6862_v10 = vadd.f32 %v6642_v42, %v2016_v0 }
 0x1c2   : > { %9960 = vst [vmem:[#allocation67_spill] sm:$0xff] %v6846_v9  ;;  %1859 = vbcast.lane.b32.xlu1 %v1853_v7, 264  ;;  %v1930_v38 = vrot.slane %v6842_v48, %v6352_v3 }
 0x1c3   : > { %v2895_v8 = vrot.slane %v2894_v55, 1  ;;  %1855 = vbcast.lane.b32.xlu0 %v1853_v7, 256  ;;  %9962 = vst [vmem:[#allocation69_spill] sm:$0xff] %v6859_v59  ;;  %9963 = vst [vmem:[#allocation70_spill] sm:$0xff] %v6862_v10  ;;  %v2030_v7 = vmul.f32 %v6624_v12, %v6518_v14  ;;  %v2429_v56 = vadd.f32 %v6657_v57, %v6859_v59 }
 0x1c4   : > { %v6854_v51 = vpop.permute.xlu1 %1749  ;;  %v6882_v14 = vadd.f32 %v6642_v42, %v2031_v11 }
 0x1c5   : > { %v2896_v5 = vadd.f32 %v2895_v8, %v2894_v55  ;;  %v6856_v61 = vpop.permute.xlu0 %1745  ;;  %v2428_v55 = vadd.f32 %v6666_v16, %v6862_v10  ;;  %v6885_v0 = vadd.f32 %v6642_v42, %v2030_v7  ;;  %v666_v8 = vrot.slane %v6462_v49, %v6438_v41 }
 0x1c6   : > { %9961 = vst [vmem:[#allocation68_spill] sm:$0xff] %v6856_v61  ;;  %1925 = vbcast.lane.b32.xlu1 %v1919_v2, 264  ;;  %9966 = vst [vmem:[#allocation73_spill] sm:$0xff] %v6882_v14  ;;  %v743_v49 = vrot.slane %v6490_v62, %v6422_v34 }
 0x1c7   : > { %v6869_v9 = vsel %vm3447_vm3, %v2896_v5, %v2887_v46  ;;  %1921 = vbcast.lane.b32.xlu0 %v1919_v2, 256  ;;  %9967 = vst [vmem:[#allocation74_spill] sm:$0xff] %v6885_v0  ;;  %v2557_v2 = vmax.f32 %v2429_v56, 0.0  ;;  %v2556_v46 = vmax.f32 %v2428_v55, 0.0  ;;  %v2443_v5 = vadd.f32 %v6657_v57, %v6882_v14 }
 0x1c8   : > { %v6877_v1 = vpop.permute.xlu1 %1760  ;;  %v2442_v10 = vadd.f32 %v6666_v16, %v6885_v0 }
 0x1c9   : > { %9964 = vst [vmem:[#allocation71_spill] sm:$0xff] %v6877_v1  ;;  %v6879_v13 = vpop.permute.xlu0 %1756  ;;  %v2571_v55 = vmax.f32 %v2443_v5, 0.0 }
 0x1ca   : > { %9965 = vst [vmem:[#allocation72_spill] sm:$0xff] %v6879_v13  ;;  %1936 = vbcast.lane.b32.xlu1 %v1930_v38, 264  ;;  %v2570_v14 = vmax.f32 %v2442_v10, 0.0 }
 0x1cb   : > { %1932 = vbcast.lane.b32.xlu0 %v1930_v38, 256 }
 0x1cc   : > { %v6893_v59 = vpop.permute.xlu1 %628 }
 0x1cd   : > { %9968 = vst [vmem:[#allocation75_spill] sm:$0xff] %v6893_v59  ;;  %v6895_v11 = vpop.permute.xlu0 %624  ;;  %v2685_v7 = vmul.f32 %v2557_v2, %v6893_v59 }
 0x1ce   : > { %9969 = vst [vmem:[#allocation76_spill] sm:$0xff] %v6895_v11  ;;  %v2684_v13 = vmul.f32 %v2556_v46, %v6895_v11  ;;  %672 = vbcast.lane.b32.xlu1 %v666_v8, 264 }
 0x1cf   : > { %668 = vbcast.lane.b32.xlu0 %v666_v8, 256  ;;  %v2835_v38 = vsel %vm2806_vm2, %v2685_v7, 0.0  ;;  %v798_v8 = vrot.slane %v6616_v47, %v6394_v22 }
 0x1d0   : > { %v2834_v56 = vsel %vm2806_vm2, %v2684_v13, 0.0  ;;  %v6903_v1 = vpop.permute.xlu1 %705 }
 0x1d1   : > { %v2836_v0 = vadd.f32 %v2835_v38, %v2834_v56  ;;  %9970 = vst [vmem:[#allocation77_spill] sm:$0xff] %v6903_v1  ;;  %v6905_v61 = vpop.permute.xlu0 %701  ;;  %v2699_v2 = vmul.f32 %v2571_v55, %v6903_v1 }
 0x1d2   : > { %9971 = vst [vmem:[#allocation78_spill] sm:$0xff] %v6905_v61  ;;  %v2698_v46 = vmul.f32 %v2570_v14, %v6905_v61  ;;  %749 = vbcast.lane.b32.xlu1 %v743_v49, 264  ;;  %v875_v14 = vrot.slane %v6775_v20, %v6376_v15 }
 0x1d3   : > { %v2837_v59 = vrot.slane %v2836_v0, 4  ;;  %745 = vbcast.lane.b32.xlu0 %v743_v49, 256  ;;  %v2898_v7 = vsel %vm2806_vm2, %v2699_v2, 0.0 }
 0x1d4   : > { %v2897_v13 = vsel %vm2806_vm2, %v2698_v46, 0.0  ;;  %v6913_v38 = vpop.permute.xlu1 %1562 }
 0x1d5   : > { %v2838_v10 = vadd.f32 %v2837_v59, %v2836_v0  ;;  %v2899_v5 = vadd.f32 %v2898_v7, %v2897_v13  ;;  %v6915_v56 = vpop.permute.xlu0 %1558  ;;  %v2019_v59 = vmul.f32 %v6624_v12, %v6525_v18  ;;  %v2018_v0 = vmul.f32 %v6624_v12, %v6527_v19 }
 0x1d6   : > { %804 = vbcast.lane.b32.xlu1 %v798_v8, 264  ;;  %v2033_v19 = vmul.f32 %v6624_v12, %v6531_v21 }
 0x1d7   : > { %v2839_v11 = vrot.slane %v2838_v10, 2  ;;  %v2900_v55 = vrot.slane %v2899_v5, 4  ;;  %800 = vbcast.lane.b32.xlu0 %v798_v8, 256  ;;  %v1732_v8 = vrot.slane %v6473_v54, %v6438_v41  ;;  %v6937_v18 = vadd.f32 %v6642_v42, %v2018_v0 }
 0x1d8   : > { %v6919_v61 = vpop.permute.xlu1 %1639 }
 0x1d9   : > { %v2840_v49 = vadd.f32 %v2839_v11, %v2838_v10  ;;  %v2901_v1 = vadd.f32 %v2900_v55, %v2899_v5  ;;  %v6921_v2 = vpop.permute.xlu0 %1635  ;;  %v6934_v55 = vadd.f32 %v6642_v42, %v2019_v59  ;;  %9974 = vst [vmem:[#allocation81_spill] sm:$0xff] %v6937_v18  ;;  %v2430_v0 = vadd.f32 %v6666_v16, %v6937_v18 }
 0x1da   : > { %881 = vbcast.lane.b32.xlu1 %v875_v14, 264 }
 0x1db   : > { %v2841_v46 = vrot.slane %v2840_v49, 1  ;;  %v2902_v7 = vrot.slane %v2901_v1, 2  ;;  %877 = vbcast.lane.b32.xlu0 %v875_v14, 256  ;;  %9973 = vst [vmem:[#allocation80_spill] sm:$0xff] %v6934_v55  ;;  %v2032_v14 = vmul.f32 %v6624_v12, %v6533_v23  ;;  %v2431_v59 = vadd.f32 %v6657_v57, %v6934_v55 }
 0x1dc   : > { %v6929_v10 = vpop.permute.xlu1 %1694 }
 0x1dd   : > { %v2842_v11 = vadd.f32 %v2841_v46, %v2840_v49  ;;  %v2903_v13 = vadd.f32 %v2902_v7, %v2901_v1  ;;  %v6931_v5 = vpop.permute.xlu0 %1690  ;;  %v1809_v49 = vrot.slane %v6523_v17, %v6422_v34  ;;  %v6961_v7 = vadd.f32 %v6642_v42, %v2032_v14 }
 0x1de   : > { %9972 = vst [vmem:[#allocation79_spill] sm:$0xff] %v6931_v5  ;;  %1738 = vbcast.lane.b32.xlu1 %v1732_v8, 264 }
 0x1df   : > { %v6945_v54 = vsel %vm3451_vm5, %v2842_v11, %v6837_v24  ;;  %v2904_v1 = vrot.slane %v2903_v13, 1  ;;  %1734 = vbcast.lane.b32.xlu0 %v1732_v8, 256  ;;  %v6958_v24 = vadd.f32 %v6642_v42, %v2033_v19  ;;  %9978 = vst [vmem:[#allocation85_spill] sm:$0xff] %v6961_v7  ;;  %v1864_v11 = vrot.slane %v6695_v50, %v6394_v22 }
 0x1e0   : > { %v6953_v46 = vpop.permute.xlu1 %1771  ;;  %v2444_v19 = vadd.f32 %v6666_v16, %v6961_v7 }
 0x1e1   : > { %v2905_v21 = vadd.f32 %v2904_v1, %v2903_v13  ;;  %9975 = vst [vmem:[#allocation82_spill] sm:$0xff] %v6953_v46  ;;  %v6955_v23 = vpop.permute.xlu0 %1767  ;;  %9977 = vst [vmem:[#allocation84_spill] sm:$0xff] %v6958_v24  ;;  %v2559_v13 = vmax.f32 %v2431_v59, 0.0  ;;  %v2558_v1 = vmax.f32 %v2430_v0, 0.0  ;;  %v2445_v55 = vadd.f32 %v6657_v57, %v6958_v24 }
 0x1e2   : > { %9976 = vst [vmem:[#allocation83_spill] sm:$0xff] %v6955_v23  ;;  %1815 = vbcast.lane.b32.xlu1 %v1809_v49, 264  ;;  %v2572_v23 = vmax.f32 %v2444_v19, 0.0 }
 0x1e3   : > { %v6965_v8 = vsel %vm3449_vm4, %v2905_v21, %v6869_v9  ;;  %1811 = vbcast.lane.b32.xlu0 %v1809_v49, 256  ;;  %v1941_v49 = vrot.slane %v6842_v48, %v6376_v15  ;;  %v2573_v24 = vmax.f32 %v2445_v55, 0.0 }
 0x1e4   : > { %v6973_v18 = vpop.permute.xlu1 %639 }
 0x1e5   : > { %9979 = vst [vmem:[#allocation86_spill] sm:$0xff] %v6973_v18  ;;  %v6975_v14 = vpop.permute.xlu0 %635  ;;  %v2687_v9 = vmul.f32 %v2559_v13, %v6973_v18 }
 0x1e6   : > { %9980 = vst [vmem:[#allocation87_spill] sm:$0xff] %v6975_v14  ;;  %v2686_v21 = vmul.f32 %v2558_v1, %v6975_v14  ;;  %1870 = vbcast.lane.b32.xlu1 %v1864_v11, 264 }
 0x1e7   : > { %1866 = vbcast.lane.b32.xlu0 %v1864_v11, 256  ;;  %v2844_v59 = vsel %vm2806_vm2, %v2687_v9, 0.0  ;;  %v754_v11 = vrot.slane %v6490_v62, %v6438_v41 }
 0x1e8   : > { %v2843_v0 = vsel %vm2806_vm2, %v2686_v21, 0.0  ;;  %v6983_v46 = vpop.permute.xlu1 %716 }
 0x1e9   : > { %v2845_v7 = vadd.f32 %v2844_v59, %v2843_v0  ;;  %9981 = vst [vmem:[#allocation88_spill] sm:$0xff] %v6983_v46  ;;  %v6985_v5 = vpop.permute.xlu0 %712  ;;  %v2701_v13 = vmul.f32 %v2573_v24, %v6983_v46  ;;  %v2021_v24 = vmul.f32 %v6624_v12, %v6537_v26 }
 0x1ea   : > { %9982 = vst [vmem:[#allocation89_spill] sm:$0xff] %v6985_v5  ;;  %v2700_v1 = vmul.f32 %v2572_v23, %v6985_v5  ;;  %1947 = vbcast.lane.b32.xlu1 %v1941_v49, 264  ;;  %v2020_v23 = vmul.f32 %v6624_v12, %v6539_v27 }
 0x1eb   : > { %v2846_v18 = vrot.slane %v2845_v7, 4  ;;  %1943 = vbcast.lane.b32.xlu0 %v1941_v49, 256  ;;  %v2907_v9 = vsel %vm2806_vm2, %v2701_v13, 0.0  ;;  %v2035_v49 = vmul.f32 %v6624_v12, %v6543_v30  ;;  %v7012_v27 = vadd.f32 %v6642_v42, %v2021_v24 }
 0x1ec   : > { %v2906_v55 = vsel %vm2806_vm2, %v2700_v1, 0.0  ;;  %v6993_v59 = vpop.permute.xlu1 %1650  ;;  %v7015_v30 = vadd.f32 %v6642_v42, %v2020_v23  ;;  %v2043_v24 = vmul.f32 %v6624_v12, %v6549_v35  ;;  %v2042_v23 = vmul.f32 %v6624_v12, %v6551_v36 }
 0x1ed   : > { %v2847_v19 = vadd.f32 %v2846_v18, %v2845_v7  ;;  %v2908_v21 = vadd.f32 %v2907_v9, %v2906_v55  ;;  %v6995_v0 = vpop.permute.xlu0 %1646  ;;  %v809_v18 = vrot.slane %v6616_v47, %v6401_v25  ;;  %v2034_v7 = vmul.f32 %v6624_v12, %v6545_v32  ;;  %9983 = vst [vmem:[#allocation90_spill] sm:$0xff] %v7012_v27 }
 0x1ee   : > { %760 = vbcast.lane.b32.xlu1 %v754_v11, 264  ;;  %9984 = vst [vmem:[#allocation91_spill] sm:$0xff] %v7015_v30  ;;  %v886_v32 = vrot.slane %v6775_v20, %v6394_v22 }
 0x1ef   : > { %v2848_v62 = vrot.slane %v2847_v19, 2  ;;  %v2909_v46 = vrot.slane %v2908_v21, 4  ;;  %756 = vbcast.lane.b32.xlu0 %v754_v11, 256  ;;  %v7018_v11 = vadd.f32 %v6642_v42, %v2035_v49 }
 0x1f0   : > { %v7007_v9 = vpop.permute.xlu1 %1705 }
 0x1f1   : > { %v2849_v13 = vadd.f32 %v2848_v62, %v2847_v19  ;;  %v2910_v1 = vadd.f32 %v2909_v46, %v2908_v21  ;;  %v7009_v26 = vpop.permute.xlu0 %1701  ;;  %9985 = vst [vmem:[#allocation92_spill] sm:$0xff] %v7018_v11  ;;  %v7023_v46 = vadd.f32 %v6642_v42, %v2034_v7  ;;  %v2433_v19 = vadd.f32 %v6657_v57, %v7012_v27 }
 0x1f2   : > { %815 = vbcast.lane.b32.xlu1 %v809_v18, 264  ;;  %v2432_v21 = vadd.f32 %v6666_v16, %v7015_v30  ;;  %v1820_v7 = vrot.slane %v6523_v17, %v6438_v41  ;;  %v2447_v30 = vadd.f32 %v6657_v57, %v7018_v11  ;;  %v7051_v17 = vadd.f32 %v6642_v42, %v2042_v23 }
 0x1f3   : > { %v2850_v55 = vrot.slane %v2849_v13, 1  ;;  %v2911_v5 = vrot.slane %v2910_v1, 2  ;;  %811 = vbcast.lane.b32.xlu0 %v809_v18, 256  ;;  %9986 = vst [vmem:[#allocation93_spill] sm:$0xff] %v7023_v46  ;;  %v2446_v35 = vadd.f32 %v6666_v16, %v7023_v46 }
 0x1f4   : > { %v7033_v18 = vpop.permute.xlu1 %1782  ;;  %9990 = vst [vmem:[#allocation97_spill] sm:$0xff] %v7051_v17 }
 0x1f5   : > { %v2851_v49 = vadd.f32 %v2850_v55, %v2849_v13  ;;  %v2912_v62 = vadd.f32 %v2911_v5, %v2910_v1  ;;  %9987 = vst [vmem:[#allocation94_spill] sm:$0xff] %v7033_v18  ;;  %v7035_v14 = vpop.permute.xlu0 %1778  ;;  %v2561_v5 = vmax.f32 %v2433_v19, 0.0  ;;  %v2560_v13 = vmax.f32 %v2432_v21, 0.0 }
 0x1f6   : > { %9988 = vst [vmem:[#allocation95_spill] sm:$0xff] %v7035_v14  ;;  %892 = vbcast.lane.b32.xlu1 %v886_v32, 264  ;;  %v7048_v1 = vadd.f32 %v6642_v42, %v2043_v24  ;;  %v2045_v55 = vmul.f32 %v6624_v12, %v6555_v39  ;;  %v1875_v24 = vrot.slane %v6695_v50, %v6401_v25  ;;  %v2575_v39 = vmax.f32 %v2447_v30, 0.0 }
 0x1f7   : > { %v2913_v27 = vrot.slane %v2912_v62, 1  ;;  %888 = vbcast.lane.b32.xlu0 %v886_v32, 256  ;;  %v7045_v36 = vsel %vm3453_vm6, %v2851_v49, %v6945_v54  ;;  %v2044_v54 = vmul.f32 %v6624_v12, %v6557_v40  ;;  %v3526_v40 = vld [vmem:[%s9648_s7] sm:$0xff] }
 0x1f8   : > { %9989 = vst [vmem:[#allocation96_spill] sm:$0xff] %v7048_v1  ;;  %v7055_v11 = vpop.permute.xlu1 %650  ;;  %v2455_v49 = vadd.f32 %v6686_v53, %v7048_v1 }
 0x1f9   : > { %v2914_v32 = vadd.f32 %v2913_v27, %v2912_v62  ;;  %9991 = vst [vmem:[#allocation98_spill] sm:$0xff] %v7055_v11  ;;  %v7057_v14 = vpop.permute.xlu0 %646  ;;  %v2689_v19 = vmul.f32 %v2561_v5, %v7055_v11  ;;  %v2574_v27 = vmax.f32 %v2446_v35, 0.0  ;;  %v3527_v62 = vld [vmem:[%s9648_s7 + $0x8] sm:$0xff]  ;;  %v3528_v35 = vld [vmem:[%s9648_s7 + $0x10] sm:$0xff] }
 0x1fa   : > { %9992 = vst [vmem:[#allocation99_spill] sm:$0xff] %v7057_v14  ;;  %v2688_v21 = vmul.f32 %v2560_v13, %v7057_v14  ;;  %1826 = vbcast.lane.b32.xlu1 %v1820_v7, 264  ;;  %v5659_v30 = vpack.c.bf16 %v3527_v62, %v3526_v40  ;;  %v3529_v13 = vld [vmem:[%s9648_s7 + $0x18] sm:$0xff]  ;;  %v2583_v14 = vmax.f32 %v2455_v49, 0.0 }
 0x1fb   : > { %v7067_v23 = vsel %vm3451_vm5, %v2914_v32, %v6965_v8  ;;  %1822 = vbcast.lane.b32.xlu0 %v1820_v7, 256  ;;  %v2853_v5 = vsel %vm2806_vm2, %v2689_v19, 0.0  ;;  %v2454_v7 = vadd.f32 %v6692_v52, %v7051_v17  ;;  %v7088_v32 = vadd.f32 %v6642_v42, %v2045_v55 }
 0x1fc   : > { %v2852_v8 = vsel %vm2806_vm2, %v2688_v21, 0.0  ;;  %v7090_v46 = vpop.permute.xlu1 %727  ;;  %v5663_v21 = vpack.c.bf16 %v3529_v13, %v3528_v35  ;;  %v7095_v17 = vadd.f32 %v6642_v42, %v2044_v54  ;;  %5660 = vmatprep.subr.bf16.mxu1 %v5659_v30  ;;  %v1952_v55 = vrot.slane %v6842_v48, %v6394_v22 }
 0x1fd   : > { %9993 = vst [vmem:[#allocation100_spill] sm:$0xff] %v7088_v32  ;;  %v2854_v1 = vadd.f32 %v2853_v5, %v2852_v8  ;;  %9994 = vst [vmem:[#allocation101_spill] sm:$0xff] %v7090_v46  ;;  %v7092_v19 = vpop.permute.xlu0 %723  ;;  %v2703_v40 = vmul.f32 %v2575_v39, %v7090_v46  ;;  %v2457_v5 = vadd.f32 %v6686_v53, %v7088_v32  ;;  %v2582_v35 = vmax.f32 %v2454_v7, 0.0 }
 0x1fe   : > { %9995 = vst [vmem:[#allocation102_spill] sm:$0xff] %v7092_v19  ;;  %9996 = vst [vmem:[#allocation103_spill] sm:$0xff] %v7095_v17  ;;  %v2702_v62 = vmul.f32 %v2574_v27, %v7092_v19  ;;  %1881 = vbcast.lane.b32.xlu1 %v1875_v24, 264  ;;  %v2456_v39 = vadd.f32 %v6692_v52, %v7095_v17  ;;  %5662 = vmatpush3.bf16.msra.mxu1 %v5659_v30 }
 0x1ff   : > { %v2855_v11 = vrot.slane %v2854_v1, 4  ;;  %1877 = vbcast.lane.b32.xlu0 %v1875_v24, 256  ;;  %v2916_v8 = vsel %vm2806_vm2, %v2703_v40, 0.0  ;;  %5664 = vmatprep.subr.bf16.mxu1 %v5663_v21  ;;  %v820_v7 = vrot.slane %v6616_v47, %v6408_v28 }
 0x200   : > { %v2915_v54 = vsel %vm2806_vm2, %v2702_v62, 0.0  ;;  %v7107_v46 = vpop.permute.xlu1 %771  ;;  %v2584_v62 = vmax.f32 %v2456_v39, 0.0 }
 0x201   : > { %v2856_v27 = vadd.f32 %v2855_v11, %v2854_v1  ;;  %v2917_v13 = vadd.f32 %v2916_v8, %v2915_v54  ;;  %9997 = vst [vmem:[#allocation104_spill] sm:$0xff] %v7107_v46  ;;  %v7109_v24 = vpop.permute.xlu0 %767  ;;  %v2711_v49 = vmul.f32 %v2583_v14, %v7107_v46  ;;  %v2585_v1 = vmax.f32 %v2457_v5, 0.0 }
 0x202   : > { %9998 = vst [vmem:[#allocation105_spill] sm:$0xff] %v7109_v24  ;;  %v2710_v32 = vmul.f32 %v2582_v35, %v7109_v24  ;;  %1958 = vbcast.lane.b32.xlu1 %v1952_v55, 264  ;;  %5666 = vmatpush3.bf16.msra.mxu1 %v5663_v21  ;;  %v7126_v21 = vld [vmem:[%s6457_s30 + $0x20] sm:$0xff] }
 0x203   : > { %v2857_v19 = vrot.slane %v2856_v27, 2  ;;  %v2918_v40 = vrot.slane %v2917_v13, 4  ;;  %1954 = vbcast.lane.b32.xlu0 %v1952_v55, 256  ;;  %v2952_v30 = vsel %vm2806_vm2, %v2711_v49, 0.0 }
 0x204   : > { %v2951_v11 = vsel %vm2806_vm2, %v2710_v32, 0.0  ;;  %v7117_v46 = vpop.permute.xlu1 %782  ;;  %v897_v32 = vrot.slane %v6775_v20, %v6401_v25 }
 0x205   : > { %v2858_v8 = vadd.f32 %v2857_v19, %v2856_v27  ;;  %v2919_v54 = vadd.f32 %v2918_v40, %v2917_v13  ;;  %v2953_v14 = vadd.f32 %v2952_v30, %v2951_v11  ;;  %9999 = vst [vmem:[#allocation106_spill] sm:$0xff] %v7117_v46  ;;  %v7119_v35 = vpop.permute.xlu0 %778  ;;  %v2713_v55 = vmul.f32 %v2585_v1, %v7117_v46 }
 0x206   : > { %10000 = vst [vmem:[#allocation107_spill] sm:$0xff] %v7119_v35  ;;  %v2712_v24 = vmul.f32 %v2584_v62, %v7119_v35  ;;  %826 = vbcast.lane.b32.xlu1 %v820_v7, 264 }
 0x207   : > { %v2859_v17 = vrot.slane %v2858_v8, 1  ;;  %v2920_v18 = vrot.slane %v2919_v54, 2  ;;  %v2954_v49 = vrot.slane %v2953_v14, 4  ;;  %822 = vbcast.lane.b32.xlu0 %v820_v7, 256  ;;  %v2961_v19 = vsel %vm2806_vm2, %v2713_v55, 0.0 }
 0x208   : > { %v2960_v5 = vsel %vm2806_vm2, %v2712_v24, 0.0  ;;  %v7130_v30 = vpop.permute.xlu1 %1716  ;;  %v941_v7 = vrot.slane %v7126_v21, %v6355_v4  ;;  %v2023_v55 = vmul.f32 %v6624_v12, %v6561_v43 }
 0x209   : > { %v2860_v39 = vadd.f32 %v2859_v17, %v2858_v8  ;;  %v2921_v27 = vadd.f32 %v2920_v18, %v2919_v54  ;;  %v2955_v13 = vadd.f32 %v2954_v49, %v2953_v14  ;;  %v2962_v40 = vadd.f32 %v2961_v19, %v2960_v5  ;;  %v7132_v11 = vpop.permute.xlu0 %1712 }
 0x20a   : > { %903 = vbcast.lane.b32.xlu1 %v897_v32, 264  ;;  %v2022_v49 = vmul.f32 %v6624_v12, %v6563_v44  ;;  %v7161_v44 = vadd.f32 %v6642_v42, %v2023_v55 }
 0x20b   : > { %v2922_v1 = vrot.slane %v2921_v27, 1  ;;  %v2956_v62 = vrot.slane %v2955_v13, 2  ;;  %v2963_v46 = vrot.slane %v2962_v40, 4  ;;  %899 = vbcast.lane.b32.xlu0 %v897_v32, 256  ;;  %v7138_v24 = vsel %vm3455_vm7, %v2860_v39, %v7045_v36  ;;  %v10003_v36 = vld [vmem:[#allocation17_spill] sm:$0xff] }
 0x20c   : > { %v7140_v54 = vpop.permute.xlu1 %1793  ;;  %v2037_v5 = vmul.f32 %v6624_v12, %v10003_v36  ;;  %10006 = vst [vmem:[#allocation111_spill] sm:$0xff] %v7161_v44 }
 0x20d   : > { %v2923_v17 = vadd.f32 %v2922_v1, %v2921_v27  ;;  %v2957_v18 = vadd.f32 %v2956_v62, %v2955_v13  ;;  %v2964_v8 = vadd.f32 %v2963_v46, %v2962_v40  ;;  %10001 = vst [vmem:[#allocation108_spill] sm:$0xff] %v7140_v54  ;;  %v7142_v14 = vpop.permute.xlu0 %1789  ;;  %v952_v46 = vrot.slane %v7126_v21, %v6352_v3  ;;  %v10008_v40 = vld [vmem:[#allocation18_spill] sm:$0xff] }
 0x20e   : > { %10002 = vst [vmem:[#allocation109_spill] sm:$0xff] %v7142_v14  ;;  %947 = vbcast.lane.b32.xlu1 %v941_v7, 264  ;;  %v1886_v62 = vrot.slane %v6695_v50, %v6408_v28  ;;  %v7175_v55 = vadd.f32 %v6642_v42, %v2037_v5  ;;  %v1963_v5 = vrot.slane %v6842_v48, %v6401_v25 }
 0x20f   : > { %v7150_v32 = vsel %vm3453_vm6, %v2923_v17, %v7067_v23  ;;  %v2965_v19 = vrot.slane %v2964_v8, 2  ;;  %943 = vbcast.lane.b32.xlu0 %v941_v7, 256  ;;  %v2958_v39 = vrot.slane %v2957_v18, 1  ;;  %v7164_v23 = vadd.f32 %v6642_v42, %v2022_v49  ;;  %v10010_v49 = vld [vmem:[#allocation19_spill] sm:$0xff] }
 0x210   : > { %v7156_v13 = vpop.permute.xlu1 %1837  ;;  %v2036_v7 = vmul.f32 %v6624_v12, %v10008_v40  ;;  %v2435_v17 = vadd.f32 %v6657_v57, %v7161_v44  ;;  %10009 = vst [vmem:[#allocation18_spill] sm:$0xff] %v7175_v55 }
 0x211   : > { %v2966_v27 = vadd.f32 %v2965_v19, %v2964_v8  ;;  %10004 = vst [vmem:[#allocation17_spill] sm:$0xff] %v7156_v13  ;;  %v7158_v43 = vpop.permute.xlu0 %1833  ;;  %10007 = vst [vmem:[#allocation112_spill] sm:$0xff] %v7164_v23  ;;  %v2434_v8 = vadd.f32 %v6666_v16, %v7164_v23  ;;  %v2047_v19 = vmul.f32 %v6624_v12, %v10010_v49 }
 0x212   : > { %10005 = vst [vmem:[#allocation110_spill] sm:$0xff] %v7158_v43  ;;  %958 = vbcast.lane.b32.xlu1 %v952_v46, 264  ;;  %v2959_v36 = vadd.f32 %v2958_v39, %v2957_v18  ;;  %v7184_v50 = vadd.f32 %v6642_v42, %v2036_v7  ;;  %v10014_v43 = vld [vmem:[#allocation20_spill] sm:$0xff]  ;;  %v2449_v18 = vadd.f32 %v6657_v57, %v7175_v55  ;;  %v2563_v39 = vmax.f32 %v2435_v17, 0.0  ;;  %v10021_v17 = vld [vmem:[#allocation23_spill] sm:$0xff] }
 0x213   : > { %v2967_v1 = vrot.slane %v2966_v27, 1  ;;  %954 = vbcast.lane.b32.xlu0 %v952_v46, 256  ;;  %v2046_v44 = vmul.f32 %v6624_v12, %v10014_v43  ;;  %v10016_v43 = vld [vmem:[#allocation21_spill] sm:$0xff] }
 0x214   : > { %v7179_v35 = vpop.permute.xlu1 %1848  ;;  %10013 = vst [vmem:[#allocation114_spill] sm:$0xff] %v7184_v50  ;;  %v2448_v7 = vadd.f32 %v6666_v16, %v7184_v50  ;;  %v2059_v49 = vmul.f32 %v6624_v12, %v10016_v43  ;;  %v2577_v43 = vmax.f32 %v2449_v18, 0.0 }
 0x215   : > { %v2968_v40 = vadd.f32 %v2967_v1, %v2966_v27  ;;  %10011 = vst [vmem:[#allocation19_spill] sm:$0xff] %v7179_v35  ;;  %v7181_v46 = vpop.permute.xlu0 %1844  ;;  %v2562_v27 = vmax.f32 %v2434_v8, 0.0  ;;  %v7198_v1 = vadd.f32 %v6642_v42, %v2047_v19  ;;  %v7209_v55 = vadd.f32 %v6642_v42, %v2046_v44 }
 0x216   : > { %10012 = vst [vmem:[#allocation113_spill] sm:$0xff] %v7181_v46  ;;  %1892 = vbcast.lane.b32.xlu1 %v1886_v62, 264  ;;  %v2061_v8 = vmul.f32 %v6624_v12, %v10021_v17  ;;  %v2576_v14 = vmax.f32 %v2448_v7, 0.0 }
 0x217   : > { %v7189_v23 = vsel %vm3447_vm3, %v2968_v40, %v2959_v36  ;;  %1888 = vbcast.lane.b32.xlu0 %v1886_v62, 256  ;;  %10015 = vst [vmem:[#allocation20_spill] sm:$0xff] %v7198_v1  ;;  %v10017_v36 = vld [vmem:[#allocation22_spill] sm:$0xff]  ;;  %10020 = vst [vmem:[#allocation115_spill] sm:$0xff] %v7209_v55  ;;  %v2459_v35 = vadd.f32 %v6686_v53, %v7198_v1  ;;  %v2458_v17 = vadd.f32 %v6692_v52, %v7209_v55 }
 0x218   : > { %v2058_v62 = vmul.f32 %v6624_v12, %v10017_v36  ;;  %v7204_v40 = vpop.permute.xlu1 %661  ;;  %v831_v36 = vrot.slane %v6616_v47, %v6422_v34  ;;  %v7234_v1 = vadd.f32 %v6642_v42, %v2061_v8 }
 0x219   : > { %10018 = vst [vmem:[#allocation21_spill] sm:$0xff] %v7204_v40  ;;  %v7206_v46 = vpop.permute.xlu0 %657  ;;  %v2691_v50 = vmul.f32 %v2563_v39, %v7204_v40  ;;  %v7224_v39 = vadd.f32 %v6642_v42, %v2059_v49  ;;  %v2586_v40 = vmax.f32 %v2458_v17, 0.0 }
 0x21a   : > { %10019 = vst [vmem:[#allocation22_spill] sm:$0xff] %v7206_v46  ;;  %v2690_v19 = vmul.f32 %v2562_v27, %v7206_v46  ;;  %1969 = vbcast.lane.b32.xlu1 %v1963_v5, 264  ;;  %10026 = vst [vmem:[#allocation119_spill] sm:$0xff] %v7234_v1  ;;  %v2473_v17 = vadd.f32 %v6686_v53, %v7234_v1 }
 0x21b   : > { %1965 = vbcast.lane.b32.xlu0 %v1963_v5, 256  ;;  %v2862_v13 = vsel %vm2806_vm2, %v2691_v50, 0.0  ;;  %10022 = vst [vmem:[#allocation23_spill] sm:$0xff] %v7224_v39  ;;  %v7227_v5 = vadd.f32 %v6642_v42, %v2058_v62  ;;  %v10027_v50 = vld [vmem:[#allocation24_spill] sm:$0xff]  ;;  %v2587_v62 = vmax.f32 %v2459_v35, 0.0 }
 0x21c   : > { %v2861_v44 = vsel %vm2806_vm2, %v2690_v19, 0.0  ;;  %v7229_v27 = vpop.permute.xlu1 %738  ;;  %v2060_v7 = vmul.f32 %v6624_v12, %v10027_v50  ;;  %v7252_v35 = vld [vmem:[#allocation7] ss:$0 sm:$0xff] }
 0x21d   : > { %10023 = vst [vmem:[#allocation116_spill] sm:$0xff] %v7227_v5  ;;  %v2863_v18 = vadd.f32 %v2862_v13, %v2861_v44  ;;  %10024 = vst [vmem:[#allocation117_spill] sm:$0xff] %v7229_v27  ;;  %v7231_v47 = vpop.permute.xlu0 %734  ;;  %v2705_v19 = vmul.f32 %v2577_v43, %v7229_v27  ;;  %v908_v13 = vrot.slane %v6775_v20, %v6408_v28 }
 0x21e   : > { %10025 = vst [vmem:[#allocation118_spill] sm:$0xff] %v7231_v47  ;;  %v2704_v55 = vmul.f32 %v2576_v14, %v7231_v47  ;;  %837 = vbcast.lane.b32.xlu1 %v831_v36, 264  ;;  %v2471_v44 = vadd.f32 %v6686_v53, %v7224_v39  ;;  %v2470_v12 = vadd.f32 %v6692_v52, %v7227_v5 }
 0x21f   : > { %v2864_v49 = vrot.slane %v2863_v18, 4  ;;  %833 = vbcast.lane.b32.xlu0 %v831_v36, 256  ;;  %v2925_v42 = vsel %vm2806_vm2, %v2705_v19, 0.0  ;;  %v7255_v27 = vadd.f32 %v7252_v35, %v2060_v7 }
 0x220   : > { %v2924_v8 = vsel %vm2806_vm2, %v2704_v55, 0.0  ;;  %v7248_v50 = vpop.permute.xlu1 %793  ;;  %v2598_v5 = vmax.f32 %v2470_v12, 0.0 }
 0x221   : > { %v2865_v43 = vadd.f32 %v2864_v49, %v2863_v18  ;;  %v2926_v14 = vadd.f32 %v2925_v42, %v2924_v8  ;;  %10028 = vst [vmem:[#allocation24_spill] sm:$0xff] %v7248_v50  ;;  %v7250_v36 = vpop.permute.xlu0 %789  ;;  %10030 = vst [vmem:[#allocation121_spill] sm:$0xff] %v7255_v27  ;;  %v2715_v19 = vmul.f32 %v2587_v62, %v7248_v50  ;;  %v2599_v49 = vmax.f32 %v2471_v44, 0.0 }
 0x222   : > { %10029 = vst [vmem:[#allocation120_spill] sm:$0xff] %v7250_v36  ;;  %v2714_v55 = vmul.f32 %v2586_v40, %v7250_v36  ;;  %914 = vbcast.lane.b32.xlu1 %v908_v13, 264  ;;  %v963_v42 = vrot.slane %v7126_v21, %v6376_v15  ;;  %v2472_v62 = vadd.f32 %v6692_v52, %v7255_v27  ;;  %v7268_v40 = vld [vmem:[%s6457_s30 + $0x28] sm:$0xff] }
 0x223   : > { %v2866_v39 = vrot.slane %v2865_v43, 2  ;;  %v2927_v18 = vrot.slane %v2926_v14, 4  ;;  %910 = vbcast.lane.b32.xlu0 %v908_v13, 256  ;;  %v2970_v8 = vsel %vm2806_vm2, %v2715_v19, 0.0  ;;  %v2601_v19 = vmax.f32 %v2473_v17, 0.0 }
 0x224   : > { %v2969_v7 = vsel %vm2806_vm2, %v2714_v55, 0.0  ;;  %v7270_v47 = vpop.permute.xlu1 %859  ;;  %v1029_v27 = vrot.slane %v7268_v40, %v6355_v4 }
 0x225   : > { %v2867_v50 = vadd.f32 %v2866_v39, %v2865_v43  ;;  %v2928_v1 = vadd.f32 %v2927_v18, %v2926_v14  ;;  %v2971_v36 = vadd.f32 %v2970_v8, %v2969_v7  ;;  %10031 = vst [vmem:[#allocation122_spill] sm:$0xff] %v7270_v47  ;;  %v7272_v13 = vpop.permute.xlu0 %855  ;;  %v2727_v44 = vmul.f32 %v2599_v49, %v7270_v47 }
 0x226   : > { %10032 = vst [vmem:[#allocation123_spill] sm:$0xff] %v7272_v13  ;;  %v2726_v46 = vmul.f32 %v2598_v5, %v7272_v13  ;;  %969 = vbcast.lane.b32.xlu1 %v963_v42, 264  ;;  %v2600_v14 = vmax.f32 %v2472_v62, 0.0 }
 0x227   : > { %v2868_v54 = vrot.slane %v2867_v50, 1  ;;  %v2929_v55 = vrot.slane %v2928_v1, 2  ;;  %v2972_v12 = vrot.slane %v2971_v36, 4  ;;  %965 = vbcast.lane.b32.xlu0 %v963_v42, 256  ;;  %v3024_v39 = vsel %vm2806_vm2, %v2727_v44, 0.0 }
 0x228   : > { %v3023_v43 = vsel %vm2806_vm2, %v2726_v46, 0.0  ;;  %v7280_v5 = vpop.permute.xlu1 %870  ;;  %v1040_v44 = vrot.slane %v7268_v40, %v6352_v3 }
 0x229   : > { %v2869_v18 = vadd.f32 %v2868_v54, %v2867_v50  ;;  %v2930_v8 = vadd.f32 %v2929_v55, %v2928_v1  ;;  %v2973_v49 = vadd.f32 %v2972_v12, %v2971_v36  ;;  %v3025_v7 = vadd.f32 %v3024_v39, %v3023_v43  ;;  %10033 = vst [vmem:[#allocation124_spill] sm:$0xff] %v7280_v5  ;;  %v7282_v17 = vpop.permute.xlu0 %866 }
 0x22a   : > { %10034 = vst [vmem:[#allocation125_spill] sm:$0xff] %v7282_v17  ;;  %v2729_v47 = vmul.f32 %v2601_v19, %v7280_v5  ;;  %v2728_v42 = vmul.f32 %v2600_v14, %v7282_v17  ;;  %1035 = vbcast.lane.b32.xlu1 %v1029_v27, 264  ;;  %v7299_v14 = vld [vmem:[%s6327_s14 + $0x30] sm:$0xff]  ;;  %v10043_v5 = vld [vmem:[#allocation27_spill] sm:$0xff] }
 0x22b   : > { %v2931_v13 = vrot.slane %v2930_v8, 1  ;;  %v2974_v46 = vrot.slane %v2973_v49, 2  ;;  %v3026_v62 = vrot.slane %v3025_v7, 4  ;;  %1031 = vbcast.lane.b32.xlu0 %v1029_v27, 256  ;;  %v7290_v54 = vsel %vm3457_vm8, %v2869_v18, %v7138_v24 }
 0x22c   : > { %v3033_v1 = vsel %vm2806_vm2, %v2729_v47, 0.0  ;;  %v3032_v50 = vsel %vm2806_vm2, %v2728_v42, 0.0  ;;  %v7294_v39 = vpop.permute.xlu1 %1727  ;;  %v1897_v27 = vrot.slane %v7299_v14, %v6422_v34 }
 0x22d   : > { %v2932_v36 = vadd.f32 %v2931_v13, %v2930_v8  ;;  %v2975_v19 = vadd.f32 %v2974_v46, %v2973_v49  ;;  %v3027_v55 = vadd.f32 %v3026_v62, %v3025_v7  ;;  %v3034_v12 = vadd.f32 %v3033_v1, %v3032_v50  ;;  %10035 = vst [vmem:[#allocation126_spill] sm:$0xff] %v7294_v39  ;;  %v7296_v43 = vpop.permute.xlu0 %1723 }
 0x22e   : > { %10036 = vst [vmem:[#allocation127_spill] sm:$0xff] %v7296_v43  ;;  %1046 = vbcast.lane.b32.xlu1 %v1040_v44, 264 }
 0x22f   : > { %v7305_v24 = vsel %vm3455_vm7, %v2932_v36, %v7150_v32  ;;  %v2976_v47 = vrot.slane %v2975_v19, 1  ;;  %v3028_v18 = vrot.slane %v3027_v55, 2  ;;  %v3035_v42 = vrot.slane %v3034_v12, 4  ;;  %1042 = vbcast.lane.b32.xlu0 %v1040_v44, 256 }
 0x230   : > { %v7307_v7 = vpop.permute.xlu1 %1804  ;;  %v1974_v32 = vrot.slane %v6842_v48, %v6408_v28 }
 0x231   : > { %v2977_v13 = vadd.f32 %v2976_v47, %v2975_v19  ;;  %v3029_v8 = vadd.f32 %v3028_v18, %v3027_v55  ;;  %v3036_v49 = vadd.f32 %v3035_v42, %v3034_v12  ;;  %10037 = vst [vmem:[#allocation128_spill] sm:$0xff] %v7307_v7  ;;  %v7309_v46 = vpop.permute.xlu0 %1800  ;;  %v7321_v55 = vld [vmem:[#allocation5] ss:$0 sm:$0xff]  ;;  %v10041_v12 = vld [vmem:[#allocation25_spill] sm:$0xff]  ;;  %v10042_v18 = vld [vmem:[#allocation26_spill] sm:$0xff] }
 0x232   : > { %10038 = vst [vmem:[#allocation129_spill] sm:$0xff] %v7309_v46  ;;  %1903 = vbcast.lane.b32.xlu1 %v1897_v27, 264  ;;  %v2025_v47 = vmul.f32 %v7321_v55, %v10041_v12  ;;  %v10048_v46 = vld [vmem:[#allocation28_spill] sm:$0xff] }
 0x233   : > { %v7313_v62 = vsel %vm3449_vm4, %v2977_v13, %v7189_v23  ;;  %v3037_v1 = vrot.slane %v3036_v49, 2  ;;  %1899 = vbcast.lane.b32.xlu0 %v1897_v27, 256  ;;  %v3030_v50 = vrot.slane %v3029_v8, 1  ;;  %v2024_v23 = vmul.f32 %v7321_v55, %v10042_v18  ;;  %v5788_v27 = vld [vmem:[%s6457_s30 + $0x10] sm:$0xff] }
 0x234   : > { %v7317_v36 = vpop.permute.xlu1 %1859  ;;  %v842_v13 = vrot.slane %v5788_v27, %v6438_v41  ;;  %v7336_v12 = vadd.f32 %v7252_v35, %v2025_v47  ;;  %v10050_v47 = vld [vmem:[#allocation29_spill] sm:$0xff] }
 0x235   : > { %v3038_v44 = vadd.f32 %v3037_v1, %v3036_v49  ;;  %10039 = vst [vmem:[#allocation130_spill] sm:$0xff] %v7317_v36  ;;  %v7319_v19 = vpop.permute.xlu0 %1855  ;;  %v2039_v49 = vmul.f32 %v7321_v55, %v10043_v5  ;;  %v3031_v1 = vadd.f32 %v3030_v50, %v3029_v8  ;;  %v7339_v18 = vadd.f32 %v7252_v35, %v2024_v23 }
 0x236   : > { %10040 = vst [vmem:[#allocation131_spill] sm:$0xff] %v7319_v19  ;;  %1980 = vbcast.lane.b32.xlu1 %v1974_v32, 264  ;;  %10046 = vst [vmem:[#allocation27_spill] sm:$0xff] %v7336_v12  ;;  %v919_v5 = vrot.slane %v6775_v20, %v6422_v34  ;;  %v2437_v8 = vadd.f32 %v6657_v57, %v7336_v12  ;;  %v10054_v20 = vld [vmem:[#allocation30_spill] sm:$0xff] }
 0x237   : > { %v3039_v42 = vrot.slane %v3038_v44, 1  ;;  %1976 = vbcast.lane.b32.xlu0 %v1974_v32, 256  ;;  %10047 = vst [vmem:[#allocation132_spill] sm:$0xff] %v7339_v18  ;;  %v2038_v32 = vmul.f32 %v7321_v55, %v10048_v46  ;;  %v2436_v50 = vadd.f32 %v6666_v16, %v7339_v18  ;;  %v2049_v46 = vmul.f32 %v7321_v55, %v10050_v47 }
 0x238   : > { %v7331_v19 = vpop.permute.xlu1 %1925  ;;  %v2565_v12 = vmax.f32 %v2437_v8, 0.0 }
 0x239   : > { %v3040_v17 = vadd.f32 %v3039_v42, %v3038_v44  ;;  %10044 = vst [vmem:[#allocation25_spill] sm:$0xff] %v7331_v19  ;;  %v7333_v36 = vpop.permute.xlu0 %1921  ;;  %v7353_v44 = vadd.f32 %v7252_v35, %v2039_v49  ;;  %v7362_v42 = vadd.f32 %v7252_v35, %v2038_v32  ;;  %v2564_v47 = vmax.f32 %v2436_v50, 0.0  ;;  %v10056_v32 = vld [vmem:[#allocation31_spill] sm:$0xff]  ;;  %v10060_v19 = vld [vmem:[#allocation32_spill] sm:$0xff] }
 0x23a   : > { %10045 = vst [vmem:[#allocation26_spill] sm:$0xff] %v7333_v36  ;;  %848 = vbcast.lane.b32.xlu1 %v842_v13, 264  ;;  %v2062_v8 = vmul.f32 %v7321_v55, %v10060_v19 }
 0x23b   : > { %v7344_v27 = vsel %vm3447_vm3, %v3040_v17, %v3031_v1  ;;  %844 = vbcast.lane.b32.xlu0 %v842_v13, 256  ;;  %10049 = vst [vmem:[#allocation28_spill] sm:$0xff] %v7353_v44  ;;  %10053 = vst [vmem:[#allocation134_spill] sm:$0xff] %v7362_v42  ;;  %v2048_v13 = vmul.f32 %v7321_v55, %v10054_v20  ;;  %v974_v1 = vrot.slane %v7126_v21, %v6394_v22 }
 0x23c   : > { %v7357_v23 = vpop.permute.xlu1 %1936  ;;  %v2451_v49 = vadd.f32 %v6657_v57, %v7353_v44  ;;  %v2450_v18 = vadd.f32 %v6666_v16, %v7362_v42 }
 0x23d   : > { %10051 = vst [vmem:[#allocation29_spill] sm:$0xff] %v7357_v23  ;;  %v7359_v17 = vpop.permute.xlu0 %1932  ;;  %v2063_v23 = vmul.f32 %v7321_v55, %v10056_v32  ;;  %v7382_v36 = vadd.f32 %v7252_v35, %v2048_v13  ;;  %v1051_v32 = vrot.slane %v7268_v40, %v6376_v15 }
 0x23e   : > { %10052 = vst [vmem:[#allocation133_spill] sm:$0xff] %v7359_v17  ;;  %925 = vbcast.lane.b32.xlu1 %v919_v5, 264  ;;  %v7373_v17 = vadd.f32 %v7252_v35, %v2049_v46  ;;  %v2579_v46 = vmax.f32 %v2451_v49, 0.0  ;;  %v2578_v43 = vmax.f32 %v2450_v18, 0.0 }
 0x23f   : > { %921 = vbcast.lane.b32.xlu0 %v919_v5, 256  ;;  %10059 = vst [vmem:[#allocation136_spill] sm:$0xff] %v7382_v36  ;;  %v2460_v19 = vadd.f32 %v6692_v52, %v7382_v36 }
 0x240   : > { %10055 = vst [vmem:[#allocation30_spill] sm:$0xff] %v7373_v17  ;;  %v7377_v20 = vpop.permute.xlu1 %672  ;;  %v2461_v42 = vadd.f32 %v6686_v53, %v7373_v17 }
 0x241   : > { %10057 = vst [vmem:[#allocation31_spill] sm:$0xff] %v7377_v20  ;;  %v7379_v5 = vpop.permute.xlu0 %668  ;;  %v2693_v50 = vmul.f32 %v2565_v12, %v7377_v20  ;;  %v7397_v12 = vadd.f32 %v7252_v35, %v2063_v23  ;;  %v7404_v20 = vadd.f32 %v7252_v35, %v2062_v8  ;;  %v1908_v23 = vrot.slane %v7299_v14, %v6438_v41 }
 0x242   : > { %10058 = vst [vmem:[#allocation135_spill] sm:$0xff] %v7379_v5  ;;  %v2692_v44 = vmul.f32 %v2564_v47, %v7379_v5  ;;  %980 = vbcast.lane.b32.xlu1 %v974_v1, 264  ;;  %v2589_v18 = vmax.f32 %v2461_v42, 0.0  ;;  %v2588_v8 = vmax.f32 %v2460_v19, 0.0 }
 0x243   : > { %976 = vbcast.lane.b32.xlu0 %v974_v1, 256  ;;  %v2871_v7 = vsel %vm2806_vm2, %v2693_v50, 0.0  ;;  %10061 = vst [vmem:[#allocation32_spill] sm:$0xff] %v7397_v12  ;;  %10064 = vst [vmem:[#allocation139_spill] sm:$0xff] %v7404_v20 }
 0x244   : > { %v2870_v13 = vsel %vm2806_vm2, %v2692_v44, 0.0  ;;  %v7399_v1 = vpop.permute.xlu1 %749 }
 0x245   : > { %v2872_v47 = vadd.f32 %v2871_v7, %v2870_v13  ;;  %10062 = vst [vmem:[#allocation137_spill] sm:$0xff] %v7399_v1  ;;  %v7401_v49 = vpop.permute.xlu0 %745  ;;  %v2707_v17 = vmul.f32 %v2579_v46, %v7399_v1  ;;  %v2475_v7 = vadd.f32 %v6686_v53, %v7397_v12  ;;  %v2474_v46 = vadd.f32 %v6692_v52, %v7404_v20 }
 0x246   : > { %10063 = vst [vmem:[#allocation138_spill] sm:$0xff] %v7401_v49  ;;  %v2706_v50 = vmul.f32 %v2578_v43, %v7401_v49  ;;  %1057 = vbcast.lane.b32.xlu1 %v1051_v32, 264 }
 0x247   : > { %v2873_v44 = vrot.slane %v2872_v47, 4  ;;  %1053 = vbcast.lane.b32.xlu0 %v1051_v32, 256  ;;  %v2934_v13 = vsel %vm2806_vm2, %v2707_v17, 0.0  ;;  %v1985_v17 = vrot.slane %v6842_v48, %v6422_v34 }
 0x248   : > { %v2933_v36 = vsel %vm2806_vm2, %v2706_v50, 0.0  ;;  %v7416_v49 = vpop.permute.xlu1 %804  ;;  %v2602_v50 = vmax.f32 %v2474_v46, 0.0 }
 0x249   : > { %v2874_v1 = vadd.f32 %v2873_v44, %v2872_v47  ;;  %v2935_v43 = vadd.f32 %v2934_v13, %v2933_v36  ;;  %10065 = vst [vmem:[#allocation140_spill] sm:$0xff] %v7416_v49  ;;  %v7418_v32 = vpop.permute.xlu0 %800  ;;  %v2717_v42 = vmul.f32 %v2589_v18, %v7416_v49  ;;  %v2603_v47 = vmax.f32 %v2475_v7, 0.0 }
 0x24a   : > { %10066 = vst [vmem:[#allocation141_spill] sm:$0xff] %v7418_v32  ;;  %v2716_v14 = vmul.f32 %v2588_v8, %v7418_v32  ;;  %1914 = vbcast.lane.b32.xlu1 %v1908_v23, 264 }
 0x24b   : > { %v2875_v5 = vrot.slane %v2874_v1, 2  ;;  %v2936_v12 = vrot.slane %v2935_v43, 4  ;;  %1910 = vbcast.lane.b32.xlu0 %v1908_v23, 256  ;;  %v2979_v19 = vsel %vm2806_vm2, %v2717_v42, 0.0  ;;  %v5789_v42 = vld [vmem:[%s6457_s30 + $0x18] sm:$0xff] }
 0x24c   : > { %v2978_v36 = vsel %vm2806_vm2, %v2716_v14, 0.0  ;;  %v7426_v18 = vpop.permute.xlu1 %881  ;;  %v930_v7 = vrot.slane %v5789_v42, %v6438_v41 }
 0x24d   : > { %v2876_v44 = vadd.f32 %v2875_v5, %v2874_v1  ;;  %v2937_v13 = vadd.f32 %v2936_v12, %v2935_v43  ;;  %v2980_v20 = vadd.f32 %v2979_v19, %v2978_v36  ;;  %10067 = vst [vmem:[#allocation142_spill] sm:$0xff] %v7426_v18  ;;  %v7428_v8 = vpop.permute.xlu0 %877  ;;  %v2731_v49 = vmul.f32 %v2603_v47, %v7426_v18 }
 0x24e   : > { %10068 = vst [vmem:[#allocation143_spill] sm:$0xff] %v7428_v8  ;;  %v2730_v23 = vmul.f32 %v2602_v50, %v7428_v8  ;;  %1991 = vbcast.lane.b32.xlu1 %v1985_v17, 264  ;;  %v985_v47 = vrot.slane %v7126_v21, %v6401_v25 }
 0x24f   : > { %v2877_v32 = vrot.slane %v2876_v44, 1  ;;  %v2938_v48 = vrot.slane %v2937_v13, 2  ;;  %v2981_v39 = vrot.slane %v2980_v20, 4  ;;  %1987 = vbcast.lane.b32.xlu0 %v1985_v17, 256  ;;  %v3042_v5 = vsel %vm2806_vm2, %v2731_v49, 0.0 }
 0x250   : > { %v3041_v12 = vsel %vm2806_vm2, %v2730_v23, 0.0  ;;  %v7436_v19 = vpop.permute.xlu1 %1738 }
 0x251   : > { %v2878_v1 = vadd.f32 %v2877_v32, %v2876_v44  ;;  %v2939_v46 = vadd.f32 %v2938_v48, %v2937_v13  ;;  %v2982_v43 = vadd.f32 %v2981_v39, %v2980_v20  ;;  %v3043_v14 = vadd.f32 %v3042_v5, %v3041_v12  ;;  %10069 = vst [vmem:[#allocation144_spill] sm:$0xff] %v7436_v19  ;;  %v7438_v36 = vpop.permute.xlu0 %1734  ;;  %v10073_v48 = vld [vmem:[#allocation33_spill] sm:$0xff]  ;;  %v10074_v5 = vld [vmem:[#allocation34_spill] sm:$0xff] }
 0x252   : > { %10070 = vst [vmem:[#allocation145_spill] sm:$0xff] %v7438_v36  ;;  %936 = vbcast.lane.b32.xlu1 %v930_v7, 264  ;;  %v2041_v42 = vmul.f32 %v7321_v55, %v10073_v48  ;;  %v2040_v12 = vmul.f32 %v7321_v55, %v10074_v5  ;;  %v10081_v48 = vld [vmem:[#allocation37_spill] sm:$0xff] }
 0x253   : > { %v2940_v17 = vrot.slane %v2939_v46, 1  ;;  %v2983_v50 = vrot.slane %v2982_v43, 2  ;;  %v3044_v18 = vrot.slane %v3043_v14, 4  ;;  %932 = vbcast.lane.b32.xlu0 %v930_v7, 256  ;;  %v3460_v49 = vsel %vm3459_vm9, %v2878_v1, %v7290_v54 }
 0x254   : > { %v3518_v32 = vadd.f32 %v3460_v49, %v6666_v16  ;;  %v7445_v13 = vpop.permute.xlu1 %1815  ;;  %v2065_v5 = vmul.f32 %v7321_v55, %v10081_v48 }
 0x255   : > { %v2941_v44 = vadd.f32 %v2940_v17, %v2939_v46  ;;  %v2984_v39 = vadd.f32 %v2983_v50, %v2982_v43  ;;  %v3045_v20 = vadd.f32 %v3044_v18, %v3043_v14  ;;  %10071 = vst [vmem:[#allocation146_spill] sm:$0xff] %v7445_v13  ;;  %v7447_v23 = vpop.permute.xlu0 %1811  ;;  %v1062_v18 = vrot.slane %v7268_v40, %v6394_v22  ;;  %v10075_v46 = vld [vmem:[#allocation35_spill] sm:$0xff] }
 0x256   : > { %10072 = vst [vmem:[#allocation147_spill] sm:$0xff] %v7447_v23  ;;  %5587 = vmatprep.mubr.msk.f32.mxu1 %vm2806_vm2, %v3518_v32  ;;  %991 = vbcast.lane.b32.xlu1 %v985_v47, 264  ;;  %v2051_v43 = vmul.f32 %v7321_v55, %v10075_v46  ;;  %v7470_v32 = vadd.f32 %v7252_v35, %v2040_v12 }
 0x257   : > { %v7456_v54 = vsel %vm3457_vm8, %v2941_v44, %v7305_v24  ;;  %v2985_v7 = vrot.slane %v2984_v39, 1  ;;  %v3046_v1 = vrot.slane %v3045_v20, 2  ;;  %987 = vbcast.lane.b32.xlu0 %v985_v47, 256  ;;  %v7467_v24 = vadd.f32 %v7252_v35, %v2041_v42  ;;  %v10080_v44 = vld [vmem:[#allocation36_spill] sm:$0xff] }
 0x258   : > { %v7462_v50 = vpop.permute.xlu1 %1870  ;;  %10079 = vst [vmem:[#allocation148_spill] sm:$0xff] %v7470_v32  ;;  %v2050_v47 = vmul.f32 %v7321_v55, %v10080_v44  ;;  %v2452_v44 = vadd.f32 %v6666_v16, %v7470_v32  ;;  %v7489_v48 = vadd.f32 %v7252_v35, %v2051_v43  ;;  %v10091_v32 = vld [vmem:[#allocation50_spill] sm:$0xff]  ;;  %v2069_v13 = vmul.f32 %v7321_v55, %v6831_v63 }
 0x259   : > { %v2986_v14 = vadd.f32 %v2985_v7, %v2984_v39  ;;  %v3047_v17 = vadd.f32 %v3046_v1, %v3045_v20  ;;  %10076 = vst [vmem:[#allocation33_spill] sm:$0xff] %v7462_v50  ;;  %v7464_v49 = vpop.permute.xlu0 %1866  ;;  %10078 = vst [vmem:[#allocation35_spill] sm:$0xff] %v7467_v24  ;;  %v5790_v7 = vld [vmem:[%s6327_s14 + $0x38] sm:$0xff]  ;;  %v2453_v46 = vadd.f32 %v6657_v57, %v7467_v24 }
 0x25a   : > { %10077 = vst [vmem:[#allocation34_spill] sm:$0xff] %v7464_v49  ;;  %1068 = vbcast.lane.b32.xlu1 %v1062_v18, 264  ;;  %v1996_v42 = vrot.slane %v5790_v7, %v6438_v41  ;;  %v10082_v1 = vld [vmem:[#allocation38_spill] sm:$0xff]  ;;  %10083 = vst [vmem:[#allocation36_spill] sm:$0xff] %v7489_v48  ;;  %v7498_v7 = vadd.f32 %v7252_v35, %v2050_v47  ;;  %v2463_v43 = vadd.f32 %v6686_v53, %v7489_v48 }
 0x25b   : > { %v7478_v39 = vsel %vm3451_vm5, %v2986_v14, %v7313_v62  ;;  %v3048_v20 = vrot.slane %v3047_v17, 1  ;;  %1064 = vbcast.lane.b32.xlu0 %v1062_v18, 256  ;;  %v2064_v12 = vmul.f32 %v7321_v55, %v10082_v1  ;;  %v2053_v62 = vmul.f32 %v7321_v55, %v6715_v33 }
 0x25c   : > { %v7493_v18 = vpop.permute.xlu1 %1947  ;;  %10086 = vst [vmem:[#allocation149_spill] sm:$0xff] %v7498_v7  ;;  %v7501_v1 = vadd.f32 %v7252_v35, %v2065_v5  ;;  %v996_v33 = vrot.slane %v7126_v21, %v6408_v28  ;;  %v2581_v47 = vmax.f32 %v2453_v46, 0.0  ;;  %v2462_v5 = vadd.f32 %v6692_v52, %v7498_v7 }
 0x25d   : > { %v3049_v14 = vadd.f32 %v3048_v20, %v3047_v17  ;;  %10084 = vst [vmem:[#allocation37_spill] sm:$0xff] %v7493_v18  ;;  %v7495_v8 = vpop.permute.xlu0 %1943  ;;  %v7512_v17 = vadd.f32 %v7252_v35, %v2064_v12  ;;  %v2580_v20 = vmax.f32 %v2452_v44, 0.0  ;;  %v7517_v24 = vadd.f32 %v7252_v35, %v2053_v62  ;;  %v10094_v44 = vld [vmem:[#allocation51_spill] sm:$0xff] }
 0x25e   : > { %10085 = vst [vmem:[#allocation38_spill] sm:$0xff] %v7495_v8  ;;  %10087 = vst [vmem:[#allocation150_spill] sm:$0xff] %v7501_v1  ;;  %2002 = vbcast.lane.b32.xlu1 %v1996_v42, 264  ;;  %v2066_v48 = vmul.f32 %v7321_v55, %v10091_v32  ;;  %v2075_v46 = vmul.f32 %v7321_v55, %v6733_v58  ;;  %v2074_v62 = vmul.f32 %v7321_v55, %v10094_v44 }
 0x25f   : > { %v7505_v16 = vsel %vm3449_vm4, %v3049_v14, %v7344_v27  ;;  %1998 = vbcast.lane.b32.xlu0 %v1996_v42, 256  ;;  %10088 = vst [vmem:[#allocation151_spill] sm:$0xff] %v7512_v17  ;;  %10089 = vst [vmem:[#allocation152_spill] sm:$0xff] %v7517_v24  ;;  %v2052_v27 = vmul.f32 %v7321_v55, %v6717_v29  ;;  %v10090_v42 = vld [vmem:[#allocation49_spill] sm:$0xff]  ;;  %v2591_v32 = vmax.f32 %v2463_v43, 0.0  ;;  %v2590_v50 = vmax.f32 %v2462_v5, 0.0 }
 0x260   : > { %v2067_v14 = vmul.f32 %v7321_v55, %v10090_v42  ;;  %v7525_v8 = vpop.permute.xlu1 %760  ;;  %v2077_v42 = vmul.f32 %v7321_v55, %v6756_v6  ;;  %v1073_v18 = vrot.slane %v7268_v40, %v6401_v25  ;;  %v2477_v49 = vadd.f32 %v6686_v53, %v7501_v1 }
 0x261   : > { %10092 = vst [vmem:[#allocation49_spill] sm:$0xff] %v7525_v8  ;;  %v7527_v12 = vpop.permute.xlu0 %756  ;;  %v2709_v7 = vmul.f32 %v2581_v47, %v7525_v8  ;;  %v2476_v47 = vadd.f32 %v6692_v52, %v7512_v17  ;;  %v7549_v6 = vadd.f32 %v7252_v35, %v2052_v27  ;;  %v7555_v43 = vadd.f32 %v7252_v35, %v2066_v48  ;;  %v10103_v48 = vld [vmem:[#allocation55_spill] sm:$0xff] }
 0x262   : > { %10093 = vst [vmem:[#allocation50_spill] sm:$0xff] %v7527_v12  ;;  %v2708_v29 = vmul.f32 %v2580_v20, %v7527_v12  ;;  %1002 = vbcast.lane.b32.xlu1 %v996_v33, 264  ;;  %v7546_v20 = vld [vmem:[%s6457_s30 + $0x30] sm:$0xff]  ;;  %v7562_v5 = vadd.f32 %v7252_v35, %v2075_v46  ;;  %v2605_v23 = vmax.f32 %v2477_v49, 0.0 }
 0x263   : > { %998 = vbcast.lane.b32.xlu0 %v996_v33, 256  ;;  %v2943_v58 = vsel %vm2806_vm2, %v2709_v7, 0.0  ;;  %10095 = vst [vmem:[#allocation51_spill] sm:$0xff] %v7549_v6  ;;  %v7552_v33 = vadd.f32 %v7252_v35, %v2067_v14  ;;  %10097 = vst [vmem:[#allocation154_spill] sm:$0xff] %v7555_v43  ;;  %v7570_v14 = vadd.f32 %v7252_v35, %v2077_v42 }
 0x264   : > { %v2942_v44 = vsel %vm2806_vm2, %v2708_v29, 0.0  ;;  %v7557_v8 = vpop.permute.xlu1 %815  ;;  %10100 = vst [vmem:[#allocation157_spill] sm:$0xff] %v7562_v5  ;;  %v7565_v29 = vadd.f32 %v7252_v35, %v2074_v62  ;;  %v1117_v46 = vrot.slane %v7546_v20, %v6355_v4  ;;  %v2054_v42 = vmul.f32 %v7321_v55, %v6827_v37 }
 0x265   : > { %10096 = vst [vmem:[#allocation153_spill] sm:$0xff] %v7552_v33  ;;  %v2944_v1 = vadd.f32 %v2943_v58, %v2942_v44  ;;  %10098 = vst [vmem:[#allocation155_spill] sm:$0xff] %v7557_v8  ;;  %v7559_v7 = vpop.permute.xlu0 %811  ;;  %v2719_v27 = vmul.f32 %v2591_v32, %v7557_v8  ;;  %v2076_v58 = vmul.f32 %v7321_v55, %v10103_v48  ;;  %v2604_v32 = vmax.f32 %v2476_v47, 0.0 }
 0x266   : > { %10099 = vst [vmem:[#allocation156_spill] sm:$0xff] %v7559_v7  ;;  %10101 = vst [vmem:[#allocation158_spill] sm:$0xff] %v7565_v29  ;;  %v2718_v17 = vmul.f32 %v2590_v50, %v7559_v7  ;;  %1079 = vbcast.lane.b32.xlu1 %v1073_v18, 264  ;;  %v2055_v50 = vmul.f32 %v7321_v55, %v6825_v60  ;;  %v2079_v60 = vmul.f32 %v7321_v55, %v6844_v31 }
 0x267   : > { %10102 = vst [vmem:[#allocation159_spill] sm:$0xff] %v7570_v14  ;;  %v2945_v44 = vrot.slane %v2944_v1, 4  ;;  %1075 = vbcast.lane.b32.xlu0 %v1073_v18, 256  ;;  %v2988_v12 = vsel %vm2806_vm2, %v2719_v27, 0.0  ;;  %v10106_v27 = vld [vmem:[#allocation67_spill] sm:$0xff]  ;;  %v7609_v19 = vadd.f32 %v7252_v35, %v2076_v58 }
 0x268   : > { %v2987_v62 = vsel %vm2806_vm2, %v2718_v17, 0.0  ;;  %v7582_v7 = vpop.permute.xlu1 %892  ;;  %v2068_v17 = vmul.f32 %v7321_v55, %v6833_v45  ;;  %v2078_v63 = vmul.f32 %v7321_v55, %v10106_v27  ;;  %v2091_v45 = vmul.f32 %v7321_v55, %v6854_v51 }
 0x269   : > { %v2946_v8 = vadd.f32 %v2945_v44, %v2944_v1  ;;  %v2989_v48 = vadd.f32 %v2988_v12, %v2987_v62  ;;  %10104 = vst [vmem:[#allocation55_spill] sm:$0xff] %v7582_v7  ;;  %v7584_v18 = vpop.permute.xlu0 %888  ;;  %v2733_v49 = vmul.f32 %v2605_v23, %v7582_v7  ;;  %v1128_v12 = vrot.slane %v7546_v20, %v6352_v3  ;;  %v10107_v62 = vld [vmem:[#allocation68_spill] sm:$0xff] }
 0x26a   : > { %10105 = vst [vmem:[#allocation160_spill] sm:$0xff] %v7584_v18  ;;  %v2732_v47 = vmul.f32 %v2604_v32, %v7584_v18  ;;  %1123 = vbcast.lane.b32.xlu1 %v1117_v46, 264  ;;  %v2090_v31 = vmul.f32 %v7321_v55, %v10107_v62  ;;  %10109 = vst [vmem:[#allocation68_spill] sm:$0xff] %v7609_v19  ;;  %v7612_v27 = vadd.f32 %v7252_v35, %v2055_v50 }
 0x26b   : > { %v2947_v37 = vrot.slane %v2946_v8, 2  ;;  %v2990_v1 = vrot.slane %v2989_v48, 4  ;;  %1119 = vbcast.lane.b32.xlu0 %v1117_v46, 256  ;;  %v3051_v23 = vsel %vm2806_vm2, %v2733_v49, 0.0  ;;  %v7615_v51 = vadd.f32 %v7252_v35, %v2054_v42 }
 0x26c   : > { %v3050_v44 = vsel %vm2806_vm2, %v2732_v47, 0.0  ;;  %v7604_v46 = vpop.permute.xlu1 %1826  ;;  %10110 = vst [vmem:[#allocation161_spill] sm:$0xff] %v7612_v27  ;;  %v7618_v49 = vadd.f32 %v7252_v35, %v2069_v13  ;;  %v7623_v58 = vadd.f32 %v7252_v35, %v2068_v17  ;;  %v7626_v50 = vadd.f32 %v7252_v35, %v2079_v60  ;;  %v10120_v17 = vld [vmem:[#allocation71_spill] sm:$0xff] }
 0x26d   : > { %v2948_v32 = vadd.f32 %v2947_v37, %v2946_v8  ;;  %v2991_v7 = vadd.f32 %v2990_v1, %v2989_v48  ;;  %v3052_v18 = vadd.f32 %v3051_v23, %v3050_v44  ;;  %v7606_v36 = vpop.permute.xlu0 %1822  ;;  %10111 = vst [vmem:[#allocation162_spill] sm:$0xff] %v7615_v51  ;;  %v1007_v37 = vrot.slane %v7126_v21, %v6422_v34 }
 0x26e   : > { %10108 = vst [vmem:[#allocation67_spill] sm:$0xff] %v7606_v36  ;;  %10112 = vst [vmem:[#allocation163_spill] sm:$0xff] %v7618_v49  ;;  %1134 = vbcast.lane.b32.xlu1 %v1128_v12, 264  ;;  %v7629_v42 = vadd.f32 %v7252_v35, %v2078_v63  ;;  %v7632_v13 = vadd.f32 %v7252_v35, %v2091_v45  ;;  %v7635_v1 = vadd.f32 %v7252_v35, %v2090_v31  ;;  %v10121_v36 = vld [vmem:[#allocation72_spill] sm:$0xff] }
 0x26f   : > { %v2949_v47 = vrot.slane %v2948_v32, 1  ;;  %v2992_v8 = vrot.slane %v2991_v7, 2  ;;  %v3053_v48 = vrot.slane %v3052_v18, 4  ;;  %1130 = vbcast.lane.b32.xlu0 %v1128_v12, 256  ;;  %10113 = vst [vmem:[#allocation164_spill] sm:$0xff] %v7623_v58  ;;  %10114 = vst [vmem:[#allocation165_spill] sm:$0xff] %v7626_v50  ;;  %v2093_v60 = vmul.f32 %v7321_v55, %v10120_v17 }
 0x270   : > { %10115 = vst [vmem:[#allocation166_spill] sm:$0xff] %v7629_v42  ;;  %10116 = vst [vmem:[#allocation167_spill] sm:$0xff] %v7632_v13  ;;  %v7637_v62 = vpop.permute.xlu1 %1881  ;;  %v2092_v63 = vmul.f32 %v7321_v55, %v10121_v36  ;;  %v2465_v45 = vadd.f32 %v6686_v53, %v7517_v24  ;;  %v2464_v31 = vadd.f32 %v6692_v52, %v7549_v6  ;;  %v10122_v17 = vld [vmem:[#allocation45_spill] sm:$0xff] }
 0x271   : > { %10117 = vst [vmem:[#allocation168_spill] sm:$0xff] %v7635_v1  ;;  %v2950_v23 = vadd.f32 %v2949_v47, %v2948_v32  ;;  %v2993_v12 = vadd.f32 %v2992_v8, %v2991_v7  ;;  %v3054_v44 = vadd.f32 %v3053_v48, %v3052_v18  ;;  %10118 = vst [vmem:[#allocation169_spill] sm:$0xff] %v7637_v62  ;;  %v7639_v21 = vpop.permute.xlu0 %1877 }
 0x272   : > { %10119 = vst [vmem:[#allocation170_spill] sm:$0xff] %v7639_v21  ;;  %1013 = vbcast.lane.b32.xlu1 %v1007_v37, 264  ;;  %v1084_v47 = vrot.slane %v7268_v40, %v6408_v28  ;;  %v2479_v36 = vadd.f32 %v6686_v53, %v7552_v33  ;;  %v2478_v48 = vadd.f32 %v6692_v52, %v7555_v43  ;;  %v10124_v21 = vld [vmem:[#allocation46_spill] sm:$0xff] }
 0x273   : > { %v3467_v7 = vsel %vm3459_vm9, %v2950_v23, %v7456_v54  ;;  %v2994_v18 = vrot.slane %v2993_v12, 1  ;;  %v3055_v32 = vrot.slane %v3054_v44, 2  ;;  %1009 = vbcast.lane.b32.xlu0 %v1007_v37, 256  ;;  %v7660_v24 = vadd.f32 %v10122_v17, %v7562_v5 }
 0x274   : > { %v3519_v8 = vadd.f32 %v3467_v7, %v6657_v57  ;;  %v7662_v6 = vpop.permute.xlu1 %1958  ;;  %v7668_v62 = vadd.f32 %v10124_v21, %v7565_v29  ;;  %v7672_v57 = vadd.f32 %v10122_v17, %v7570_v14  ;;  %v7675_v7 = vadd.f32 %v7252_v35, %v2093_v60  ;;  %v7696_v14 = vld [vmem:[%s6457_s30 + $0x38] sm:$0xff] }
 0x275   : > { %v2995_v54 = vadd.f32 %v2994_v18, %v2993_v12  ;;  %v3056_v23 = vadd.f32 %v3055_v32, %v3054_v44  ;;  %v7664_v37 = vpop.permute.xlu0 %1954  ;;  %v7678_v5 = vadd.f32 %v7252_v35, %v2092_v63  ;;  %v2593_v12 = vmax.f32 %v2465_v45, 0.0 }
 0x276   : > { %10123 = vst [vmem:[#allocation71_spill] sm:$0xff] %v7664_v37  ;;  %10125 = vst [vmem:[#allocation72_spill] sm:$0xff] %v7675_v7  ;;  %5588 = vmatmul.mubr.msk.f32.vlgmr.msra.gmra.mrb[4].mxu1 %vm2806_vm2, %v3519_v8  ;;  %v7683_v44 = vadd.f32 %v10124_v21, %v7609_v19  ;;  %1090 = vbcast.lane.b32.xlu1 %v1084_v47, 264  ;;  %v1139_v32 = vrot.slane %v7546_v20, %v6376_v15  ;;  %v2592_v8 = vmax.f32 %v2464_v31, 0.0 }
 0x277   : > { %10126 = vst [vmem:[#allocation45_spill] sm:$0xff] %v7678_v5  ;;  %v3057_v18 = vrot.slane %v3056_v23, 1  ;;  %1086 = vbcast.lane.b32.xlu0 %v1084_v47, 256  ;;  %v7689_v60 = vadd.f32 %v6686_v53, %v7612_v27  ;;  %v7693_v63 = vsel %vm3453_vm6, %v2995_v54, %v7478_v39  ;;  %v2607_v45 = vmax.f32 %v2479_v36, 0.0 }
 0x278   : > { %v2606_v29 = vmax.f32 %v2478_v48, 0.0  ;;  %v2615_v19 = vmax.f32 %v7660_v24, 0.0  ;;  %v7699_v47 = vpop.permute.xlu1 %826  ;;  %v2614_v37 = vmax.f32 %v7668_v62, 0.0  ;;  %v7707_v39 = vadd.f32 %v6692_v52, %v7615_v51 }
 0x279   : > { %v3058_v33 = vadd.f32 %v3057_v18, %v3056_v23  ;;  %10127 = vst [vmem:[#allocation46_spill] sm:$0xff] %v7699_v47  ;;  %v7701_v43 = vpop.permute.xlu0 %822  ;;  %v2721_v31 = vmul.f32 %v2593_v12, %v7699_v47  ;;  %v2616_v48 = vmax.f32 %v7683_v44, 0.0  ;;  %v7714_v24 = vadd.f32 %v6686_v53, %v7618_v49  ;;  %v10142_v47 = vld [vmem:[#allocation82_spill] sm:$0xff] }
 0x27a   : > { %10128 = vst [vmem:[#allocation171_spill] sm:$0xff] %v7701_v43  ;;  %v2720_v36 = vmul.f32 %v2592_v8, %v7701_v43  ;;  %1145 = vbcast.lane.b32.xlu1 %v1139_v32, 264  ;;  %v1205_v62 = vrot.slane %v7696_v14, %v6355_v4  ;;  %v7725_v12 = vadd.f32 %v6692_v52, %v7623_v58 }
 0x27b   : > { %v7718_v54 = vsel %vm3451_vm5, %v3058_v33, %v7505_v16  ;;  %1141 = vbcast.lane.b32.xlu0 %v1139_v32, 256  ;;  %v2997_v44 = vsel %vm2806_vm2, %v2721_v31, 0.0  ;;  %v7731_v8 = vadd.f32 %v10122_v17, %v7626_v50  ;;  %v7735_v16 = vadd.f32 %v10124_v21, %v7629_v42 }
 0x27c   : > { %v2996_v18 = vsel %vm2806_vm2, %v2720_v36, 0.0  ;;  %v7737_v4 = vpop.permute.xlu1 %903  ;;  %v7744_v31 = vadd.f32 %v10122_v17, %v7632_v13  ;;  %v7748_v36 = vadd.f32 %v10124_v21, %v7635_v1  ;;  %v2057_v27 = vmul.f32 %v7321_v55, %v6913_v38 }
 0x27d   : > { %v2998_v33 = vadd.f32 %v2997_v44, %v2996_v18  ;;  %10129 = vst [vmem:[#allocation172_spill] sm:$0xff] %v7737_v4  ;;  %v7739_v32 = vpop.permute.xlu0 %899  ;;  %v2735_v42 = vmul.f32 %v2607_v45, %v7737_v4  ;;  %v2056_v23 = vmul.f32 %v7321_v55, %v6915_v56  ;;  %v1216_v13 = vrot.slane %v7696_v14, %v6352_v3 }
 0x27e   : > { %10130 = vst [vmem:[#allocation173_spill] sm:$0xff] %v7739_v32  ;;  %v2734_v44 = vmul.f32 %v2606_v29, %v7739_v32  ;;  %1211 = vbcast.lane.b32.xlu1 %v1205_v62, 264  ;;  %v7771_v1 = vadd.f32 %v7252_v35, %v2057_v27  ;;  %v7777_v29 = vadd.f32 %v10122_v17, %v7675_v7 }
 0x27f   : > { %v2999_v50 = vrot.slane %v2998_v33, 4  ;;  %1207 = vbcast.lane.b32.xlu0 %v1205_v62, 256  ;;  %v3060_v49 = vsel %vm2806_vm2, %v2735_v42, 0.0  ;;  %v2071_v27 = vmul.f32 %v7321_v55, %v6919_v61  ;;  %v7790_v62 = vadd.f32 %v10124_v21, %v7678_v5 }
 0x280   : > { %v3059_v38 = vsel %vm2806_vm2, %v2734_v44, 0.0  ;;  %v7764_v56 = vpop.permute.xlu1 %947  ;;  %10133 = vst [vmem:[#allocation176_spill] sm:$0xff] %v7771_v1  ;;  %v2081_v61 = vmul.f32 %v7321_v55, %v6929_v10  ;;  %v10139_v10 = vld [vmem:[#allocation79_spill] sm:$0xff] }
 0x281   : > { %v3000_v18 = vadd.f32 %v2999_v50, %v2998_v33  ;;  %v3061_v4 = vadd.f32 %v3060_v49, %v3059_v38  ;;  %10131 = vst [vmem:[#allocation174_spill] sm:$0xff] %v7764_v56  ;;  %v7766_v32 = vpop.permute.xlu0 %943  ;;  %v2743_v42 = vmul.f32 %v2615_v19, %v7764_v56  ;;  %v7780_v49 = vadd.f32 %v7252_v35, %v2056_v23  ;;  %v5791_v38 = vld [vmem:[%s6457_s30 + $0x20] sm:$0xff] }
 0x282   : > { %10132 = vst [vmem:[#allocation175_spill] sm:$0xff] %v7766_v32  ;;  %v2742_v44 = vmul.f32 %v2614_v37, %v7766_v32  ;;  %1222 = vbcast.lane.b32.xlu1 %v1216_v13, 264  ;;  %v1018_v3 = vrot.slane %v5791_v38, %v6438_v41  ;;  %v2070_v23 = vmul.f32 %v7321_v55, %v6921_v2 }
 0x283   : > { %10134 = vst [vmem:[#allocation177_spill] sm:$0xff] %v7780_v49  ;;  %v3001_v50 = vrot.slane %v3000_v18, 2  ;;  %v3062_v33 = vrot.slane %v3061_v4, 4  ;;  %1218 = vbcast.lane.b32.xlu0 %v1216_v13, 256  ;;  %v3096_v19 = vsel %vm2806_vm2, %v2743_v42, 0.0  ;;  %v10137_v42 = vmax.f32 %v7672_v57, 0.0 }
 0x284   : > { %v3095_v37 = vsel %vm2806_vm2, %v2742_v44, 0.0  ;;  %v7794_v56 = vpop.permute.xlu1 %958 }
 0x285   : > { %v3002_v45 = vadd.f32 %v3001_v50, %v3000_v18  ;;  %v3063_v7 = vadd.f32 %v3062_v33, %v3061_v4  ;;  %v3097_v13 = vadd.f32 %v3096_v19, %v3095_v37  ;;  %10135 = vst [vmem:[#allocation178_spill] sm:$0xff] %v7794_v56  ;;  %v7796_v38 = vpop.permute.xlu0 %954  ;;  %v2745_v44 = vmul.f32 %v10137_v42, %v7794_v56 }
 0x286   : > { %10136 = vst [vmem:[#allocation179_spill] sm:$0xff] %v7796_v38  ;;  %v2744_v5 = vmul.f32 %v2616_v48, %v7796_v38  ;;  %1024 = vbcast.lane.b32.xlu1 %v1018_v3, 264  ;;  %v1095_v4 = vrot.slane %v7268_v40, %v6422_v34  ;;  %v7808_v50 = vadd.f32 %v7252_v35, %v2071_v27 }
 0x287   : > { %v3003_v58 = vrot.slane %v3002_v45, 1  ;;  %v3064_v2 = vrot.slane %v3063_v7, 2  ;;  %v3098_v18 = vrot.slane %v3097_v13, 4  ;;  %1020 = vbcast.lane.b32.xlu0 %v1018_v3, 256  ;;  %v2080_v33 = vmul.f32 %v7321_v55, %v10139_v10 }
 0x288   : > { %10138 = vst [vmem:[#allocation180_spill] sm:$0xff] %v7808_v50  ;;  %v3105_v57 = vsel %vm2806_vm2, %v2745_v44, 0.0  ;;  %v3104_v48 = vsel %vm2806_vm2, %v2744_v5, 0.0  ;;  %v7814_v56 = vpop.permute.xlu1 %1892  ;;  %v7819_v38 = vadd.f32 %v7252_v35, %v2070_v23  ;;  %v7822_v27 = vadd.f32 %v7252_v35, %v2081_v61  ;;  %v10143_v23 = vld [vmem:[#allocation83_spill] sm:$0xff] }
 0x289   : > { %v3004_v19 = vadd.f32 %v3003_v58, %v3002_v45  ;;  %v3065_v37 = vadd.f32 %v3064_v2, %v3063_v7  ;;  %v3099_v42 = vadd.f32 %v3098_v18, %v3097_v13  ;;  %v3106_v32 = vadd.f32 %v3105_v57, %v3104_v48  ;;  %v7816_v3 = vpop.permute.xlu0 %1888 }
 0x28a   : > { %10140 = vst [vmem:[#allocation79_spill] sm:$0xff] %v7819_v38  ;;  %10141 = vst [vmem:[#allocation181_spill] sm:$0xff] %v7822_v27  ;;  %v2095_v10 = vmul.f32 %v7321_v55, %v10142_v47  ;;  %v1150_v5 = vrot.slane %v7546_v20, %v6394_v22  ;;  %1101 = vbcast.lane.b32.xlu1 %v1095_v4, 264  ;;  %v2094_v44 = vmul.f32 %v7321_v55, %v10143_v23 }
 0x28b   : > { %v3066_v58 = vrot.slane %v3065_v37, 1  ;;  %v3100_v7 = vrot.slane %v3099_v42, 2  ;;  %v3107_v45 = vrot.slane %v3106_v32, 4  ;;  %1097 = vbcast.lane.b32.xlu0 %v1095_v4, 256  ;;  %v7830_v13 = vsel %vm3455_vm7, %v3004_v19, %v7693_v63 }
 0x28c   : > { %v7836_v61 = vadd.f32 %v6686_v53, %v7771_v1  ;;  %v7840_v47 = vadd.f32 %v6692_v52, %v7780_v49  ;;  %v7844_v2 = vadd.f32 %v6686_v53, %v7808_v50  ;;  %v7847_v18 = vadd.f32 %v7252_v35, %v2080_v33  ;;  %v7849_v48 = vpop.permute.xlu1 %1969  ;;  %v10227_v49 = vld [vmem:[#allocation144_spill] sm:$0xff] }
 0x28d   : > { %v3067_v63 = vadd.f32 %v3066_v58, %v3065_v37  ;;  %v3101_v4 = vadd.f32 %v3100_v7, %v3099_v42  ;;  %v3108_v57 = vadd.f32 %v3107_v45, %v3106_v32  ;;  %v7851_v19 = vpop.permute.xlu0 %1965  ;;  %v7854_v23 = vadd.f32 %v7252_v35, %v2095_v10 }
 0x28e   : > { %10144 = vst [vmem:[#allocation82_spill] sm:$0xff] %v7847_v18  ;;  %v7859_v1 = vadd.f32 %v6692_v52, %v7819_v38  ;;  %v7863_v33 = vadd.f32 %v10122_v17, %v7822_v27  ;;  %v2073_v32 = vmul.f32 %v7321_v55, %v6993_v59  ;;  %1156 = vbcast.lane.b32.xlu1 %v1150_v5, 264 }
 0x28f   : > { %10145 = vst [vmem:[#allocation83_spill] sm:$0xff] %v7854_v23  ;;  %v3109_v37 = vrot.slane %v3108_v57, 2  ;;  %1152 = vbcast.lane.b32.xlu0 %v1150_v5, 256  ;;  %v1227_v42 = vrot.slane %v7696_v14, %v6376_v15  ;;  %v7871_v10 = vsel %vm3453_vm6, %v3067_v63, %v7718_v54  ;;  %v7874_v58 = vadd.f32 %v7252_v35, %v2094_v44 }
 0x290   : > { %v2072_v7 = vmul.f32 %v7321_v55, %v6995_v0  ;;  %v3102_v43 = vrot.slane %v3101_v4, 1  ;;  %v7880_v5 = vpop.permute.xlu1 %837  ;;  %v7887_v54 = vadd.f32 %v10124_v21, %v7847_v18  ;;  %v10149_v44 = vmax.f32 %v7689_v60, 0.0 }
 0x291   : > { %10146 = vst [vmem:[#allocation182_spill] sm:$0xff] %v7874_v58  ;;  %v3110_v27 = vadd.f32 %v3109_v37, %v3108_v57  ;;  %10147 = vst [vmem:[#allocation183_spill] sm:$0xff] %v7880_v5  ;;  %v7882_v50 = vpop.permute.xlu0 %833  ;;  %v10150_v63 = vmax.f32 %v7707_v39, 0.0  ;;  %v7898_v45 = vadd.f32 %v7252_v35, %v2073_v32  ;;  %v1106_v18 = vrot.slane %v7268_v40, %v6438_v41 }
 0x292   : > { %10148 = vst [vmem:[#allocation184_spill] sm:$0xff] %v7882_v50  ;;  %v2723_v0 = vmul.f32 %v10149_v44, %v7880_v5  ;;  %1233 = vbcast.lane.b32.xlu1 %v1227_v42, 264  ;;  %v7904_v60 = vadd.f32 %v10122_v17, %v7854_v23  ;;  %v7907_v39 = vadd.f32 %v7252_v35, %v2072_v7  ;;  %v10155_v7 = vmax.f32 %v7714_v24, 0.0 }
 0x293   : > { %v2722_v59 = vmul.f32 %v10150_v63, %v7882_v50  ;;  %10151 = vst [vmem:[#allocation185_spill] sm:$0xff] %v7898_v45  ;;  %v3111_v15 = vrot.slane %v3110_v27, 1  ;;  %1229 = vbcast.lane.b32.xlu0 %v1227_v42, 256  ;;  %v7913_v32 = vadd.f32 %v10124_v21, %v7874_v58  ;;  %v2083_v42 = vmul.f32 %v7321_v55, %v7007_v9 }
 0x294   : > { %10152 = vst [vmem:[#allocation186_spill] sm:$0xff] %v7907_v39  ;;  %v3006_v44 = vsel %vm2806_vm2, %v2723_v0, 0.0  ;;  %v3103_v37 = vadd.f32 %v3102_v43, %v3101_v4  ;;  %v7917_v38 = vpop.permute.xlu1 %914  ;;  %v2082_v35 = vmul.f32 %v7321_v55, %v7009_v26  ;;  %v10156_v0 = vmax.f32 %v7725_v12, 0.0 }
 0x295   : > { %v3005_v63 = vsel %vm2806_vm2, %v2722_v59, 0.0  ;;  %v3112_v40 = vadd.f32 %v3111_v15, %v3110_v27  ;;  %10153 = vst [vmem:[#allocation187_spill] sm:$0xff] %v7917_v38  ;;  %v7919_v23 = vpop.permute.xlu0 %910  ;;  %v2737_v59 = vmul.f32 %v10155_v7, %v7917_v38  ;;  %v1161_v4 = vrot.slane %v7546_v20, %v6401_v25  ;;  %v10161_v15 = vld [vmem:[#allocation94_spill] sm:$0xff] }
 0x296   : > { %v3007_v57 = vadd.f32 %v3006_v44, %v3005_v63  ;;  %10154 = vst [vmem:[#allocation188_spill] sm:$0xff] %v7919_v23  ;;  %v2736_v58 = vmul.f32 %v10156_v0, %v7919_v23  ;;  %1112 = vbcast.lane.b32.xlu1 %v1106_v18, 264  ;;  %v7937_v26 = vadd.f32 %v6686_v53, %v7898_v45  ;;  %v7946_v44 = vld [vmem:[#allocation7] ss:$0 sm:$0xff]  ;;  %v10162_v38 = vmax.f32 %v7731_v8, 0.0 }
 0x297   : > { %v7931_v43 = vsel %vm3447_vm3, %v3112_v40, %v3103_v37  ;;  %1108 = vbcast.lane.b32.xlu0 %v1106_v18, 256  ;;  %v3069_v24 = vsel %vm2806_vm2, %v2737_v59, 0.0  ;;  %v7944_v37 = vadd.f32 %v6692_v52, %v7907_v39  ;;  %v7949_v18 = vadd.f32 %v7946_v44, %v2083_v42  ;;  %v10164_v59 = vld [vmem:[#allocation95_spill] sm:$0xff] }
 0x298   : > { %v3008_v27 = vrot.slane %v3007_v57, 4  ;;  %v3068_v12 = vsel %vm2806_vm2, %v2736_v58, 0.0  ;;  %v7951_v7 = vpop.permute.xlu1 %969  ;;  %v7957_v58 = vadd.f32 %v7946_v44, %v2082_v35  ;;  %v2097_v9 = vmul.f32 %v7321_v55, %v10161_v15 }
 0x299   : > { %10157 = vst [vmem:[#allocation189_spill] sm:$0xff] %v7949_v18  ;;  %v3070_v40 = vadd.f32 %v3069_v24, %v3068_v12  ;;  %10158 = vst [vmem:[#allocation190_spill] sm:$0xff] %v7951_v7  ;;  %v7953_v0 = vpop.permute.xlu0 %965  ;;  %v2747_v23 = vmul.f32 %v10162_v38, %v7951_v7  ;;  %v1238_v12 = vrot.slane %v7696_v14, %v6394_v22 }
 0x29a   : > { %v3009_v63 = vadd.f32 %v3008_v27, %v3007_v57  ;;  %10159 = vst [vmem:[#allocation191_spill] sm:$0xff] %v7953_v0  ;;  %10160 = vst [vmem:[#allocation192_spill] sm:$0xff] %v7957_v58  ;;  %v10163_v57 = vmax.f32 %v7735_v16, 0.0  ;;  %1167 = vbcast.lane.b32.xlu1 %v1161_v4, 264  ;;  %v2096_v15 = vmul.f32 %v7321_v55, %v10164_v59 }
 0x29b   : > { %v3071_v24 = vrot.slane %v3070_v40, 4  ;;  %1163 = vbcast.lane.b32.xlu0 %v1161_v4, 256  ;;  %v3114_v45 = vsel %vm2806_vm2, %v2747_v23, 0.0  ;;  %v7981_v22 = vadd.f32 %v10122_v17, %v7949_v18  ;;  %v7984_v35 = vadd.f32 %v7946_v44, %v2097_v9 }
 0x29c   : > { %v2746_v42 = vmul.f32 %v10163_v57, %v7953_v0  ;;  %v3010_v27 = vrot.slane %v3009_v63, 2  ;;  %v7975_v0 = vpop.permute.xlu1 %1035  ;;  %v10168_v23 = vmax.f32 %v7744_v31, 0.0  ;;  %v1172_v9 = vrot.slane %v7546_v20, %v6408_v28 }
 0x29d   : > { %v3072_v57 = vadd.f32 %v3071_v24, %v3070_v40  ;;  %10165 = vst [vmem:[#allocation94_spill] sm:$0xff] %v7975_v0  ;;  %v7977_v4 = vpop.permute.xlu0 %1031  ;;  %10167 = vst [vmem:[#allocation193_spill] sm:$0xff] %v7984_v35  ;;  %v2085_v31 = vmul.f32 %v7321_v55, %v7130_v30  ;;  %v10174_v30 = vmax.f32 %v7790_v62, 0.0 }
 0x29e   : > { %v3113_v8 = vsel %vm2806_vm2, %v2746_v42, 0.0  ;;  %v3011_v16 = vadd.f32 %v3010_v27, %v3009_v63  ;;  %10166 = vst [vmem:[#allocation95_spill] sm:$0xff] %v7977_v4  ;;  %v2759_v59 = vmul.f32 %v10168_v23, %v7975_v0  ;;  %v10169_v63 = vmax.f32 %v7748_v36, 0.0  ;;  %1244 = vbcast.lane.b32.xlu1 %v1238_v12, 264 }
 0x29f   : > { %v3115_v7 = vadd.f32 %v3114_v45, %v3113_v8  ;;  %v7994_v45 = vadd.f32 %v10124_v21, %v7957_v58  ;;  %v3073_v27 = vrot.slane %v3072_v57, 2  ;;  %1240 = vbcast.lane.b32.xlu0 %v1238_v12, 256  ;;  %v7999_v8 = vadd.f32 %v7946_v44, %v2096_v15 }
 0x2a0   : > { %v2758_v40 = vmul.f32 %v10169_v63, %v7977_v4  ;;  %v3012_v42 = vrot.slane %v3011_v16, 1  ;;  %v3168_v36 = vsel %vm2806_vm2, %v2759_v59, 0.0  ;;  %v8005_v18 = vpop.permute.xlu1 %1046  ;;  %v2084_v58 = vmul.f32 %v7321_v55, %v7132_v11 }
 0x2a1   : > { %v3116_v24 = vrot.slane %v3115_v7, 4  ;;  %10170 = vst [vmem:[#allocation194_spill] sm:$0xff] %v7999_v8  ;;  %v3074_v38 = vadd.f32 %v3073_v27, %v3072_v57  ;;  %10171 = vst [vmem:[#allocation195_spill] sm:$0xff] %v8005_v18  ;;  %v8007_v12 = vpop.permute.xlu0 %1042  ;;  %v10173_v15 = vmax.f32 %v7777_v29, 0.0  ;;  %v8024_v11 = vadd.f32 %v7946_v44, %v2085_v31  ;;  %v10176_v29 = vld [vmem:[#allocation108_spill] sm:$0xff]  ;;  %v10178_v31 = vld [vmem:[#allocation109_spill] sm:$0xff] }
 0x2a2   : > { %v3167_v23 = vsel %vm2806_vm2, %v2758_v40, 0.0  ;;  %v3013_v63 = vadd.f32 %v3012_v42, %v3011_v16  ;;  %10172 = vst [vmem:[#allocation196_spill] sm:$0xff] %v8007_v12  ;;  %v2760_v59 = vmul.f32 %v10174_v30, %v8007_v12  ;;  %v1249_v16 = vrot.slane %v7696_v14, %v6401_v25  ;;  %1178 = vbcast.lane.b32.xlu1 %v1172_v9, 264  ;;  %v10182_v12 = vld [vmem:[#allocation19_spill] sm:$0xff] }
 0x2a3   : > { %v3117_v0 = vadd.f32 %v3116_v24, %v3115_v7  ;;  %v3169_v4 = vadd.f32 %v3168_v36, %v3167_v23  ;;  %v2761_v39 = vmul.f32 %v10173_v15, %v8005_v18  ;;  %v3075_v7 = vrot.slane %v3074_v38, 1  ;;  %1174 = vbcast.lane.b32.xlu0 %v1172_v9, 256  ;;  %10175 = vst [vmem:[#allocation197_spill] sm:$0xff] %v8024_v11 }
 0x2a4   : > { %v8021_v42 = vsel %vm3457_vm8, %v3013_v63, %v7830_v13  ;;  %v2099_v27 = vmul.f32 %v7321_v55, %v10176_v29  ;;  %v3176_v24 = vsel %vm2806_vm2, %v2760_v59, 0.0  ;;  %v8030_v30 = vpop.permute.xlu1 %1903  ;;  %v8035_v13 = vadd.f32 %v7946_v44, %v2084_v58 }
 0x2a5   : > { %v3118_v57 = vrot.slane %v3117_v0, 2  ;;  %v3170_v40 = vrot.slane %v3169_v4, 4  ;;  %v3177_v62 = vsel %vm2806_vm2, %v2761_v39, 0.0  ;;  %v3076_v25 = vadd.f32 %v3075_v7, %v3074_v38  ;;  %v8032_v9 = vpop.permute.xlu0 %1899  ;;  %v10180_v7 = vld [vmem:[#allocation17_spill] sm:$0xff] }
 0x2a6   : > { %v3178_v15 = vadd.f32 %v3177_v62, %v3176_v24  ;;  %10177 = vst [vmem:[#allocation108_spill] sm:$0xff] %v8035_v13  ;;  %v2098_v63 = vmul.f32 %v7321_v55, %v10178_v31  ;;  %v1183_v29 = vrot.slane %v7546_v20, %v6422_v34  ;;  %v8043_v39 = vadd.f32 %v10122_v17, %v7984_v35  ;;  %v8052_v55 = vld [vmem:[#allocation5] ss:$0 sm:$0xff] }
 0x2a7   : > { %v3119_v36 = vadd.f32 %v3118_v57, %v3117_v0  ;;  %v3171_v23 = vadd.f32 %v3170_v40, %v3169_v4  ;;  %1255 = vbcast.lane.b32.xlu1 %v1249_v16, 264  ;;  %1251 = vbcast.lane.b32.xlu0 %v1249_v16, 256  ;;  %v8047_v59 = vsel %vm3455_vm7, %v3076_v25, %v7871_v10  ;;  %v10181_v16 = vld [vmem:[#allocation110_spill] sm:$0xff]  ;;  %v10190_v35 = vmax.f32 %v7836_v61, 0.0 }
 0x2a8   : > { %v3179_v4 = vrot.slane %v3178_v15, 4  ;;  %v8050_v58 = vadd.f32 %v7946_v44, %v2099_v27  ;;  %v2107_v57 = vmul.f32 %v8052_v55, %v10180_v7  ;;  %v8058_v40 = vadd.f32 %v10124_v21, %v7999_v8  ;;  %v8066_v31 = vpop.permute.xlu1 %1980 }
 0x2a9   : > { %v3120_v0 = vrot.slane %v3119_v36, 1  ;;  %v3172_v38 = vrot.slane %v3171_v23, 2  ;;  %v8062_v62 = vadd.f32 %v10122_v17, %v8024_v11  ;;  %v2106_v10 = vmul.f32 %v8052_v55, %v10181_v16  ;;  %v8068_v18 = vpop.permute.xlu0 %1976 }
 0x2aa   : > { %10179 = vst [vmem:[#allocation109_spill] sm:$0xff] %v8050_v58  ;;  %v3180_v27 = vadd.f32 %v3179_v4, %v3178_v15  ;;  %v2109_v7 = vmul.f32 %v8052_v55, %v10182_v12  ;;  %v8076_v11 = vadd.f32 %v10124_v21, %v8035_v13  ;;  %v8079_v16 = vadd.f32 %v7946_v44, %v2098_v63 }
 0x2ab   : > { %v3121_v24 = vadd.f32 %v3120_v0, %v3119_v36  ;;  %v3173_v25 = vadd.f32 %v3172_v38, %v3171_v23  ;;  %1189 = vbcast.lane.b32.xlu1 %v1183_v29, 264  ;;  %1185 = vbcast.lane.b32.xlu0 %v1183_v29, 256  ;;  %v1260_v12 = vrot.slane %v7696_v14, %v6408_v28  ;;  %v10189_v0 = vld [vmem:[#allocation113_spill] sm:$0xff] }
 0x2ac   : > { %10183 = vst [vmem:[#allocation17_spill] sm:$0xff] %v8079_v16  ;;  %v3181_v23 = vrot.slane %v3180_v27, 2  ;;  %v8088_v15 = vadd.f32 %v7946_v44, %v2107_v57  ;;  %v8094_v63 = vadd.f32 %v10122_v17, %v8050_v58  ;;  %v8099_v29 = vpop.permute.xlu1 %848  ;;  %v8105_v57 = vadd.f32 %v7946_v44, %v2109_v7 }
 0x2ad   : > { %v8083_v36 = vsel %vm3449_vm4, %v3121_v24, %v7931_v43  ;;  %v8097_v43 = vadd.f32 %v7946_v44, %v2106_v10  ;;  %v3174_v4 = vrot.slane %v3173_v25, 1  ;;  %10186 = vst [vmem:[#allocation198_spill] sm:$0xff] %v8099_v29  ;;  %v8101_v8 = vpop.permute.xlu0 %844  ;;  %v2108_v38 = vmul.f32 %v8052_v55, %v10189_v0 }
 0x2ae   : > { %10184 = vst [vmem:[#allocation110_spill] sm:$0xff] %v8088_v15  ;;  %v3182_v24 = vadd.f32 %v3181_v23, %v3180_v27  ;;  %10187 = vst [vmem:[#allocation199_spill] sm:$0xff] %v8101_v8  ;;  %v2725_v58 = vmul.f32 %v10190_v35, %v8099_v29  ;;  %v10191_v10 = vmax.f32 %v7840_v47, 0.0  ;;  %v1194_v28 = vrot.slane %v7546_v20, %v6438_v41  ;;  %v10192_v47 = vld [vmem:[#allocation60_spill] sm:$0xff] }
 0x2af   : > { %10185 = vst [vmem:[#allocation19_spill] sm:$0xff] %v8097_v43  ;;  %10188 = vst [vmem:[#allocation200_spill] sm:$0xff] %v8105_v57  ;;  %1266 = vbcast.lane.b32.xlu1 %v1260_v12, 264  ;;  %1262 = vbcast.lane.b32.xlu0 %v1260_v12, 256  ;;  %v8120_v13 = vadd.f32 %v10124_v21, %v8079_v16  ;;  %v3175_v12 = vadd.f32 %v3174_v4, %v3173_v25  ;;  %v10195_v16 = vld [vmem:[#allocation62_spill] sm:$0xff]  ;;  %v10198_v25 = vmax.f32 %v7859_v1, 0.0 }
 0x2b0   : > { %v2724_v27 = vmul.f32 %v10191_v10, %v8101_v8  ;;  %v3183_v23 = vrot.slane %v3182_v24, 1  ;;  %v3015_v0 = vsel %vm2806_vm2, %v2725_v58, 0.0  ;;  %v8127_v10 = vadd.f32 %v10192_v47, %v8088_v15  ;;  %v8129_v20 = vpop.permute.xlu1 %925 }
 0x2b1   : > { %10193 = vst [vmem:[#allocation113_spill] sm:$0xff] %v8129_v20  ;;  %v8131_v7 = vpop.permute.xlu0 %921  ;;  %v8135_v5 = vadd.f32 %v10195_v16, %v8097_v43  ;;  %v8138_v58 = vadd.f32 %v7946_v44, %v2108_v38  ;;  %v2089_v51 = vmul.f32 %v8052_v55, %v10227_v49 }
 0x2b2   : > { %v3014_v61 = vsel %vm2806_vm2, %v2724_v27, 0.0  ;;  %v3184_v29 = vadd.f32 %v3183_v23, %v3182_v24  ;;  %10194 = vst [vmem:[#allocation60_spill] sm:$0xff] %v8131_v7  ;;  %v10197_v27 = vmax.f32 %v7844_v2, 0.0  ;;  %v2738_v4 = vmul.f32 %v10198_v25, %v8131_v7  ;;  %v10199_v23 = vld [vmem:[#allocation126_spill] sm:$0xff] }
 0x2b3   : > { %v3016_v8 = vadd.f32 %v3015_v0, %v3014_v61  ;;  %10196 = vst [vmem:[#allocation62_spill] sm:$0xff] %v8138_v58  ;;  %v8148_v24 = vadd.f32 %v10192_v47, %v8105_v57  ;;  %v2087_v0 = vmul.f32 %v8052_v55, %v10199_v23  ;;  %1200 = vbcast.lane.b32.xlu1 %v1194_v28, 264  ;;  %v10200_v57 = vld [vmem:[#allocation127_spill] sm:$0xff] }
 0x2b4   : > { %v2739_v35 = vmul.f32 %v10197_v27, %v8129_v20  ;;  %v8153_v61 = vsel %vm3447_vm3, %v3184_v29, %v3175_v12  ;;  %1196 = vbcast.lane.b32.xlu0 %v1194_v28, 256  ;;  %v1271_v2 = vrot.slane %v7696_v14, %v6422_v34  ;;  %v3077_v1 = vsel %vm2806_vm2, %v2738_v4, 0.0  ;;  %v8163_v12 = vpop.permute.xlu1 %980 }
 0x2b5   : > { %v3017_v38 = vrot.slane %v3016_v8, 4  ;;  %v2086_v23 = vmul.f32 %v8052_v55, %v10200_v57  ;;  %10201 = vst [vmem:[#allocation126_spill] sm:$0xff] %v8163_v12  ;;  %v8165_v20 = vpop.permute.xlu0 %976  ;;  %v10203_v34 = vmax.f32 %v7863_v33, 0.0  ;;  %v10204_v4 = vmax.f32 %v7887_v54, 0.0 }
 0x2b6   : > { %v3078_v27 = vsel %vm2806_vm2, %v2739_v35, 0.0  ;;  %10202 = vst [vmem:[#allocation127_spill] sm:$0xff] %v8165_v20  ;;  %v8180_v57 = vadd.f32 %v7946_v44, %v2087_v0  ;;  %v1282_v33 = vrot.slane %v7696_v14, %v6438_v41  ;;  %v10211_v41 = vld [vmem:[#allocation130_spill] sm:$0xff] }
 0x2b7   : > { %v3018_v15 = vadd.f32 %v3017_v38, %v3016_v8  ;;  %v3079_v29 = vadd.f32 %v3078_v27, %v3077_v1  ;;  %v2749_v35 = vmul.f32 %v10203_v34, %v8163_v12  ;;  %v2748_v25 = vmul.f32 %v10204_v4, %v8165_v20  ;;  %1277 = vbcast.lane.b32.xlu1 %v1271_v2, 264  ;;  %v10206_v1 = vld [vmem:[#allocation128_spill] sm:$0xff]  ;;  %v10207_v34 = vld [vmem:[#allocation129_spill] sm:$0xff] }
 0x2b8   : > { %v8177_v8 = vadd.f32 %v10195_v16, %v8138_v58  ;;  %10205 = vst [vmem:[#allocation201_spill] sm:$0xff] %v8180_v57  ;;  %1273 = vbcast.lane.b32.xlu0 %v1271_v2, 256  ;;  %v2101_v54 = vmul.f32 %v8052_v55, %v10206_v1  ;;  %v2100_v4 = vmul.f32 %v8052_v55, %v10207_v34  ;;  %v8193_v2 = vpop.permute.xlu1 %1057  ;;  %v10212_v1 = vld [vmem:[#allocation131_spill] sm:$0xff] }
 0x2b9   : > { %v3019_v38 = vrot.slane %v3018_v15, 2  ;;  %v3080_v27 = vrot.slane %v3079_v29, 4  ;;  %v3123_v43 = vsel %vm2806_vm2, %v2749_v35, 0.0  ;;  %v3122_v28 = vsel %vm2806_vm2, %v2748_v25, 0.0  ;;  %10209 = vst [vmem:[#allocation129_spill] sm:$0xff] %v8193_v2  ;;  %v8195_v7 = vpop.permute.xlu0 %1053 }
 0x2ba   : > { %v8191_v0 = vadd.f32 %v7946_v44, %v2086_v23  ;;  %v3124_v20 = vadd.f32 %v3123_v43, %v3122_v28  ;;  %10210 = vst [vmem:[#allocation202_spill] sm:$0xff] %v8195_v7  ;;  %v2111_v14 = vmul.f32 %v8052_v55, %v10211_v41  ;;  %v2110_v34 = vmul.f32 %v8052_v55, %v10212_v1 }
 0x2bb   : > { %v3020_v58 = vadd.f32 %v3019_v38, %v3018_v15  ;;  %v3081_v12 = vadd.f32 %v3080_v27, %v3079_v29  ;;  %v10213_v35 = vmax.f32 %v7904_v60, 0.0  ;;  %v10214_v23 = vmax.f32 %v7913_v32, 0.0  ;;  %1288 = vbcast.lane.b32.xlu1 %v1282_v33, 264 }
 0x2bc   : > { %10208 = vst [vmem:[#allocation128_spill] sm:$0xff] %v8191_v0  ;;  %v3125_v28 = vrot.slane %v3124_v20, 4  ;;  %1284 = vbcast.lane.b32.xlu0 %v1282_v33, 256  ;;  %v8209_v38 = vadd.f32 %v10122_v17, %v8180_v57  ;;  %v8212_v27 = vadd.f32 %v7946_v44, %v2101_v54  ;;  %v8215_v41 = vadd.f32 %v7946_v44, %v2100_v4 }
 0x2bd   : > { %v2763_v25 = vmul.f32 %v10213_v35, %v8193_v2  ;;  %v2762_v15 = vmul.f32 %v10214_v23, %v8195_v7  ;;  %v3021_v29 = vrot.slane %v3020_v58, 1  ;;  %v3082_v43 = vrot.slane %v3081_v12, 2  ;;  %v8219_v7 = vpop.permute.xlu1 %1914  ;;  %v8221_v33 = vpop.permute.xlu0 %1910 }
 0x2be   : > { %10215 = vst [vmem:[#allocation130_spill] sm:$0xff] %v8212_v27  ;;  %10216 = vst [vmem:[#allocation131_spill] sm:$0xff] %v8215_v41  ;;  %v3126_v23 = vadd.f32 %v3125_v28, %v3124_v20  ;;  %v8224_v57 = vadd.f32 %v7946_v44, %v2111_v14  ;;  %v8227_v54 = vadd.f32 %v7946_v44, %v2110_v34 }
 0x2bf   : > { %v3186_v60 = vsel %vm2806_vm2, %v2763_v25, 0.0  ;;  %v3185_v32 = vsel %vm2806_vm2, %v2762_v15, 0.0  ;;  %v3022_v1 = vadd.f32 %v3021_v29, %v3020_v58  ;;  %v3083_v35 = vadd.f32 %v3082_v43, %v3081_v12  ;;  %10217 = vst [vmem:[#allocation203_spill] sm:$0xff] %v8221_v33  ;;  %v10220_v29 = vld [vmem:[#allocation25_spill] sm:$0xff] }
 0x2c0   : > { %v3187_v2 = vadd.f32 %v3186_v60, %v3185_v32  ;;  %10218 = vst [vmem:[#allocation204_spill] sm:$0xff] %v8224_v57  ;;  %10219 = vst [vmem:[#allocation205_spill] sm:$0xff] %v8227_v54  ;;  %v8232_v25 = vadd.f32 %v10124_v21, %v8191_v0  ;;  %v3127_v12 = vrot.slane %v3126_v23, 2  ;;  %v2123_v43 = vmul.f32 %v8052_v55, %v10220_v29 }
 0x2c1   : > { %v3084_v58 = vrot.slane %v3083_v35, 1  ;;  %v3474_v15 = vsel %vm3459_vm9, %v3022_v1, %v8021_v42  ;;  %v8241_v34 = vadd.f32 %v10122_v17, %v8212_v27  ;;  %v8245_v28 = vadd.f32 %v10124_v21, %v8215_v41  ;;  %v8247_v0 = vpop.permute.xlu1 %1991  ;;  %v8249_v50 = vpop.permute.xlu0 %1987  ;;  %v10223_v1 = vld [vmem:[#allocation26_spill] sm:$0xff]  ;;  %v10226_v27 = vld [vmem:[#allocation133_spill] sm:$0xff] }
 0x2c2   : > { %v3188_v20 = vrot.slane %v3187_v2, 4  ;;  %v3520_v14 = vadd.f32 %v3474_v15, %v6692_v52  ;;  %v3128_v32 = vadd.f32 %v3127_v12, %v3126_v23  ;;  %10221 = vst [vmem:[#allocation25_spill] sm:$0xff] %v8247_v0  ;;  %10222 = vst [vmem:[#allocation206_spill] sm:$0xff] %v8249_v50  ;;  %v2122_v52 = vmul.f32 %v8052_v55, %v10223_v1  ;;  %v3675_v23 = vld [vmem:[#allocation11 + $0x8] sm:$0xff]  ;;  %v10225_v15 = vld [vmem:[#allocation29_spill] sm:$0xff] }
 0x2c3   : > { %v3085_v60 = vadd.f32 %v3084_v58, %v3083_v35  ;;  %v8258_v29 = vadd.f32 %v10192_v47, %v8224_v57  ;;  %v3674_v35 = vld [vmem:[#allocation11] sm:$0xff]  ;;  %v2125_v42 = vmul.f32 %v8052_v55, %v10225_v15  ;;  %v2124_v41 = vmul.f32 %v8052_v55, %v10226_v27 }
 0x2c4   : > { %v3189_v4 = vadd.f32 %v3188_v20, %v3187_v2  ;;  %5590 = vmatprep.mubr.msk.f32.mxu1 %vm2806_vm2, %v3520_v14  ;;  %v8262_v2 = vadd.f32 %v10195_v16, %v8227_v54  ;;  %v3129_v58 = vrot.slane %v3128_v32, 1  ;;  %v5667_v1 = vpack.c.bf16 %v3675_v23, %v3674_v35 }
 0x2c5   : > { %v8266_v20 = vsel %vm3457_vm8, %v3085_v60, %v8047_v59  ;;  %v8269_v14 = vadd.f32 %v7946_v44, %v2123_v43  ;;  %v8279_v60 = vpop.permute.xlu1 %936  ;;  %v8281_v35 = vpop.permute.xlu0 %932  ;;  %v8284_v43 = vadd.f32 %v7946_v44, %v2122_v52  ;;  %v10231_v15 = vmax.f32 %v7937_v26, 0.0 }
 0x2c6   : > { %v3190_v12 = vrot.slane %v3189_v4, 2  ;;  %v3130_v50 = vadd.f32 %v3129_v58, %v3128_v32  ;;  %10228 = vst [vmem:[#allocation29_spill] sm:$0xff] %v8279_v60  ;;  %10229 = vst [vmem:[#allocation133_spill] sm:$0xff] %v8281_v35  ;;  %5668 = vmatprep.subr.bf16.mxu0 %v5667_v1  ;;  %v10232_v27 = vmax.f32 %v7944_v37, 0.0  ;;  %v8301_v26 = vadd.f32 %v7946_v44, %v2125_v42  ;;  %v10240_v42 = vld [vmem:[#allocation147_spill] sm:$0xff] }
 0x2c7   : > { %10224 = vst [vmem:[#allocation26_spill] sm:$0xff] %v8269_v14  ;;  %10230 = vst [vmem:[#allocation144_spill] sm:$0xff] %v8284_v43  ;;  %v2741_v23 = vmul.f32 %v10231_v15, %v8279_v60  ;;  %5670 = vmatpush3.bf16.msra.mxu0 %v5667_v1  ;;  %v10235_v15 = vld [vmem:[#allocation146_spill] sm:$0xff]  ;;  %v8308_v49 = vadd.f32 %v7946_v44, %v2124_v41  ;;  %v2102_v60 = vmul.f32 %v8052_v55, %v10240_v42 }
 0x2c8   : > { %v3191_v59 = vadd.f32 %v3190_v12, %v3189_v4  ;;  %v2740_v54 = vmul.f32 %v10232_v27, %v8281_v35  ;;  %v10233_v4 = vld [vmem:[#allocation145_spill] sm:$0xff]  ;;  %v8297_v58 = vsel %vm3451_vm5, %v3130_v50, %v8083_v36  ;;  %v2103_v37 = vmul.f32 %v8052_v55, %v10235_v15 }
 0x2c9   : > { %v2088_v32 = vmul.f32 %v8052_v55, %v10233_v4  ;;  %10234 = vst [vmem:[#allocation145_spill] sm:$0xff] %v8301_v26  ;;  %v3087_v27 = vsel %vm2806_vm2, %v2741_v23, 0.0  ;;  %10236 = vst [vmem:[#allocation146_spill] sm:$0xff] %v8308_v49  ;;  %v8311_v4 = vadd.f32 %v7946_v44, %v2089_v51  ;;  %v8313_v57 = vpop.permute.xlu1 %991  ;;  %v8315_v12 = vpop.permute.xlu0 %987  ;;  %v10241_v23 = vmax.f32 %v7981_v22, 0.0 }
 0x2ca   : > { %v3192_v52 = vrot.slane %v3191_v59, 1  ;;  %v3086_v1 = vsel %vm2806_vm2, %v2740_v54, 0.0  ;;  %10238 = vst [vmem:[#allocation208_spill] sm:$0xff] %v8313_v57  ;;  %10239 = vst [vmem:[#allocation209_spill] sm:$0xff] %v8315_v12  ;;  %v10242_v41 = vmax.f32 %v7994_v45, 0.0  ;;  %v8327_v51 = vadd.f32 %v10192_v47, %v8269_v14 }
 0x2cb   : > { %10237 = vst [vmem:[#allocation207_spill] sm:$0xff] %v8311_v4  ;;  %v3088_v36 = vadd.f32 %v3087_v27, %v3086_v1  ;;  %v2751_v15 = vmul.f32 %v10241_v23, %v8313_v57  ;;  %v8338_v22 = vadd.f32 %v10195_v16, %v8284_v43  ;;  %v8341_v1 = vadd.f32 %v7946_v44, %v2103_v37 }
 0x2cc   : > { %v3193_v50 = vadd.f32 %v3192_v52, %v3191_v59  ;;  %v2750_v54 = vmul.f32 %v10242_v41, %v8315_v12  ;;  %v8330_v59 = vadd.f32 %v7946_v44, %v2088_v32  ;;  %v8347_v32 = vadd.f32 %v10192_v47, %v8301_v26 }
 0x2cd   : > { %v3089_v27 = vrot.slane %v3088_v36, 4  ;;  %10244 = vst [vmem:[#allocation210_spill] sm:$0xff] %v8341_v1  ;;  %v3132_v45 = vsel %vm2806_vm2, %v2751_v15, 0.0  ;;  %v8355_v14 = vadd.f32 %v10195_v16, %v8308_v49  ;;  %v8359_v37 = vadd.f32 %v10122_v17, %v8311_v4  ;;  %v3676_v15 = vld [vmem:[#allocation11 + $0x10] sm:$0xff]  ;;  %v10250_v49 = vld [vmem:[#allocation33_spill] sm:$0xff] }
 0x2ce   : > { %10243 = vst [vmem:[#allocation147_spill] sm:$0xff] %v8330_v59  ;;  %v8334_v52 = vsel %vm3449_vm4, %v3193_v50, %v8153_v61  ;;  %v3131_v42 = vsel %vm2806_vm2, %v2750_v54, 0.0  ;;  %v8349_v61 = vpop.permute.xlu1 %1068  ;;  %v8351_v50 = vpop.permute.xlu0 %1064  ;;  %v3677_v54 = vld [vmem:[#allocation11 + $0x18] sm:$0xff]  ;;  %v8362_v43 = vadd.f32 %v7946_v44, %v2102_v60  ;;  %v2113_v57 = vmul.f32 %v8052_v55, %v10250_v49  ;;  %v10251_v60 = vld [vmem:[#allocation34_spill] sm:$0xff] }
 0x2cf   : > { %v3090_v23 = vadd.f32 %v3089_v27, %v3088_v36  ;;  %v3133_v41 = vadd.f32 %v3132_v45, %v3131_v42  ;;  %10245 = vst [vmem:[#allocation211_spill] sm:$0xff] %v8349_v61  ;;  %10246 = vst [vmem:[#allocation212_spill] sm:$0xff] %v8351_v50  ;;  %v10248_v36 = vmax.f32 %v8043_v39, 0.0  ;;  %v10249_v45 = vmax.f32 %v8058_v40, 0.0 }
 0x2d0   : > { %10247 = vst [vmem:[#allocation213_spill] sm:$0xff] %v8362_v43  ;;  %v5671_v26 = vpack.c.bf16 %v3677_v54, %v3676_v15  ;;  %v8374_v35 = vadd.f32 %v10124_v21, %v8330_v59  ;;  %v2112_v0 = vmul.f32 %v8052_v55, %v10251_v60  ;;  %v8382_v40 = vadd.f32 %v10122_v17, %v8341_v1 }
 0x2d1   : > { %v2765_v27 = vmul.f32 %v10248_v36, %v8349_v61  ;;  %v2764_v42 = vmul.f32 %v10249_v45, %v8351_v50  ;;  %v3091_v12 = vrot.slane %v3090_v23, 2  ;;  %v3134_v4 = vrot.slane %v3133_v41, 4 }
 0x2d2   : > { %5672 = vmatprep.subr.bf16.mxu0 %v5671_v26  ;;  %v8384_v45 = vpop.permute.xlu1 %2002  ;;  %v8386_v61 = vpop.permute.xlu0 %1998  ;;  %v8394_v1 = vadd.f32 %v10124_v21, %v8362_v43 }
 0x2d3   : > { %v3195_v39 = vsel %vm2806_vm2, %v2765_v27, 0.0  ;;  %v3194_v36 = vsel %vm2806_vm2, %v2764_v42, 0.0  ;;  %v3092_v15 = vadd.f32 %v3091_v12, %v3090_v23  ;;  %v3135_v49 = vadd.f32 %v3134_v4, %v3133_v41  ;;  %10252 = vst [vmem:[#allocation33_spill] sm:$0xff] %v8384_v45  ;;  %10253 = vst [vmem:[#allocation34_spill] sm:$0xff] %v8386_v61  ;;  %5674 = vmatpush3.bf16.msra.mxu0 %v5671_v26  ;;  %v10256_v42 = vld [vmem:[#allocation37_spill] sm:$0xff]  ;;  %v10257_v45 = vld [vmem:[#allocation38_spill] sm:$0xff] }
 0x2d4   : > { %v3196_v54 = vadd.f32 %v3195_v39, %v3194_v36  ;;  %v8397_v12 = vadd.f32 %v7946_v44, %v2113_v57  ;;  %v8400_v39 = vadd.f32 %v7946_v44, %v2112_v0  ;;  %v2127_v60 = vmul.f32 %v8052_v55, %v10256_v42 }
 0x2d5   : > { %v3093_v4 = vrot.slane %v3092_v15, 1  ;;  %v3136_v23 = vrot.slane %v3135_v49, 2  ;;  %v2126_v0 = vmul.f32 %v8052_v55, %v10257_v45  ;;  %v10258_v26 = vmax.f32 %v8062_v62, 0.0 }
 0x2d6   : > { %10254 = vst [vmem:[#allocation214_spill] sm:$0xff] %v8397_v12  ;;  %v3197_v41 = vrot.slane %v3196_v54, 4  ;;  %10255 = vst [vmem:[#allocation215_spill] sm:$0xff] %v8400_v39  ;;  %v8407_v57 = vpop.permute.xlu1 %1002  ;;  %v8409_v61 = vpop.permute.xlu0 %998  ;;  %v10259_v27 = vmax.f32 %v8076_v11, 0.0  ;;  %v8431_v11 = vadd.f32 %v10195_v16, %v8400_v39 }
 0x2d7   : > { %v3094_v50 = vadd.f32 %v3093_v4, %v3092_v15  ;;  %v3137_v43 = vadd.f32 %v3136_v23, %v3135_v49  ;;  %v2753_v33 = vmul.f32 %v10258_v26, %v8407_v57  ;;  %v8424_v4 = vadd.f32 %v10192_v47, %v8397_v12 }
 0x2d8   : > { %v3198_v59 = vadd.f32 %v3197_v41, %v3196_v54  ;;  %v2752_v36 = vmul.f32 %v10259_v27, %v8409_v61  ;;  %v8434_v27 = vadd.f32 %v7946_v44, %v2127_v60  ;;  %v10265_v60 = vmax.f32 %v8120_v13, 0.0 }
 0x2d9   : > { %v3138_v15 = vrot.slane %v3137_v43, 1  ;;  %v3481_v54 = vsel %vm3459_vm9, %v3094_v50, %v8266_v20  ;;  %v3141_v45 = vsel %vm2806_vm2, %v2753_v33, 0.0  ;;  %v8441_v33 = vadd.f32 %v7946_v44, %v2126_v0 }
 0x2da   : > { %v3199_v49 = vrot.slane %v3198_v59, 2  ;;  %v3140_v62 = vsel %vm2806_vm2, %v2752_v36, 0.0  ;;  %v3521_v23 = vadd.f32 %v3481_v54, %v6686_v53  ;;  %10260 = vst [vmem:[#allocation37_spill] sm:$0xff] %v8434_v27  ;;  %v8436_v50 = vpop.permute.xlu1 %1079  ;;  %v8438_v42 = vpop.permute.xlu0 %1075  ;;  %v2105_v53 = vmul.f32 %v8052_v55, %v7604_v46 }
 0x2db   : > { %v3139_v41 = vadd.f32 %v3138_v15, %v3137_v43  ;;  %v3142_v20 = vadd.f32 %v3141_v45, %v3140_v62  ;;  %10261 = vst [vmem:[#allocation38_spill] sm:$0xff] %v8436_v50  ;;  %10262 = vst [vmem:[#allocation216_spill] sm:$0xff] %v8438_v42  ;;  %v10264_v36 = vmax.f32 %v8094_v63, 0.0  ;;  %v2766_v43 = vmul.f32 %v10265_v60, %v8438_v42 }
 0x2dc   : > { %v3200_v26 = vadd.f32 %v3199_v49, %v3198_v59  ;;  %10263 = vst [vmem:[#allocation217_spill] sm:$0xff] %v8441_v33  ;;  %5591 = vmatmul.mubr.msk.f32.gmra.mrb[6].mxu1 %vm2806_vm2, %v3521_v23  ;;  %v10266_v59 = vld [vmem:[#allocation67_spill] sm:$0xff] }
 0x2dd   : > { %v2767_v54 = vmul.f32 %v10264_v36, %v8436_v50  ;;  %v2104_v15 = vmul.f32 %v8052_v55, %v10266_v59  ;;  %v3143_v45 = vrot.slane %v3142_v20, 4  ;;  %v3485_v0 = vsel %vm3453_vm6, %v3139_v41, %v8297_v58 }
 0x2de   : > { %v3201_v49 = vrot.slane %v3200_v26, 1  ;;  %v3203_v62 = vsel %vm2806_vm2, %v2766_v43, 0.0  ;;  %v8460_v23 = vpop.permute.xlu1 %1123  ;;  %v8462_v39 = vpop.permute.xlu0 %1119  ;;  %v8466_v59 = vadd.f32 %v10192_v47, %v8434_v27  ;;  %v8469_v58 = vadd.f32 %v7946_v44, %v2105_v53 }
 0x2df   : > { %v3204_v46 = vsel %vm2806_vm2, %v2767_v54, 0.0  ;;  %v3144_v60 = vadd.f32 %v3143_v45, %v3142_v20  ;;  %10267 = vst [vmem:[#allocation67_spill] sm:$0xff] %v8460_v23  ;;  %10268 = vst [vmem:[#allocation218_spill] sm:$0xff] %v8462_v39  ;;  %v10270_v41 = vmax.f32 %v8127_v10, 0.0  ;;  %v8479_v43 = vadd.f32 %v10195_v16, %v8441_v33 }
 0x2e0   : > { %v3202_v13 = vadd.f32 %v3201_v49, %v3200_v26  ;;  %v3205_v12 = vadd.f32 %v3204_v46, %v3203_v62  ;;  %10269 = vst [vmem:[#allocation219_spill] sm:$0xff] %v8469_v58  ;;  %v10271_v26 = vmax.f32 %v8135_v5, 0.0  ;;  %v8482_v49 = vadd.f32 %v7946_v44, %v2104_v15  ;;  %v10272_v62 = vld [vmem:[#allocation169_spill] sm:$0xff] }
 0x2e1   : > { %v2775_v54 = vmul.f32 %v10270_v41, %v8460_v23  ;;  %v3145_v53 = vrot.slane %v3144_v60, 2  ;;  %v2115_v10 = vmul.f32 %v8052_v55, %v10272_v62  ;;  %v10273_v41 = vld [vmem:[#allocation170_spill] sm:$0xff]  ;;  %v2129_v50 = vmul.f32 %v8052_v55, %v7662_v6 }
 0x2e2   : > { %v2774_v20 = vmul.f32 %v10271_v26, %v8462_v39  ;;  %v3491_v45 = vsel %vm3451_vm5, %v3202_v13, %v8334_v52  ;;  %v3206_v46 = vrot.slane %v3205_v12, 4  ;;  %v2114_v36 = vmul.f32 %v8052_v55, %v10273_v41  ;;  %v8492_v15 = vpop.permute.xlu1 %1134  ;;  %v8494_v23 = vpop.permute.xlu0 %1130 }
 0x2e3   : > { %v3240_v5 = vsel %vm2806_vm2, %v2775_v54, 0.0  ;;  %v3146_v63 = vadd.f32 %v3145_v53, %v3144_v60  ;;  %10274 = vst [vmem:[#allocation169_spill] sm:$0xff] %v8492_v15  ;;  %10275 = vst [vmem:[#allocation170_spill] sm:$0xff] %v8494_v23  ;;  %v10276_v13 = vmax.f32 %v8148_v24, 0.0  ;;  %v10277_v41 = vmax.f32 %v8177_v8, 0.0 }
 0x2e4   : > { %v3239_v26 = vsel %vm2806_vm2, %v2774_v20, 0.0  ;;  %v3207_v27 = vadd.f32 %v3206_v46, %v3205_v12  ;;  %v8506_v12 = vadd.f32 %v10122_v17, %v8469_v58  ;;  %v8510_v46 = vadd.f32 %v10124_v21, %v8482_v49 }
 0x2e5   : > { %v3241_v33 = vadd.f32 %v3240_v5, %v3239_v26  ;;  %v2777_v62 = vmul.f32 %v10276_v13, %v8492_v15  ;;  %v2776_v39 = vmul.f32 %v10277_v41, %v8494_v23  ;;  %v3147_v60 = vrot.slane %v3146_v63, 1 }
 0x2e6   : > { %v3208_v20 = vrot.slane %v3207_v27, 2  ;;  %v8513_v24 = vadd.f32 %v7946_v44, %v2115_v10  ;;  %v8516_v5 = vadd.f32 %v7946_v44, %v2114_v36  ;;  %v8520_v15 = vpop.permute.xlu1 %1013  ;;  %v8522_v23 = vpop.permute.xlu0 %1009  ;;  %v10280_v10 = vld [vmem:[#allocation71_spill] sm:$0xff]  ;;  %v10281_v36 = vmax.f32 %v8209_v38, 0.0 }
 0x2e7   : > { %v3242_v53 = vrot.slane %v3241_v33, 4  ;;  %v3249_v8 = vsel %vm2806_vm2, %v2777_v62, 0.0  ;;  %v3248_v26 = vsel %vm2806_vm2, %v2776_v39, 0.0  ;;  %v3148_v13 = vadd.f32 %v3147_v60, %v3146_v63 }
 0x2e8   : > { %10278 = vst [vmem:[#allocation220_spill] sm:$0xff] %v8513_v24  ;;  %10279 = vst [vmem:[#allocation221_spill] sm:$0xff] %v8516_v5  ;;  %v3209_v41 = vadd.f32 %v3208_v20, %v3207_v27  ;;  %v3250_v52 = vadd.f32 %v3249_v8, %v3248_v26  ;;  %v2128_v42 = vmul.f32 %v8052_v55, %v10280_v10  ;;  %v10282_v39 = vmax.f32 %v8232_v25, 0.0 }
 0x2e9   : > { %v3243_v54 = vadd.f32 %v3242_v53, %v3241_v33  ;;  %v2755_v62 = vmul.f32 %v10281_v36, %v8520_v15  ;;  %v8535_v20 = vsel %vm3455_vm7, %v3148_v13, %v3485_v0  ;;  %v8542_v38 = vadd.f32 %v10192_v47, %v8513_v24 }
 0x2ea   : > { %v2754_v27 = vmul.f32 %v10282_v39, %v8522_v23  ;;  %v3210_v33 = vrot.slane %v3209_v41, 1  ;;  %v3251_v60 = vrot.slane %v3250_v52, 4  ;;  %v8544_v39 = vpop.permute.xlu1 %1090  ;;  %v8546_v58 = vpop.permute.xlu0 %1086  ;;  %v8549_v0 = vadd.f32 %v7946_v44, %v2129_v50 }
 0x2eb   : > { %v3244_v63 = vrot.slane %v3243_v54, 2  ;;  %v3150_v53 = vsel %vm2806_vm2, %v2755_v62, 0.0  ;;  %v8552_v13 = vadd.f32 %v7946_v44, %v2128_v42  ;;  %v10285_v62 = vmax.f32 %v8241_v34, 0.0 }
 0x2ec   : > { %v3149_v6 = vsel %vm2806_vm2, %v2754_v27, 0.0  ;;  %v3211_v26 = vadd.f32 %v3210_v33, %v3209_v41  ;;  %v3252_v25 = vadd.f32 %v3251_v60, %v3250_v52  ;;  %10283 = vst [vmem:[#allocation71_spill] sm:$0xff] %v8549_v0  ;;  %v10286_v41 = vmax.f32 %v8245_v28, 0.0 }
 0x2ed   : > { %v3245_v10 = vadd.f32 %v3244_v63, %v3243_v54  ;;  %v3151_v36 = vadd.f32 %v3150_v53, %v3149_v6  ;;  %10284 = vst [vmem:[#allocation222_spill] sm:$0xff] %v8552_v13  ;;  %v2769_v27 = vmul.f32 %v10285_v62, %v8544_v39  ;;  %v8562_v63 = vadd.f32 %v10195_v16, %v8516_v5 }
 0x2ee   : > { %v2768_v54 = vmul.f32 %v10286_v41, %v8546_v58  ;;  %v3253_v52 = vrot.slane %v3252_v25, 2  ;;  %v8565_v50 = vsel %vm3453_vm6, %v3211_v26, %v3491_v45  ;;  %v8570_v41 = vpop.permute.xlu1 %1145  ;;  %v8572_v8 = vpop.permute.xlu0 %1141  ;;  %v10289_v45 = vmax.f32 %v8258_v29, 0.0 }
 0x2ef   : > { %v3152_v33 = vrot.slane %v3151_v36, 4  ;;  %v3246_v60 = vrot.slane %v3245_v10, 1  ;;  %v3213_v42 = vsel %vm2806_vm2, %v2769_v27, 0.0  ;;  %10287 = vst [vmem:[#allocation223_spill] sm:$0xff] %v8570_v41  ;;  %10288 = vst [vmem:[#allocation224_spill] sm:$0xff] %v8572_v8  ;;  %v10290_v27 = vmax.f32 %v8262_v2, 0.0 }
 0x2f0   : > { %v3212_v53 = vsel %vm2806_vm2, %v2768_v54, 0.0  ;;  %v3254_v6 = vadd.f32 %v3253_v52, %v3252_v25  ;;  %v2779_v26 = vmul.f32 %v10289_v45, %v8570_v41  ;;  %v8583_v54 = vadd.f32 %v10192_v47, %v8549_v0 }
 0x2f1   : > { %v3153_v62 = vadd.f32 %v3152_v33, %v3151_v36  ;;  %v3214_v28 = vadd.f32 %v3213_v42, %v3212_v53  ;;  %v2778_v5 = vmul.f32 %v10290_v27, %v8572_v8  ;;  %v8587_v25 = vadd.f32 %v10195_v16, %v8552_v13 }
 0x2f2   : > { %v3255_v36 = vrot.slane %v3254_v6, 1  ;;  %v2117_v29 = vmul.f32 %v8052_v55, %v7814_v56  ;;  %v3247_v53 = vadd.f32 %v3246_v60, %v3245_v10  ;;  %v3258_v2 = vsel %vm2806_vm2, %v2779_v26, 0.0  ;;  %v8594_v41 = vpop.permute.xlu1 %1211  ;;  %v8596_v13 = vpop.permute.xlu0 %1207 }
 0x2f3   : > { %v3154_v52 = vrot.slane %v3153_v62, 2  ;;  %v3215_v33 = vrot.slane %v3214_v28, 4  ;;  %v3257_v45 = vsel %vm2806_vm2, %v2778_v5, 0.0  ;;  %10291 = vst [vmem:[#allocation225_spill] sm:$0xff] %v8594_v41  ;;  %10292 = vst [vmem:[#allocation226_spill] sm:$0xff] %v8596_v13  ;;  %v10293_v8 = vmax.f32 %v8327_v51, 0.0 }
 0x2f4   : > { %v3256_v27 = vadd.f32 %v3255_v36, %v3254_v6  ;;  %v3259_v0 = vadd.f32 %v3258_v2, %v3257_v45  ;;  %v10294_v56 = vmax.f32 %v8338_v22, 0.0  ;;  %v8608_v36 = vadd.f32 %v7946_v44, %v2117_v29 }
 0x2f5   : > { %v3155_v24 = vadd.f32 %v3154_v52, %v3153_v62  ;;  %v3216_v34 = vadd.f32 %v3215_v33, %v3214_v28  ;;  %v2791_v42 = vmul.f32 %v10293_v8, %v8594_v41  ;;  %v2116_v51 = vmul.f32 %v8052_v55, %v7816_v3 }
 0x2f6   : > { %v2790_v10 = vmul.f32 %v10294_v56, %v8596_v13  ;;  %v3496_v6 = vsel %vm3447_vm3, %v3256_v27, %v3247_v53  ;;  %v3260_v26 = vrot.slane %v3259_v0, 4  ;;  %v8614_v56 = vpop.permute.xlu1 %1222  ;;  %v8616_v53 = vpop.permute.xlu0 %1218  ;;  %v2131_v27 = vmul.f32 %v8052_v55, %v7849_v48 }
 0x2f7   : > { %v3156_v62 = vrot.slane %v3155_v24, 1  ;;  %v3217_v28 = vrot.slane %v3216_v34, 2  ;;  %v3312_v8 = vsel %vm2806_vm2, %v2791_v42, 0.0  ;;  %10295 = vst [vmem:[#allocation227_spill] sm:$0xff] %v8614_v56  ;;  %10296 = vst [vmem:[#allocation228_spill] sm:$0xff] %v8616_v53  ;;  %v2130_v29 = vmul.f32 %v8052_v55, %v7851_v19 }
 0x2f8   : > { %v3311_v22 = vsel %vm2806_vm2, %v2790_v10, 0.0  ;;  %v3261_v2 = vadd.f32 %v3260_v26, %v3259_v0  ;;  %v10297_v3 = vmax.f32 %v8347_v32, 0.0  ;;  %v8633_v48 = vadd.f32 %v7946_v44, %v2116_v51 }
 0x2f9   : > { %v3157_v52 = vadd.f32 %v3156_v62, %v3155_v24  ;;  %v3218_v33 = vadd.f32 %v3217_v28, %v3216_v34  ;;  %v3313_v45 = vadd.f32 %v3312_v8, %v3311_v22  ;;  %v10298_v24 = vmax.f32 %v8355_v14, 0.0 }
 0x2fa   : > { %v2793_v42 = vmul.f32 %v10297_v3, %v8614_v56  ;;  %v3262_v10 = vrot.slane %v3261_v2, 2  ;;  %v8639_v32 = vadd.f32 %v10192_v47, %v8608_v36  ;;  %v8643_v5 = vpop.permute.xlu0 %1020  ;;  %v8649_v51 = vadd.f32 %v7946_v44, %v2130_v29 }
 0x2fb   : > { %v2792_v34 = vmul.f32 %v10298_v24, %v8616_v53  ;;  %v3219_v0 = vrot.slane %v3218_v33, 1  ;;  %v3314_v62 = vrot.slane %v3313_v45, 4  ;;  %v8630_v28 = vsel %vm3457_vm8, %v3157_v52, %v8535_v20  ;;  %v8641_v24 = vpop.permute.xlu1 %1024 }
 0x2fc   : > { %v3321_v19 = vsel %vm2806_vm2, %v2793_v42, 0.0  ;;  %v3263_v8 = vadd.f32 %v3262_v10, %v3261_v2  ;;  %v8646_v20 = vadd.f32 %v7946_v44, %v2131_v27  ;;  %10300 = vst [vmem:[#allocation230_spill] sm:$0xff] %v8649_v51  ;;  %v10301_v52 = vmax.f32 %v8359_v37, 0.0 }
 0x2fd   : > { %v3320_v26 = vsel %vm2806_vm2, %v2792_v34, 0.0  ;;  %v3220_v14 = vadd.f32 %v3219_v0, %v3218_v33  ;;  %v3315_v22 = vadd.f32 %v3314_v62, %v3313_v45  ;;  %v10302_v33 = vmax.f32 %v8374_v35, 0.0 }
 0x2fe   : > { %v3322_v3 = vadd.f32 %v3321_v19, %v3320_v26  ;;  %10299 = vst [vmem:[#allocation229_spill] sm:$0xff] %v8646_v20  ;;  %v2757_v42 = vmul.f32 %v10301_v52, %v8641_v24  ;;  %v3264_v45 = vrot.slane %v3263_v8, 1  ;;  %v8666_v37 = vadd.f32 %v10195_v16, %v8633_v48  ;;  %v8670_v60 = vpop.permute.xlu0 %1097 }
 0x2ff   : > { %v2756_v2 = vmul.f32 %v10302_v33, %v8643_v5  ;;  %v3316_v34 = vrot.slane %v3315_v22, 2  ;;  %v8659_v10 = vsel %vm3455_vm7, %v3220_v14, %v8565_v50  ;;  %v8668_v33 = vpop.permute.xlu1 %1101  ;;  %v10303_v50 = vmax.f32 %v8382_v40, 0.0 }
 0x300   : > { %v3323_v0 = vrot.slane %v3322_v3, 4  ;;  %v3159_v27 = vsel %vm2806_vm2, %v2757_v42, 0.0  ;;  %v3265_v19 = vadd.f32 %v3264_v45, %v3263_v8  ;;  %v10304_v42 = vmax.f32 %v8394_v1, 0.0 }
 0x301   : > { %v3158_v29 = vsel %vm2806_vm2, %v2756_v2, 0.0  ;;  %v3317_v35 = vadd.f32 %v3316_v34, %v3315_v22  ;;  %v2771_v14 = vmul.f32 %v10303_v50, %v8668_v33  ;;  %v8680_v62 = vadd.f32 %v10192_v47, %v8646_v20 }
 0x302   : > { %v3324_v26 = vadd.f32 %v3323_v0, %v3322_v3  ;;  %v3160_v52 = vadd.f32 %v3159_v27, %v3158_v29  ;;  %v2770_v2 = vmul.f32 %v10304_v42, %v8670_v60  ;;  %v8684_v8 = vadd.f32 %v10195_v16, %v8649_v51  ;;  %v8697_v53 = vpop.permute.xlu0 %1152 }
 0x303   : > { %v2119_v22 = vmul.f32 %v8052_v55, %v8030_v30  ;;  %v8689_v3 = vsel %vm3449_vm4, %v3265_v19, %v3496_v6  ;;  %v2118_v1 = vmul.f32 %v8052_v55, %v8032_v9  ;;  %v3318_v34 = vrot.slane %v3317_v35, 1  ;;  %v8695_v56 = vpop.permute.xlu1 %1156 }
 0x304   : > { %v3325_v40 = vrot.slane %v3324_v26, 2  ;;  %v3161_v45 = vrot.slane %v3160_v52, 4  ;;  %v3222_v0 = vsel %vm2806_vm2, %v2771_v14, 0.0  ;;  %v3221_v27 = vsel %vm2806_vm2, %v2770_v2, 0.0 }
 0x305   : > { %v3223_v42 = vadd.f32 %v3222_v0, %v3221_v27  ;;  %v10305_v6 = vmax.f32 %v8424_v4, 0.0  ;;  %v10306_v9 = vmax.f32 %v8431_v11, 0.0  ;;  %v8712_v0 = vadd.f32 %v7946_v44, %v2118_v1 }
 0x306   : > { %v3326_v29 = vadd.f32 %v3325_v40, %v3324_v26  ;;  %v3162_v50 = vadd.f32 %v3161_v45, %v3160_v52  ;;  %v8709_v52 = vadd.f32 %v7946_v44, %v2119_v22  ;;  %v3319_v27 = vadd.f32 %v3318_v34, %v3317_v35  ;;  %v8718_v26 = vpop.permute.xlu0 %1229 }
 0x307   : > { %v2781_v19 = vmul.f32 %v10305_v6, %v8695_v56  ;;  %v2780_v41 = vmul.f32 %v10306_v9, %v8697_v53  ;;  %v3224_v45 = vrot.slane %v3223_v42, 4  ;;  %v8716_v13 = vpop.permute.xlu1 %1233  ;;  %10308 = vst [vmem:[#allocation232_spill] sm:$0xff] %v8718_v26  ;;  %v2133_v22 = vmul.f32 %v8052_v55, %v8066_v31 }
 0x308   : > { %v3327_v2 = vrot.slane %v3326_v29, 1  ;;  %v3163_v40 = vrot.slane %v3162_v50, 2  ;;  %10307 = vst [vmem:[#allocation231_spill] sm:$0xff] %v8716_v13  ;;  %v2132_v44 = vmul.f32 %v8052_v55, %v8068_v18  ;;  %v10309_v35 = vmax.f32 %v8466_v59, 0.0 }
 0x309   : > { %v3267_v4 = vsel %vm2806_vm2, %v2781_v19, 0.0  ;;  %v3266_v6 = vsel %vm2806_vm2, %v2780_v41, 0.0  ;;  %v3225_v30 = vadd.f32 %v3224_v45, %v3223_v42  ;;  %v10310_v41 = vmax.f32 %v8479_v43, 0.0 }
 0x30a   : > { %v3328_v11 = vadd.f32 %v3327_v2, %v3326_v29  ;;  %v3164_v9 = vadd.f32 %v3163_v40, %v3162_v50  ;;  %v3268_v14 = vadd.f32 %v3267_v4, %v3266_v6  ;;  %v2795_v1 = vmul.f32 %v10309_v35, %v8716_v13  ;;  %v8745_v6 = vpop.permute.xlu0 %1108 }
 0x30b   : > { %v2794_v34 = vmul.f32 %v10310_v41, %v8718_v26  ;;  %v3226_v42 = vrot.slane %v3225_v30, 2  ;;  %v8737_v18 = vadd.f32 %v10192_v47, %v8709_v52  ;;  %v8741_v59 = vadd.f32 %v10195_v16, %v8712_v0  ;;  %v8743_v4 = vpop.permute.xlu1 %1112 }
 0x30c   : > { %v8731_v29 = vsel %vm3447_vm3, %v3328_v11, %v3319_v27  ;;  %v3165_v50 = vrot.slane %v3164_v9, 1  ;;  %v3269_v19 = vrot.slane %v3268_v14, 4  ;;  %v3330_v2 = vsel %vm2806_vm2, %v2795_v1, 0.0  ;;  %v8747_v11 = vld [vmem:[#allocation7] ss:$0 sm:$0xff] }
 0x30d   : > { %v3329_v31 = vsel %vm2806_vm2, %v2794_v34, 0.0  ;;  %v3227_v40 = vadd.f32 %v3226_v42, %v3225_v30  ;;  %v8750_v35 = vadd.f32 %v8747_v11, %v2133_v22  ;;  %v8753_v1 = vadd.f32 %v8747_v11, %v2132_v44 }
 0x30e   : > { %v3166_v43 = vadd.f32 %v3165_v50, %v3164_v9  ;;  %v3270_v45 = vadd.f32 %v3269_v19, %v3268_v14  ;;  %v3331_v27 = vadd.f32 %v3330_v2, %v3329_v31  ;;  %v10313_v41 = vmax.f32 %v8506_v12, 0.0 }
 0x30f   : > { %10311 = vst [vmem:[#allocation233_spill] sm:$0xff] %v8750_v35  ;;  %10312 = vst [vmem:[#allocation234_spill] sm:$0xff] %v8753_v1  ;;  %v10314_v30 = vmax.f32 %v8510_v46, 0.0  ;;  %v3228_v9 = vrot.slane %v3227_v40, 1  ;;  %v8767_v46 = vpop.permute.xlu1 %1167  ;;  %v10315_v20 = vmax.f32 %v8542_v38, 0.0  ;;  %v2121_v38 = vmul.f32 %v8052_v55, %v8219_v7 }
 0x310   : > { %v2773_v34 = vmul.f32 %v10313_v41, %v8743_v4  ;;  %v3271_v50 = vrot.slane %v3270_v45, 2  ;;  %v3332_v42 = vrot.slane %v3331_v27, 4  ;;  %v3488_v19 = vsel %vm3459_vm9, %v3166_v43, %v8630_v28 }
 0x311   : > { %v2772_v14 = vmul.f32 %v10314_v30, %v8745_v6  ;;  %v3522_v44 = vadd.f32 %v3488_v19, %v10124_v21  ;;  %v3229_v12 = vadd.f32 %v3228_v9, %v3227_v40  ;;  %v8769_v30 = vpop.permute.xlu0 %1163  ;;  %v2783_v28 = vmul.f32 %v10315_v20, %v8767_v46 }
 0x312   : > { %v3231_v22 = vsel %vm2806_vm2, %v2773_v34, 0.0  ;;  %v3272_v41 = vadd.f32 %v3271_v50, %v3270_v45  ;;  %v3333_v13 = vadd.f32 %v3332_v42, %v3331_v27  ;;  %v10316_v43 = vmax.f32 %v8562_v63, 0.0 }
 0x313   : > { %v3230_v2 = vsel %vm2806_vm2, %v2772_v14, 0.0  ;;  %5593 = vmatprep.mubr.msk.f32.mxu1 %vm2806_vm2, %v3522_v44  ;;  %v8781_v40 = vadd.f32 %v10192_v47, %v8750_v35  ;;  %v3494_v9 = vsel %vm3457_vm8, %v3229_v12, %v8659_v10  ;;  %v3276_v63 = vsel %vm2806_vm2, %v2783_v28, 0.0  ;;  %v8793_v44 = vpop.permute.xlu1 %1244  ;;  %v10319_v10 = vld [vmem:[#allocation203_spill] sm:$0xff] }
 0x314   : > { %v3232_v26 = vadd.f32 %v3231_v22, %v3230_v2  ;;  %v2782_v34 = vmul.f32 %v10316_v43, %v8769_v30  ;;  %v3273_v45 = vrot.slane %v3272_v41, 1  ;;  %v3334_v27 = vrot.slane %v3333_v13, 2  ;;  %10317 = vst [vmem:[#allocation235_spill] sm:$0xff] %v8793_v44 }
 0x315   : > { %v8791_v50 = vadd.f32 %v10195_v16, %v8753_v1  ;;  %v8795_v43 = vpop.permute.xlu0 %1240  ;;  %v2120_v12 = vmul.f32 %v8052_v55, %v10319_v10  ;;  %v10320_v7 = vmax.f32 %v8583_v54, 0.0 }
 0x316   : > { %v3233_v14 = vrot.slane %v3232_v26, 4  ;;  %v3275_v20 = vsel %vm2806_vm2, %v2782_v34, 0.0  ;;  %v3274_v42 = vadd.f32 %v3273_v45, %v3272_v41  ;;  %v3335_v19 = vadd.f32 %v3334_v27, %v3333_v13  ;;  %10318 = vst [vmem:[#allocation236_spill] sm:$0xff] %v8795_v43 }
 0x317   : > { %v3277_v2 = vadd.f32 %v3276_v63, %v3275_v20  ;;  %v2797_v28 = vmul.f32 %v10320_v7, %v8793_v44  ;;  %v10321_v34 = vmax.f32 %v8587_v25, 0.0 }
 0x318   : > { %v3234_v22 = vadd.f32 %v3233_v14, %v3232_v26  ;;  %v3498_v13 = vsel %vm3451_vm5, %v3274_v42, %v8689_v3  ;;  %v3336_v26 = vrot.slane %v3335_v19, 1  ;;  %v8809_v14 = vadd.f32 %v8747_v11, %v2121_v38  ;;  %v5795_v42 = vld [vmem:[#allocation5] ss:$0 sm:$0xff]  ;;  %v10323_v38 = vld [vmem:[#allocation25_spill] sm:$0xff] }
 0x319   : > { %v2796_v21 = vmul.f32 %v10321_v34, %v8795_v43  ;;  %v3278_v27 = vrot.slane %v3277_v2, 4  ;;  %v3339_v55 = vsel %vm2806_vm2, %v2797_v28, 0.0  ;;  %v8814_v34 = vpop.permute.xlu1 %1178  ;;  %v8816_v41 = vpop.permute.xlu0 %1174  ;;  %v8819_v3 = vadd.f32 %v8747_v11, %v2120_v12 }
 0x31a   : > { %v3235_v45 = vrot.slane %v3234_v22, 2  ;;  %v3337_v20 = vadd.f32 %v3336_v26, %v3335_v19  ;;  %10322 = vst [vmem:[#allocation203_spill] sm:$0xff] %v8814_v34  ;;  %v2135_v31 = vmul.f32 %v5795_v42, %v10323_v38  ;;  %v10324_v28 = vmax.f32 %v8639_v32, 0.0 }
 0x31b   : > { %v3338_v54 = vsel %vm2806_vm2, %v2796_v21, 0.0  ;;  %v3279_v10 = vadd.f32 %v3278_v27, %v3277_v2  ;;  %v10325_v19 = vmax.f32 %v8666_v37, 0.0  ;;  %v8835_v32 = vadd.f32 %v10192_v47, %v8809_v14 }
 0x31c   : > { %v3236_v25 = vadd.f32 %v3235_v45, %v3234_v22  ;;  %v3340_v7 = vadd.f32 %v3339_v55, %v3338_v54  ;;  %v2785_v21 = vmul.f32 %v10324_v28, %v8814_v34  ;;  %v3504_v2 = vsel %vm3449_vm4, %v3337_v20, %v8731_v29  ;;  %v10326_v55 = vld [vmem:[#allocation206_spill] sm:$0xff]  ;;  %v10378_v34 = vld [vmem:[#allocation99_spill] sm:$0xff] }
 0x31d   : > { %v2784_v22 = vmul.f32 %v10325_v19, %v8816_v41  ;;  %v3280_v45 = vrot.slane %v3279_v10, 2  ;;  %v2134_v12 = vmul.f32 %v5795_v42, %v10326_v55  ;;  %v8837_v44 = vpop.permute.xlu1 %1255  ;;  %v8839_v29 = vpop.permute.xlu0 %1251  ;;  %v8842_v20 = vadd.f32 %v8747_v11, %v2135_v31 }
 0x31e   : > { %v3237_v26 = vrot.slane %v3236_v25, 1  ;;  %v3341_v27 = vrot.slane %v3340_v7, 4  ;;  %v3285_v54 = vsel %vm2806_vm2, %v2785_v21, 0.0  ;;  %10327 = vst [vmem:[#allocation25_spill] sm:$0xff] %v8837_v44  ;;  %10328 = vst [vmem:[#allocation206_spill] sm:$0xff] %v8839_v29  ;;  %v10330_v21 = vmax.f32 %v8680_v62, 0.0 }
 0x31f   : > { %v3284_v38 = vsel %vm2806_vm2, %v2784_v22, 0.0  ;;  %v3281_v63 = vadd.f32 %v3280_v45, %v3279_v10  ;;  %10329 = vst [vmem:[#allocation237_spill] sm:$0xff] %v8842_v20  ;;  %v10331_v22 = vmax.f32 %v8684_v8, 0.0 }
 0x320   : > { %v3238_v28 = vadd.f32 %v3237_v26, %v3236_v25  ;;  %v3342_v37 = vadd.f32 %v3341_v27, %v3340_v7  ;;  %v3286_v19 = vadd.f32 %v3285_v54, %v3284_v38  ;;  %v2799_v55 = vmul.f32 %v10330_v21, %v8837_v44 }
 0x321   : > { %v2798_v43 = vmul.f32 %v10331_v22, %v8839_v29  ;;  %v2532_v25 = vadd.f32 %v10195_v16, %v8819_v3  ;;  %v3282_v10 = vrot.slane %v3281_v63, 1  ;;  %v8854_v27 = vadd.f32 %v8747_v11, %v2134_v12  ;;  %v8859_v44 = vpop.permute.xlu1 %1189  ;;  %v8861_v29 = vpop.permute.xlu0 %1185 }
 0x322   : > { %v3343_v7 = vrot.slane %v3342_v37, 2  ;;  %v3287_v26 = vrot.slane %v3286_v19, 4  ;;  %v3495_v45 = vsel %vm3459_vm9, %v3238_v28, %v3494_v9  ;;  %v3348_v31 = vsel %vm2806_vm2, %v2799_v55, 0.0  ;;  %10333 = vst [vmem:[#allocation239_spill] sm:$0xff] %v8859_v44  ;;  %10334 = vst [vmem:[#allocation240_spill] sm:$0xff] %v8861_v29 }
 0x323   : > { %10332 = vst [vmem:[#allocation238_spill] sm:$0xff] %v8854_v27  ;;  %v3347_v62 = vsel %vm2806_vm2, %v2798_v43, 0.0  ;;  %v3523_v54 = vadd.f32 %v3495_v45, %v10122_v17  ;;  %v3283_v38 = vadd.f32 %v3282_v10, %v3281_v63  ;;  %v10335_v9 = vmax.f32 %v8737_v18, 0.0  ;;  %v10338_v45 = vld [vmem:[#allocation34_spill] sm:$0xff] }
 0x324   : > { %v3344_v8 = vadd.f32 %v3343_v7, %v3342_v37  ;;  %v3288_v21 = vadd.f32 %v3287_v26, %v3286_v19  ;;  %v3349_v22 = vadd.f32 %v3348_v31, %v3347_v62  ;;  %v10336_v12 = vmax.f32 %v8741_v59, 0.0  ;;  %v10337_v7 = vld [vmem:[#allocation33_spill] sm:$0xff] }
 0x325   : > { %v2787_v28 = vmul.f32 %v10335_v9, %v8859_v44  ;;  %5594 = vmatmul.mubr.msk.f32.gmra.mrb[8].mxu1 %vm2806_vm2, %v3523_v54  ;;  %v2661_v17 = vmax.f32 %v8835_v32, 0.0  ;;  %v2660_v43 = vmax.f32 %v2532_v25, 0.0  ;;  %v3499_v10 = vsel %vm3453_vm6, %v3283_v38, %v3498_v13  ;;  %v8876_v35 = vpop.permute.xlu1 %1266  ;;  %v8878_v32 = vpop.permute.xlu0 %1262 }
 0x326   : > { %v2786_v55 = vmul.f32 %v10336_v12, %v8861_v29  ;;  %v3345_v63 = vrot.slane %v3344_v8, 1  ;;  %v3289_v37 = vrot.slane %v3288_v21, 2  ;;  %v3350_v19 = vrot.slane %v3349_v22, 4  ;;  %10339 = vst [vmem:[#allocation33_spill] sm:$0xff] %v8876_v35  ;;  %10340 = vst [vmem:[#allocation34_spill] sm:$0xff] %v8878_v32  ;;  %v10369_v29 = vld [vmem:[#allocation43_spill] sm:$0xff] }
 0x327   : > { %v2137_v26 = vmul.f32 %v5795_v42, %v10337_v7  ;;  %v2136_v31 = vmul.f32 %v5795_v42, %v10338_v45  ;;  %v3294_v18 = vsel %vm2806_vm2, %v2787_v28, 0.0  ;;  %v10341_v25 = vmax.f32 %v8781_v40, 0.0 }
 0x328   : > { %v3293_v62 = vsel %vm2806_vm2, %v2786_v55, 0.0  ;;  %v3346_v59 = vadd.f32 %v3345_v63, %v3344_v8  ;;  %v3290_v9 = vadd.f32 %v3289_v37, %v3288_v21  ;;  %v3351_v12 = vadd.f32 %v3350_v19, %v3349_v22 }
 0x329   : > { %v3295_v54 = vadd.f32 %v3294_v18, %v3293_v62  ;;  %v2801_v13 = vmul.f32 %v10341_v25, %v8876_v35  ;;  %v10342_v38 = vmax.f32 %v8791_v50, 0.0  ;;  %v2547_v28 = vadd.f32 %v10192_v47, %v8842_v20  ;;  %v8899_v25 = vpop.permute.xlu1 %1200 }
 0x32a   : > { %v2546_v8 = vadd.f32 %v10195_v16, %v8854_v27  ;;  %v3505_v21 = vsel %vm3451_vm5, %v3346_v59, %v3504_v2  ;;  %v3291_v22 = vrot.slane %v3290_v9, 1  ;;  %v3352_v55 = vrot.slane %v3351_v12, 2  ;;  %10345 = vst [vmem:[#allocation243_spill] sm:$0xff] %v8899_v25  ;;  %v8901_v2 = vpop.permute.xlu0 %1196 }
 0x32b   : > { %v2800_v42 = vmul.f32 %v10342_v38, %v8878_v32  ;;  %v3296_v63 = vrot.slane %v3295_v54, 4  ;;  %v8892_v37 = vadd.f32 %v8747_v11, %v2137_v26  ;;  %v8895_v40 = vadd.f32 %v8747_v11, %v2136_v31  ;;  %10346 = vst [vmem:[#allocation244_spill] sm:$0xff] %v8901_v2 }
 0x32c   : > { %v3357_v50 = vsel %vm2806_vm2, %v2801_v13, 0.0  ;;  %v3292_v7 = vadd.f32 %v3291_v22, %v3290_v9  ;;  %v3353_v45 = vadd.f32 %v3352_v55, %v3351_v12  ;;  %v2789_v59 = vmul.f32 %v2661_v17, %v8899_v25 }
 0x32d   : > { %10343 = vst [vmem:[#allocation241_spill] sm:$0xff] %v8892_v37  ;;  %10344 = vst [vmem:[#allocation242_spill] sm:$0xff] %v8895_v40  ;;  %v3356_v19 = vsel %vm2806_vm2, %v2800_v42, 0.0  ;;  %v3297_v18 = vadd.f32 %v3296_v63, %v3295_v54  ;;  %v2788_v26 = vmul.f32 %v2660_v43, %v8901_v2  ;;  %v2675_v38 = vmax.f32 %v2547_v28, 0.0 }
 0x32e   : > { %v3358_v62 = vadd.f32 %v3357_v50, %v3356_v19  ;;  %v2674_v35 = vmax.f32 %v2546_v8, 0.0  ;;  %v3354_v11 = vrot.slane %v3353_v45, 1  ;;  %v3500_v13 = vsel %vm3455_vm7, %v3292_v7, %v3499_v10  ;;  %v8912_v8 = vpop.permute.xlu1 %1277  ;;  %v8914_v55 = vpop.permute.xlu0 %1273 }
 0x32f   : > { %v3298_v31 = vrot.slane %v3297_v18, 2  ;;  %v3303_v9 = vsel %vm2806_vm2, %v2789_v59, 0.0  ;;  %v3302_v12 = vsel %vm2806_vm2, %v2788_v26, 0.0  ;;  %v2549_v54 = vadd.f32 %v10192_v47, %v8892_v37  ;;  %10347 = vst [vmem:[#allocation245_spill] sm:$0xff] %v8912_v8  ;;  %10348 = vst [vmem:[#allocation246_spill] sm:$0xff] %v8914_v55 }
 0x330   : > { %v3359_v32 = vrot.slane %v3358_v62, 4  ;;  %v2548_v42 = vadd.f32 %v10195_v16, %v8895_v40  ;;  %v3355_v17 = vadd.f32 %v3354_v11, %v3353_v45  ;;  %v3304_v28 = vadd.f32 %v3303_v9, %v3302_v12 }
 0x331   : > { %v3299_v22 = vadd.f32 %v3298_v31, %v3297_v18  ;;  %v2803_v10 = vmul.f32 %v2675_v38, %v8912_v8  ;;  %v2802_v63 = vmul.f32 %v2674_v35, %v8914_v55  ;;  %v2677_v18 = vmax.f32 %v2549_v54, 0.0 }
 0x332   : > { %v3360_v43 = vadd.f32 %v3359_v32, %v3358_v62  ;;  %v3305_v7 = vrot.slane %v3304_v28, 4  ;;  %v3506_v59 = vsel %vm3453_vm6, %v3355_v17, %v3505_v21  ;;  %v2676_v32 = vmax.f32 %v2548_v42, 0.0  ;;  %v8921_v12 = vpop.permute.xlu1 %1288  ;;  %v8923_v38 = vpop.permute.xlu0 %1284 }
 0x333   : > { %v3300_v50 = vrot.slane %v3299_v22, 1  ;;  %v3366_v26 = vsel %vm2806_vm2, %v2803_v10, 0.0  ;;  %v3365_v45 = vsel %vm2806_vm2, %v2802_v63, 0.0  ;;  %10349 = vst [vmem:[#allocation247_spill] sm:$0xff] %v8921_v12  ;;  %10350 = vst [vmem:[#allocation248_spill] sm:$0xff] %v8923_v38  ;;  %v2805_v35 = vmul.f32 %v2677_v18, %v8921_v12 }
 0x334   : > { %v3361_v19 = vrot.slane %v3360_v43, 2  ;;  %v3306_v31 = vadd.f32 %v3305_v7, %v3304_v28  ;;  %v3367_v9 = vadd.f32 %v3366_v26, %v3365_v45  ;;  %v2804_v8 = vmul.f32 %v2676_v32, %v8923_v38 }
 0x335   : > { %v3301_v62 = vadd.f32 %v3300_v50, %v3299_v22  ;;  %v3375_v54 = vsel %vm2806_vm2, %v2805_v35, 0.0 }
 0x336   : > { %v3362_v11 = vadd.f32 %v3361_v19, %v3360_v43  ;;  %v3307_v21 = vrot.slane %v3306_v31, 2  ;;  %v3368_v17 = vrot.slane %v3367_v9, 4  ;;  %v3374_v42 = vsel %vm2806_vm2, %v2804_v8, 0.0 }
 0x337   : > { %v3501_v10 = vsel %vm3457_vm8, %v3301_v62, %v3500_v13  ;;  %v3376_v63 = vadd.f32 %v3375_v54, %v3374_v42  ;;  %v5477_v42 = vld [vmem:[%s9648_s7 + $0x28] sm:$0xff] }
 0x338   : > { %v3363_v55 = vrot.slane %v3362_v11, 1  ;;  %v3308_v43 = vadd.f32 %v3307_v21, %v3306_v31  ;;  %v3369_v28 = vadd.f32 %v3368_v17, %v3367_v9  ;;  %v5458_v21 = vld [vmem:[%s9649_s8] ss:$0 sm:$0xff] }
 0x339   : > { %v3377_v7 = vrot.slane %v3376_v63, 4 }
 0x33a   : > { %v3364_v22 = vadd.f32 %v3363_v55, %v3362_v11  ;;  %v3309_v50 = vrot.slane %v3308_v43, 1  ;;  %v3370_v19 = vrot.slane %v3369_v28, 2 }
 0x33b   : > { %v3378_v32 = vadd.f32 %v3377_v7, %v3376_v63 }
 0x33c   : > { %v3507_v26 = vsel %vm3455_vm7, %v3364_v22, %v3506_v59  ;;  %v3310_v45 = vadd.f32 %v3309_v50, %v3308_v43  ;;  %v3371_v18 = vadd.f32 %v3370_v19, %v3369_v28  ;;  %v5478_v22 = vld [vmem:[%s9648_s7 + $0x30] sm:$0xff]  ;;  %v5479_v28 = vld [vmem:[%s9648_s7 + $0x38] sm:$0xff] }
 0x33d   : > { %v3379_v38 = vrot.slane %v3378_v32, 2  ;;  %v5679_v63 = vpack.c.bf16 %v5479_v28, %v5478_v22  ;;  %v10353_v22 = vld [vmem:[#allocation39_spill] sm:$0xff]  ;;  %v10354_v28 = vld [vmem:[#allocation52_spill] sm:$0xff] }
 0x33e   : > { %v3372_v12 = vrot.slane %v3371_v18, 1  ;;  %v3502_v13 = vsel %vm3459_vm9, %v3310_v45, %v3501_v10 }
 0x33f   : > { %v3524_v62 = vadd.f32 %v3502_v13, %v10195_v16  ;;  %v3380_v8 = vadd.f32 %v3379_v38, %v3378_v32 }
 0x340   : > { %v3373_v35 = vadd.f32 %v3372_v12, %v3371_v18 }
 0x341   : > { %5596 = vmatprep.mubr.msk.f32.mxu1 %vm2806_vm2, %v3524_v62  ;;  %v3381_v55 = vrot.slane %v3380_v8, 1 }
 0x342   : > { %v3508_v11 = vsel %vm3457_vm8, %v3373_v35, %v3507_v26 }
 0x343   : > { %v3382_v31 = vadd.f32 %v3381_v55, %v3380_v8 }
 0x345   : > { %v3509_v9 = vsel %vm3459_vm9, %v3382_v31, %v3508_v11 }
 0x346   : > { %v3525_v59 = vadd.f32 %v3509_v9, %v10192_v47  ;;  %v5476_v47 = vld [vmem:[%s9648_s7 + $0x20] sm:$0xff] }
 0x347   : > { %v5675_v43 = vpack.c.bf16 %v5477_v42, %v5476_v47 }
 0x348   : > { %5597 = vmatmul.mubr.msk.f32.gmra.mrb[10].mxu1 %vm2806_vm2, %v3525_v59 }
 0x349   : > { %v5589_v17 = vpop.f32.mrb[4].mxu1  ;;  %5676 = vmatprep.subr.bf16.mxu1 %v5675_v43 }
 0x34a   : > { %v3633_v16 = vadd.f32 %v5589_v17, %v5458_v21  ;;  %v3627_v12 = vpop.f32.mrb[5].mxu1  ;;  %5678 = vmatpush3.bf16.msra.mxu1 %v5675_v43 }
 0x34b   : > { %v3628_v38 = vadd.f32 %v5458_v21, %v3627_v12  ;;  %5680 = vmatprep.subr.bf16.mxu1 %v5679_v63  ;;  %v8964_v12 = vld [vmem:[%s10351_s12] ss:$0 sm:$0xff] }
 0x34c   : > { %v3667_v54 = vmax.f32 %v3633_v16, 0.0 }
 0x34d   : > { %v3666_v10 = vmax.f32 %v3628_v38, 0.0 }
 0x34e   : > { %5682 = vmatpush3.bf16.msra.mxu1 %v5679_v63 }
 0x34f   : > { %5607 = vmatprep.mubr.msk.f32.mxu0 %vm2806_vm2, %v3666_v10 }
 0x350   : > { %5608 = vmatmul.mubr.msk.f32.vlgmr.msra.gmra.mrb[4].mxu0 %vm2806_vm2, %v3667_v54 }
 0x3af   : > { %v5592_v50 = vpop.f32.mrb[6].mxu1 }
 0x3b0   : > { %v3643_v19 = vadd.f32 %v5592_v50, %v5458_v21  ;;  %v3637_v7 = vpop.f32.mrb[7].mxu1  ;;  %v10355_v50 = vld [vmem:[#allocation69_spill] sm:$0xff] }
 0x3b1   : > { %v3638_v26 = vadd.f32 %v5458_v21, %v3637_v7  ;;  %v10356_v7 = vld [vmem:[#allocation42_spill] sm:$0xff] }
 0x3b2   : > { %v3669_v18 = vmax.f32 %v3643_v19, 0.0 }
 0x3b3   : > { %v3668_v45 = vmax.f32 %v3638_v26, 0.0 }
 0x3b5   : > { %5610 = vmatprep.mubr.msk.f32.mxu0 %vm2806_vm2, %v3668_v45  ;;  %v10357_v45 = vld [vmem:[#allocation41_spill] sm:$0xff] }
 0x3b6   : > { %5611 = vmatmul.mubr.msk.f32.gmra.mrb[6].mxu0 %vm2806_vm2, %v3669_v18 }
 0x3f8   : > { %v5595_v32 = vpop.f32.mrb[8].mxu1 }
 0x3f9   : > { %v3653_v13 = vadd.f32 %v5595_v32, %v5458_v21  ;;  %v3647_v62 = vpop.f32.mrb[9].mxu1  ;;  %v10358_v32 = vld [vmem:[#allocation53_spill] sm:$0xff] }
 0x3fa   : > { %v3648_v35 = vadd.f32 %v5458_v21, %v3647_v62  ;;  %v10359_v62 = vld [vmem:[#allocation70_spill] sm:$0xff] }
 0x3fb   : > { %v3671_v55 = vmax.f32 %v3653_v13, 0.0 }
 0x3fc   : > { %v3670_v8 = vmax.f32 %v3648_v35, 0.0 }
 0x3fe   : > { %5613 = vmatprep.mubr.msk.f32.mxu0 %vm2806_vm2, %v3670_v8  ;;  %v10360_v8 = vld [vmem:[#allocation81_spill] sm:$0xff] }
 0x3ff   : > { %5614 = vmatmul.mubr.msk.f32.gmra.mrb[8].mxu0 %vm2806_vm2, %v3671_v55 }
 0x41b   : > { %v5598_v11 = vpop.f32.mrb[10].mxu1 }
 0x41c   : > { %v3663_v31 = vadd.f32 %v5598_v11, %v5458_v21  ;;  %v3657_v9 = vpop.f32.mrb[11].mxu1  ;;  %v10361_v11 = vld [vmem:[#allocation80_spill] sm:$0xff] }
 0x41d   : > { %v3658_v59 = vadd.f32 %v5458_v21, %v3657_v9  ;;  %v10352_v21 = vld [vmem:[#allocation40_spill] sm:$0xff]  ;;  %v10362_v9 = vld [vmem:[#allocation91_spill] sm:$0xff] }
 0x41e   : > { %v3673_v16 = vmax.f32 %v3663_v31, 0.0 }
 0x41f   : > { %v3672_v17 = vmax.f32 %v3658_v59, 0.0 }
 0x421   : > { %5616 = vmatprep.mubr.msk.f32.mxu0 %vm2806_vm2, %v3672_v17  ;;  %v10363_v17 = vld [vmem:[#allocation90_spill] sm:$0xff] }
 0x422   : > { %5617 = vmatmul.mubr.msk.f32.gmra.mrb[10].mxu0 %vm2806_vm2, %v3673_v16 }
 0x423   : > { %v5609_v38 = vpop.f32.mrb[4].mxu0 }
 0x424   : > { %v8967_v10 = vadd.f32 %v5609_v38, %v8964_v12  ;;  %v3775_v54 = vpop.f32.mrb[5].mxu0  ;;  %v10364_v38 = vld [vmem:[#allocation112_spill] sm:$0xff] }
 0x425   : > { %v8970_v47 = vadd.f32 %v8964_v12, %v3775_v54 }
 0x426   : > { %v3815_v42 = vadd.f32 %v8967_v10, %v10352_v21  ;;  %v3817_v43 = vadd.f32 %v8967_v10, %v10353_v22  ;;  %v3819_v63 = vadd.f32 %v8967_v10, %v10354_v28  ;;  %v3821_v19 = vadd.f32 %v8967_v10, %v10355_v50  ;;  %v10365_v21 = vld [vmem:[#allocation111_spill] sm:$0xff]  ;;  %v10366_v28 = vld [vmem:[#allocation132_spill] sm:$0xff] }
 0x427   : > { %v3814_v26 = vadd.f32 %v8970_v47, %v10356_v7  ;;  %v3816_v18 = vadd.f32 %v8970_v47, %v10357_v45  ;;  %v3818_v13 = vadd.f32 %v8970_v47, %v10358_v32  ;;  %v3820_v35 = vadd.f32 %v8970_v47, %v10359_v62  ;;  %v10367_v7 = vld [vmem:[#allocation27_spill] sm:$0xff] }
 0x428   : > { %v3822_v55 = vadd.f32 %v8970_v47, %v10360_v8  ;;  %v3823_v31 = vadd.f32 %v8967_v10, %v10361_v11  ;;  %v3824_v59 = vadd.f32 %v8970_v47, %v10362_v9  ;;  %v3825_v16 = vadd.f32 %v8967_v10, %v10363_v17 }
 0x429   : > { %v3826_v54 = vadd.f32 %v8970_v47, %v10364_v38  ;;  %v3827_v22 = vadd.f32 %v8967_v10, %v10365_v21  ;;  %v3828_v50 = vadd.f32 %v8970_v47, %v10366_v28  ;;  %v3829_v45 = vadd.f32 %v8967_v10, %v10367_v7  ;;  %v10368_v28 = vld [vmem:[#allocation44_spill] sm:$0xff] }
 0x42a   : > { %v3942_v32 = vmax.f32 %v3814_v26, 0.0  ;;  %v3943_v62 = vmax.f32 %v3815_v42, 0.0  ;;  %v3944_v8 = vmax.f32 %v3816_v18, 0.0  ;;  %v3945_v11 = vmax.f32 %v3817_v43, 0.0  ;;  %v10370_v26 = vld [vmem:[#allocation48_spill] sm:$0xff]  ;;  %v10371_v18 = vld [vmem:[#allocation47_spill] sm:$0xff] }
 0x42b   : > { %v3946_v9 = vmax.f32 %v3818_v13, 0.0  ;;  %v3947_v37 = vmax.f32 %v3819_v63, 0.0  ;;  %v3948_v40 = vmax.f32 %v3820_v35, 0.0  ;;  %v3949_v17 = vmax.f32 %v3821_v19, 0.0  ;;  %v10372_v13 = vld [vmem:[#allocation59_spill] sm:$0xff]  ;;  %v10373_v35 = vld [vmem:[#allocation58_spill] sm:$0xff] }
 0x42c   : > { %v3950_v20 = vmax.f32 %v3822_v55, 0.0  ;;  %v3951_v27 = vmax.f32 %v3823_v31, 0.0  ;;  %v3952_v38 = vmax.f32 %v3824_v59, 0.0  ;;  %v3953_v1 = vmax.f32 %v3825_v16, 0.0  ;;  %v10374_v55 = vld [vmem:[#allocation76_spill] sm:$0xff]  ;;  %v10375_v59 = vld [vmem:[#allocation75_spill] sm:$0xff] }
 0x42d   : > { %v3954_v51 = vmax.f32 %v3826_v54, 0.0  ;;  %v3955_v21 = vmax.f32 %v3827_v22, 0.0  ;;  %v3956_v25 = vmax.f32 %v3828_v50, 0.0  ;;  %v3957_v2 = vmax.f32 %v3829_v45, 0.0  ;;  %v10376_v54 = vld [vmem:[#allocation87_spill] sm:$0xff]  ;;  %v10377_v50 = vld [vmem:[#allocation86_spill] sm:$0xff] }
 0x42e   : > { %v4070_v44 = vmul.f32 %v3942_v32, %v10368_v28  ;;  %v4071_v7 = vmul.f32 %v3943_v62, %v10369_v29  ;;  %v4072_v42 = vmul.f32 %v3944_v8, %v10370_v26  ;;  %v4073_v43 = vmul.f32 %v3945_v11, %v10371_v18  ;;  %v10379_v28 = vld [vmem:[#allocation98_spill] sm:$0xff]  ;;  %v10381_v26 = vld [vmem:[#allocation21_spill] sm:$0xff]  ;;  %v10382_v18 = vld [vmem:[#allocation135_spill] sm:$0xff] }
 0x42f   : > { %v4074_v63 = vmul.f32 %v3946_v9, %v10372_v13  ;;  %v4075_v19 = vmul.f32 %v3947_v37, %v10373_v35  ;;  %v4076_v31 = vmul.f32 %v3948_v40, %v10374_v55  ;;  %v4077_v16 = vmul.f32 %v3949_v17, %v10375_v59  ;;  %v10380_v62 = vld [vmem:[#allocation22_spill] sm:$0xff]  ;;  %v10383_v13 = vld [vmem:[#allocation31_spill] sm:$0xff] }
 0x430   : > { %v4078_v22 = vmul.f32 %v3950_v20, %v10376_v54  ;;  %v4079_v45 = vmul.f32 %v3951_v27, %v10377_v50  ;;  %v4080_v32 = vmul.f32 %v3952_v38, %v10378_v34  ;;  %v4081_v29 = vmul.f32 %v3953_v1, %v10379_v28 }
 0x431   : > { %v4082_v8 = vmul.f32 %v3954_v51, %v10380_v62  ;;  %v4083_v11 = vmul.f32 %v3955_v21, %v10381_v26  ;;  %v4084_v9 = vmul.f32 %v3956_v25, %v10382_v18  ;;  %v4085_v37 = vmul.f32 %v3957_v2, %v10383_v13 }
 0x432   : > { %v4198_v40 = vsel %vm2806_vm2, %v4070_v44, 0.0  ;;  %v4199_v17 = vsel %vm2806_vm2, %v4071_v7, 0.0  ;;  %v4207_v20 = vsel %vm2806_vm2, %v4072_v42, 0.0  ;;  %v4208_v27 = vsel %vm2806_vm2, %v4073_v43, 0.0 }
 0x433   : > { %v4200_v35 = vadd.f32 %v4199_v17, %v4198_v40  ;;  %v4209_v34 = vadd.f32 %v4208_v27, %v4207_v20  ;;  %v4216_v1 = vsel %vm2806_vm2, %v4074_v63, 0.0  ;;  %v4217_v51 = vsel %vm2806_vm2, %v4075_v19, 0.0 }
 0x434   : > { %v4218_v38 = vadd.f32 %v4217_v51, %v4216_v1  ;;  %v4225_v21 = vsel %vm2806_vm2, %v4076_v31, 0.0  ;;  %v4226_v25 = vsel %vm2806_vm2, %v4077_v16, 0.0  ;;  %v4234_v2 = vsel %vm2806_vm2, %v4078_v22, 0.0 }
 0x435   : > { %v4201_v44 = vrot.slane %v4200_v35, 4  ;;  %v4210_v55 = vrot.slane %v4209_v34, 4  ;;  %v4227_v7 = vadd.f32 %v4226_v25, %v4225_v21  ;;  %v4235_v42 = vsel %vm2806_vm2, %v4079_v45, 0.0 }
 0x436   : > { %v4219_v59 = vrot.slane %v4218_v38, 4  ;;  %v4236_v43 = vadd.f32 %v4235_v42, %v4234_v2  ;;  %v4243_v54 = vsel %vm2806_vm2, %v4080_v32, 0.0  ;;  %v4244_v63 = vsel %vm2806_vm2, %v4081_v29, 0.0 }
 0x437   : > { %v4202_v50 = vadd.f32 %v4201_v44, %v4200_v35  ;;  %v4211_v19 = vadd.f32 %v4210_v55, %v4209_v34  ;;  %v4228_v28 = vrot.slane %v4227_v7, 4  ;;  %v4245_v62 = vadd.f32 %v4244_v63, %v4243_v54 }
 0x438   : > { %v4220_v31 = vadd.f32 %v4219_v59, %v4218_v38  ;;  %v4237_v26 = vrot.slane %v4236_v43, 4  ;;  %v4252_v16 = vsel %vm2806_vm2, %v4082_v8, 0.0  ;;  %v4253_v22 = vsel %vm2806_vm2, %v4083_v11, 0.0 }
 0x439   : > { %v4203_v18 = vrot.slane %v4202_v50, 2  ;;  %v4212_v13 = vrot.slane %v4211_v19, 2  ;;  %v4229_v40 = vadd.f32 %v4228_v28, %v4227_v7  ;;  %v4246_v45 = vrot.slane %v4245_v62, 4 }
 0x43a   : > { %v4221_v17 = vrot.slane %v4220_v31, 2  ;;  %v4238_v20 = vadd.f32 %v4237_v26, %v4236_v43  ;;  %v4254_v27 = vadd.f32 %v4253_v22, %v4252_v16  ;;  %v4261_v32 = vsel %vm2806_vm2, %v4084_v9, 0.0  ;;  %v10384_v16 = vld [vmem:[#allocation56_spill] sm:$0xff] }
 0x43b   : > { %v4204_v29 = vadd.f32 %v4203_v18, %v4202_v50  ;;  %v4213_v35 = vadd.f32 %v4212_v13, %v4211_v19  ;;  %v4230_v34 = vrot.slane %v4229_v40, 2  ;;  %v4247_v1 = vadd.f32 %v4246_v45, %v4245_v62 }
 0x43c   : > { %v4222_v51 = vadd.f32 %v4221_v17, %v4220_v31  ;;  %v4239_v38 = vrot.slane %v4238_v20, 2  ;;  %v4255_v21 = vrot.slane %v4254_v27, 4  ;;  %v4262_v8 = vsel %vm2806_vm2, %v4085_v37, 0.0 }
 0x43d   : > { %v4205_v25 = vrot.slane %v4204_v29, 1  ;;  %v4214_v11 = vrot.slane %v4213_v35, 1  ;;  %v4231_v2 = vadd.f32 %v4230_v34, %v4229_v40  ;;  %v4248_v44 = vrot.slane %v4247_v1, 2 }
 0x43e   : > { %v4223_v55 = vrot.slane %v4222_v51, 1  ;;  %v4240_v7 = vadd.f32 %v4239_v38, %v4238_v20  ;;  %v4256_v42 = vadd.f32 %v4255_v21, %v4254_v27  ;;  %v4263_v59 = vadd.f32 %v4262_v8, %v4261_v32  ;;  %v10385_v27 = vld [vmem:[#allocation54_spill] sm:$0xff]  ;;  %v10387_v38 = vld [vmem:[#allocation57_spill] sm:$0xff] }
 0x43f   : > { %v4206_v43 = vadd.f32 %v4205_v25, %v4204_v29  ;;  %v4215_v54 = vadd.f32 %v4214_v11, %v4213_v35  ;;  %v4232_v9 = vrot.slane %v4231_v2, 1  ;;  %v4249_v63 = vadd.f32 %v4248_v44, %v4247_v1  ;;  %v10386_v29 = vld [vmem:[#allocation61_spill] sm:$0xff]  ;;  %v10388_v25 = vld [vmem:[#allocation74_spill] sm:$0xff] }
 0x440   : > { %v4224_v50 = vadd.f32 %v4223_v55, %v4222_v51  ;;  %v4241_v19 = vrot.slane %v4240_v7, 1  ;;  %v4257_v28 = vrot.slane %v4256_v42, 2  ;;  %v4264_v62 = vrot.slane %v4263_v59, 4  ;;  %v10390_v55 = vld [vmem:[#allocation85_spill] sm:$0xff] }
 0x441   : > { %v4233_v31 = vadd.f32 %v4232_v9, %v4231_v2  ;;  %v4250_v26 = vrot.slane %v4249_v63, 1  ;;  %v4838_v37 = vsel %vm3447_vm3, %v4215_v54, %v4206_v43  ;;  %v3830_v22 = vadd.f32 %v8970_v47, %v10384_v16  ;;  %v10389_v2 = vld [vmem:[#allocation73_spill] sm:$0xff]  ;;  %v10391_v43 = vld [vmem:[#allocation84_spill] sm:$0xff] }
 0x442   : > { %v4242_v18 = vadd.f32 %v4241_v19, %v4240_v7  ;;  %v4258_v13 = vadd.f32 %v4257_v28, %v4256_v42  ;;  %v4265_v40 = vadd.f32 %v4264_v62, %v4263_v59  ;;  %v4839_v45 = vsel %vm3449_vm4, %v4224_v50, %v4838_v37  ;;  %v10392_v9 = vld [vmem:[#allocation93_spill] sm:$0xff]  ;;  %v10393_v50 = vld [vmem:[#allocation92_spill] sm:$0xff]  ;;  %v10394_v28 = vld [vmem:[#allocation114_spill] sm:$0xff] }
 0x443   : > { %v4251_v17 = vadd.f32 %v4250_v26, %v4249_v63  ;;  %v4840_v20 = vsel %vm3451_vm5, %v4233_v31, %v4839_v45  ;;  %v3831_v32 = vadd.f32 %v8967_v10, %v10385_v27  ;;  %v3832_v35 = vadd.f32 %v8970_v47, %v10386_v29  ;;  %v10395_v31 = vld [vmem:[#allocation18_spill] sm:$0xff]  ;;  %v10399_v27 = vld [vmem:[#allocation35_spill] sm:$0xff] }
 0x444   : > { %v4259_v34 = vrot.slane %v4258_v13, 1  ;;  %v4266_v1 = vrot.slane %v4265_v40, 2  ;;  %v4841_v51 = vsel %vm3453_vm6, %v4242_v18, %v4840_v20  ;;  %v3833_v21 = vadd.f32 %v8967_v10, %v10387_v38  ;;  %v10396_v37 = vld [vmem:[#allocation134_spill] sm:$0xff] }
 0x445   : > { %v4842_v8 = vsel %vm3455_vm7, %v4251_v17, %v4841_v51  ;;  %v3834_v11 = vadd.f32 %v8970_v47, %v10388_v25  ;;  %v3835_v44 = vadd.f32 %v8967_v10, %v10389_v2  ;;  %v3836_v7 = vadd.f32 %v8970_v47, %v10390_v55  ;;  %v10398_v17 = vld [vmem:[#allocation148_spill] sm:$0xff] }
 0x446   : > { %v4260_v42 = vadd.f32 %v4259_v34, %v4258_v13  ;;  %v4267_v59 = vadd.f32 %v4266_v1, %v4265_v40  ;;  %v3837_v54 = vadd.f32 %v8967_v10, %v10391_v43  ;;  %v3838_v63 = vadd.f32 %v8970_v47, %v10392_v9  ;;  %v10397_v40 = vld [vmem:[#allocation28_spill] sm:$0xff] }
 0x447   : > { %v3839_v19 = vadd.f32 %v8967_v10, %v10393_v50  ;;  %v3840_v62 = vadd.f32 %v8970_v47, %v10394_v28  ;;  %v3841_v26 = vadd.f32 %v8967_v10, %v10395_v31  ;;  %v3842_v16 = vadd.f32 %v8970_v47, %v10396_v37 }
 0x448   : > { %v4268_v18 = vrot.slane %v4267_v59, 1  ;;  %v4843_v13 = vsel %vm3457_vm8, %v4260_v42, %v4842_v8  ;;  %v3843_v45 = vadd.f32 %v8967_v10, %v10397_v40  ;;  %v3844_v20 = vadd.f32 %v8970_v47, %v10398_v17 }
 0x449   : > { %v3845_v29 = vadd.f32 %v8967_v10, %v10399_v27  ;;  %v3958_v34 = vmax.f32 %v3830_v22, 0.0  ;;  %v3959_v1 = vmax.f32 %v3831_v32, 0.0  ;;  %v3960_v51 = vmax.f32 %v3832_v35, 0.0  ;;  %v10400_v32 = vld [vmem:[#allocation64_spill] sm:$0xff] }
 0x44a   : > { %v4269_v38 = vadd.f32 %v4268_v18, %v4267_v59  ;;  %v3961_v25 = vmax.f32 %v3833_v21, 0.0  ;;  %v3962_v2 = vmax.f32 %v3834_v11, 0.0  ;;  %v3963_v55 = vmax.f32 %v3835_v44, 0.0  ;;  %v10401_v59 = vld [vmem:[#allocation63_spill] sm:$0xff]  ;;  %v10402_v11 = vld [vmem:[#allocation66_spill] sm:$0xff] }
 0x44b   : > { %v3964_v43 = vmax.f32 %v3836_v7, 0.0  ;;  %v3965_v9 = vmax.f32 %v3837_v54, 0.0  ;;  %v3966_v50 = vmax.f32 %v3838_v63, 0.0  ;;  %v3967_v8 = vmax.f32 %v3839_v19, 0.0  ;;  %v10403_v7 = vld [vmem:[#allocation65_spill] sm:$0xff]  ;;  %v10404_v63 = vld [vmem:[#allocation78_spill] sm:$0xff] }
 0x44c   : > { %v4844_v42 = vsel %vm3459_vm9, %v4269_v38, %v4843_v13  ;;  %v3968_v28 = vmax.f32 %v3840_v62, 0.0  ;;  %v3969_v31 = vmax.f32 %v3841_v26, 0.0  ;;  %v3970_v37 = vmax.f32 %v3842_v16, 0.0  ;;  %v10405_v62 = vld [vmem:[#allocation77_spill] sm:$0xff]  ;;  %v10410_v38 = vld [vmem:[#allocation118_spill] sm:$0xff] }
 0x44d   : > { %v4902_v40 = vadd.f32 %v4844_v42, %v8970_v47  ;;  %v3971_v17 = vmax.f32 %v3843_v45, 0.0  ;;  %v3972_v27 = vmax.f32 %v3844_v20, 0.0  ;;  %v3973_v22 = vmax.f32 %v3845_v29, 0.0  ;;  %v10406_v16 = vld [vmem:[#allocation89_spill] sm:$0xff]  ;;  %v10407_v47 = vld [vmem:[#allocation88_spill] sm:$0xff]  ;;  %v10408_v45 = vld [vmem:[#allocation102_spill] sm:$0xff] }
 0x44e   : > { %v4086_v35 = vmul.f32 %v3958_v34, %v10400_v32  ;;  %v4087_v21 = vmul.f32 %v3959_v1, %v10401_v59  ;;  %v4088_v44 = vmul.f32 %v3960_v51, %v10402_v11  ;;  %v4089_v54 = vmul.f32 %v3961_v25, %v10403_v7  ;;  %v10409_v29 = vld [vmem:[#allocation101_spill] sm:$0xff]  ;;  %v10412_v32 = vld [vmem:[#allocation138_spill] sm:$0xff] }
 0x44f   : > { %5627 = vmatprep.mubr.msk.f32.mxu1 %vm2806_vm2, %v4902_v40  ;;  %v4090_v19 = vmul.f32 %v3962_v2, %v10404_v63  ;;  %v4091_v26 = vmul.f32 %v3963_v55, %v10405_v62  ;;  %v4092_v18 = vmul.f32 %v3964_v43, %v10406_v16  ;;  %v4093_v13 = vmul.f32 %v3965_v9, %v10407_v47  ;;  %v10411_v42 = vld [vmem:[#allocation117_spill] sm:$0xff]  ;;  %v10414_v11 = vld [vmem:[#allocation50_spill] sm:$0xff] }
 0x450   : > { %v4094_v20 = vmul.f32 %v3966_v50, %v10408_v45  ;;  %v4095_v34 = vmul.f32 %v3967_v8, %v10409_v29  ;;  %v4096_v1 = vmul.f32 %v3968_v28, %v10410_v38  ;;  %v4097_v51 = vmul.f32 %v3969_v31, %v10411_v42  ;;  %v10413_v59 = vld [vmem:[#allocation137_spill] sm:$0xff] }
 0x451   : > { %v4098_v25 = vmul.f32 %v3970_v37, %v10412_v32  ;;  %v4099_v40 = vmul.f32 %v3971_v17, %v10413_v59  ;;  %v4100_v2 = vmul.f32 %v3972_v27, %v10414_v11  ;;  %v10415_v7 = vld [vmem:[#allocation49_spill] sm:$0xff]  ;;  %v4270_v43 = vsel %vm2806_vm2, %v4086_v35, 0.0 }
 0x452   : > { %v4101_v55 = vmul.f32 %v3973_v22, %v10415_v7  ;;  %v4271_v9 = vsel %vm2806_vm2, %v4087_v21, 0.0  ;;  %v4279_v50 = vsel %vm2806_vm2, %v4088_v44, 0.0  ;;  %v4280_v8 = vsel %vm2806_vm2, %v4089_v54, 0.0 }
 0x453   : > { %v4272_v63 = vadd.f32 %v4271_v9, %v4270_v43  ;;  %v4281_v28 = vadd.f32 %v4280_v8, %v4279_v50  ;;  %v4288_v31 = vsel %vm2806_vm2, %v4090_v19, 0.0  ;;  %v4289_v37 = vsel %vm2806_vm2, %v4091_v26, 0.0 }
 0x454   : > { %v4290_v62 = vadd.f32 %v4289_v37, %v4288_v31  ;;  %v4297_v17 = vsel %vm2806_vm2, %v4092_v18, 0.0  ;;  %v4298_v27 = vsel %vm2806_vm2, %v4093_v13, 0.0  ;;  %v4306_v22 = vsel %vm2806_vm2, %v4094_v20, 0.0 }
 0x455   : > { %v4273_v35 = vrot.slane %v4272_v63, 4  ;;  %v4282_v16 = vrot.slane %v4281_v28, 4  ;;  %v4299_v21 = vadd.f32 %v4298_v27, %v4297_v17  ;;  %v4307_v44 = vsel %vm2806_vm2, %v4095_v34, 0.0 }
 0x456   : > { %v4291_v47 = vrot.slane %v4290_v62, 4  ;;  %v4308_v54 = vadd.f32 %v4307_v44, %v4306_v22  ;;  %v4315_v45 = vsel %vm2806_vm2, %v4096_v1, 0.0  ;;  %v4316_v19 = vsel %vm2806_vm2, %v4097_v51, 0.0 }
 0x457   : > { %v4274_v29 = vadd.f32 %v4273_v35, %v4272_v63  ;;  %v4283_v26 = vadd.f32 %v4282_v16, %v4281_v28  ;;  %v4300_v38 = vrot.slane %v4299_v21, 4  ;;  %v4317_v42 = vadd.f32 %v4316_v19, %v4315_v45 }
 0x458   : > { %v4292_v18 = vadd.f32 %v4291_v47, %v4290_v62  ;;  %v4309_v32 = vrot.slane %v4308_v54, 4  ;;  %v4324_v13 = vsel %vm2806_vm2, %v4098_v25, 0.0  ;;  %v4325_v20 = vsel %vm2806_vm2, %v4099_v40, 0.0 }
 0x459   : > { %v4275_v59 = vrot.slane %v4274_v29, 2  ;;  %v4284_v11 = vrot.slane %v4283_v26, 2  ;;  %v4301_v7 = vadd.f32 %v4300_v38, %v4299_v21  ;;  %v4318_v34 = vrot.slane %v4317_v42, 4 }
 0x45a   : > { %v4293_v43 = vrot.slane %v4292_v18, 2  ;;  %v4310_v9 = vadd.f32 %v4309_v32, %v4308_v54  ;;  %v4326_v50 = vadd.f32 %v4325_v20, %v4324_v13  ;;  %v4333_v1 = vsel %vm2806_vm2, %v4100_v2, 0.0 }
 0x45b   : > { %v4276_v51 = vadd.f32 %v4275_v59, %v4274_v29  ;;  %v4285_v8 = vadd.f32 %v4284_v11, %v4283_v26  ;;  %v4302_v63 = vrot.slane %v4301_v7, 2  ;;  %v4319_v28 = vadd.f32 %v4318_v34, %v4317_v42 }
 0x45c   : > { %v4294_v31 = vadd.f32 %v4293_v43, %v4292_v18  ;;  %v4311_v37 = vrot.slane %v4310_v9, 2  ;;  %v4327_v62 = vrot.slane %v4326_v50, 4  ;;  %v4334_v25 = vsel %vm2806_vm2, %v4101_v55, 0.0 }
 0x45d   : > { %v4277_v17 = vrot.slane %v4276_v51, 1  ;;  %v4286_v40 = vrot.slane %v4285_v8, 1  ;;  %v4303_v27 = vadd.f32 %v4302_v63, %v4301_v7  ;;  %v4320_v22 = vrot.slane %v4319_v28, 2 }
 0x45e   : > { %v4295_v35 = vrot.slane %v4294_v31, 1  ;;  %v4312_v16 = vadd.f32 %v4311_v37, %v4310_v9  ;;  %v4328_v21 = vadd.f32 %v4327_v62, %v4326_v50  ;;  %v4335_v44 = vadd.f32 %v4334_v25, %v4333_v1 }
 0x45f   : > { %v4278_v47 = vadd.f32 %v4277_v17, %v4276_v51  ;;  %v4287_v54 = vadd.f32 %v4286_v40, %v4285_v8  ;;  %v4304_v2 = vrot.slane %v4303_v27, 1  ;;  %v4321_v45 = vadd.f32 %v4320_v22, %v4319_v28 }
 0x460   : > { %v4296_v19 = vadd.f32 %v4295_v35, %v4294_v31  ;;  %v4313_v29 = vrot.slane %v4312_v16, 1  ;;  %v4329_v26 = vrot.slane %v4328_v21, 2  ;;  %v4336_v38 = vrot.slane %v4335_v44, 4  ;;  %v10417_v35 = vld [vmem:[#allocation100_spill] sm:$0xff] }
 0x461   : > { %v4305_v42 = vadd.f32 %v4304_v2, %v4303_v27  ;;  %v4322_v18 = vrot.slane %v4321_v45, 1  ;;  %v4845_v55 = vsel %vm3447_vm3, %v4287_v54, %v4278_v47  ;;  %v10416_v27 = vld [vmem:[#allocation96_spill] sm:$0xff]  ;;  %v10420_v54 = vld [vmem:[#allocation97_spill] sm:$0xff] }
 0x462   : > { %v4314_v32 = vadd.f32 %v4313_v29, %v4312_v16  ;;  %v4330_v13 = vadd.f32 %v4329_v26, %v4328_v21  ;;  %v4337_v20 = vadd.f32 %v4336_v38, %v4335_v44  ;;  %v4846_v59 = vsel %vm3449_vm4, %v4296_v19, %v4845_v55  ;;  %v10418_v21 = vld [vmem:[#allocation20_spill] sm:$0xff] }
 0x463   : > { %v4323_v11 = vadd.f32 %v4322_v18, %v4321_v45  ;;  %v4847_v7 = vsel %vm3451_vm5, %v4305_v42, %v4846_v59  ;;  %v10421_v45 = vld [vmem:[#allocation103_spill] sm:$0xff]  ;;  %v10423_v26 = vld [vmem:[#allocation136_spill] sm:$0xff]  ;;  %v10424_v42 = vld [vmem:[#allocation149_spill] sm:$0xff] }
 0x464   : > { %v4331_v34 = vrot.slane %v4330_v13, 1  ;;  %v4338_v43 = vrot.slane %v4337_v20, 2  ;;  %v4848_v9 = vsel %vm3453_vm6, %v4314_v32, %v4847_v7  ;;  %v10425_v55 = vld [vmem:[#allocation36_spill] sm:$0xff]  ;;  %v10428_v7 = vld [vmem:[#allocation162_spill] sm:$0xff] }
 0x465   : > { %v4849_v50 = vsel %vm3455_vm7, %v4323_v11, %v4848_v9  ;;  %v10427_v59 = vld [vmem:[#allocation152_spill] sm:$0xff] }
 0x466   : > { %v4332_v1 = vadd.f32 %v4331_v34, %v4330_v13  ;;  %v4339_v51 = vadd.f32 %v4338_v43, %v4337_v20  ;;  %v10426_v13 = vld [vmem:[#allocation51_spill] sm:$0xff]  ;;  %v10429_v43 = vld [vmem:[#allocation161_spill] sm:$0xff] }
 0x468   : > { %v4340_v8 = vrot.slane %v4339_v51, 1  ;;  %v4850_v63 = vsel %vm3457_vm8, %v4332_v1, %v4849_v50  ;;  %v10430_v50 = vld [vmem:[#allocation177_spill] sm:$0xff] }
 0x46a   : > { %v4341_v28 = vadd.f32 %v4340_v8, %v4339_v51  ;;  %v10431_v51 = vld [vmem:[#allocation176_spill] sm:$0xff] }
 0x46c   : > { %v4851_v31 = vsel %vm3459_vm9, %v4341_v28, %v4850_v63 }
 0x46d   : > { %v4903_v37 = vadd.f32 %v4851_v31, %v8967_v10  ;;  %v10419_v10 = vld [vmem:[#allocation30_spill] sm:$0xff] }
 0x46f   : > { %5628 = vmatmul.mubr.msk.f32.vlgmr.msra.gmra.mrb[12].mxu1 %vm2806_vm2, %v4903_v37 }
 0x489   : > { %v5612_v62 = vpop.f32.mrb[6].mxu0 }
 0x48a   : > { %v9119_v25 = vadd.f32 %v5612_v62, %v8964_v12  ;;  %v3785_v17 = vpop.f32.mrb[7].mxu0 }
 0x48b   : > { %v9122_v40 = vadd.f32 %v8964_v12, %v3785_v17  ;;  %v10422_v12 = vld [vmem:[#allocation115_spill] sm:$0xff] }
 0x48c   : > { %v3847_v22 = vadd.f32 %v9119_v25, %v10416_v27  ;;  %v3849_v16 = vadd.f32 %v9119_v25, %v10417_v35  ;;  %v3851_v44 = vadd.f32 %v9119_v25, %v10418_v21  ;;  %v3853_v47 = vadd.f32 %v9119_v25, %v10419_v10 }
 0x48d   : > { %v3846_v2 = vadd.f32 %v9122_v40, %v10420_v54  ;;  %v3848_v19 = vadd.f32 %v9122_v40, %v10421_v45  ;;  %v3850_v29 = vadd.f32 %v9122_v40, %v10422_v12  ;;  %v3852_v38 = vadd.f32 %v9122_v40, %v10423_v26 }
 0x48e   : > { %v3854_v18 = vadd.f32 %v9122_v40, %v10424_v42  ;;  %v3855_v32 = vadd.f32 %v9119_v25, %v10425_v55  ;;  %v3856_v20 = vadd.f32 %v9122_v40, %v10426_v13  ;;  %v3857_v11 = vadd.f32 %v9119_v25, %v10427_v59  ;;  %v10432_v13 = vld [vmem:[#allocation105_spill] sm:$0xff] }
 0x48f   : > { %v3858_v34 = vadd.f32 %v9122_v40, %v10428_v7  ;;  %v3859_v9 = vadd.f32 %v9119_v25, %v10429_v43  ;;  %v3860_v1 = vadd.f32 %v9122_v40, %v10430_v50  ;;  %v3861_v8 = vadd.f32 %v9119_v25, %v10431_v51  ;;  %v10433_v7 = vld [vmem:[#allocation104_spill] sm:$0xff]  ;;  %v10441_v50 = vld [vmem:[#allocation155_spill] sm:$0xff] }
 0x490   : > { %v3974_v63 = vmax.f32 %v3846_v2, 0.0  ;;  %v3975_v28 = vmax.f32 %v3847_v22, 0.0  ;;  %v3976_v31 = vmax.f32 %v3848_v19, 0.0  ;;  %v3977_v37 = vmax.f32 %v3849_v16, 0.0  ;;  %v10434_v2 = vld [vmem:[#allocation107_spill] sm:$0xff]  ;;  %v10435_v19 = vld [vmem:[#allocation106_spill] sm:$0xff] }
 0x491   : > { %v3978_v62 = vmax.f32 %v3850_v29, 0.0  ;;  %v3979_v17 = vmax.f32 %v3851_v44, 0.0  ;;  %v3980_v27 = vmax.f32 %v3852_v38, 0.0  ;;  %v3981_v35 = vmax.f32 %v3853_v47, 0.0  ;;  %v10436_v29 = vld [vmem:[#allocation120_spill] sm:$0xff]  ;;  %v10442_v51 = vld [vmem:[#allocation171_spill] sm:$0xff] }
 0x492   : > { %v3982_v21 = vmax.f32 %v3854_v18, 0.0  ;;  %v3983_v10 = vmax.f32 %v3855_v32, 0.0  ;;  %v3984_v54 = vmax.f32 %v3856_v20, 0.0  ;;  %v3985_v45 = vmax.f32 %v3857_v11, 0.0  ;;  %v10437_v38 = vld [vmem:[#allocation24_spill] sm:$0xff]  ;;  %v10438_v18 = vld [vmem:[#allocation141_spill] sm:$0xff] }
 0x493   : > { %v3986_v12 = vmax.f32 %v3858_v34, 0.0  ;;  %v3987_v26 = vmax.f32 %v3859_v9, 0.0  ;;  %v3988_v42 = vmax.f32 %v3860_v1, 0.0  ;;  %v3989_v55 = vmax.f32 %v3861_v8, 0.0  ;;  %v10439_v20 = vld [vmem:[#allocation140_spill] sm:$0xff] }
 0x494   : > { %v4102_v59 = vmul.f32 %v3974_v63, %v10432_v13  ;;  %v4103_v43 = vmul.f32 %v3975_v28, %v10433_v7  ;;  %v4104_v22 = vmul.f32 %v3976_v31, %v10434_v2  ;;  %v4105_v16 = vmul.f32 %v3977_v37, %v10435_v19  ;;  %v10440_v34 = vld [vmem:[#allocation156_spill] sm:$0xff]  ;;  %v10443_v63 = vld [vmem:[#allocation46_spill] sm:$0xff]  ;;  %v10445_v7 = vld [vmem:[#allocation183_spill] sm:$0xff] }
 0x495   : > { %v4106_v44 = vmul.f32 %v3978_v62, %v10436_v29  ;;  %v4107_v47 = vmul.f32 %v3979_v17, %v10437_v38  ;;  %v4108_v32 = vmul.f32 %v3980_v27, %v10438_v18  ;;  %v4109_v11 = vmul.f32 %v3981_v35, %v10439_v20  ;;  %v10444_v13 = vld [vmem:[#allocation184_spill] sm:$0xff]  ;;  %v10446_v2 = vld [vmem:[#allocation199_spill] sm:$0xff]  ;;  %v10447_v19 = vld [vmem:[#allocation198_spill] sm:$0xff] }
 0x496   : > { %v4110_v9 = vmul.f32 %v3982_v21, %v10440_v34  ;;  %v4111_v1 = vmul.f32 %v3983_v10, %v10441_v50  ;;  %v4112_v8 = vmul.f32 %v3984_v54, %v10442_v51  ;;  %v4113_v28 = vmul.f32 %v3985_v45, %v10443_v63 }
 0x497   : > { %v4114_v31 = vmul.f32 %v3986_v12, %v10444_v13  ;;  %v4115_v37 = vmul.f32 %v3987_v26, %v10445_v7  ;;  %v4116_v62 = vmul.f32 %v3988_v42, %v10446_v2  ;;  %v4117_v17 = vmul.f32 %v3989_v55, %v10447_v19 }
 0x498   : > { %v4342_v27 = vsel %vm2806_vm2, %v4102_v59, 0.0  ;;  %v4343_v35 = vsel %vm2806_vm2, %v4103_v43, 0.0  ;;  %v4351_v21 = vsel %vm2806_vm2, %v4104_v22, 0.0  ;;  %v4352_v10 = vsel %vm2806_vm2, %v4105_v16, 0.0 }
 0x499   : > { %v4344_v29 = vadd.f32 %v4343_v35, %v4342_v27  ;;  %v4353_v54 = vadd.f32 %v4352_v10, %v4351_v21  ;;  %v4360_v45 = vsel %vm2806_vm2, %v4106_v44, 0.0  ;;  %v4361_v12 = vsel %vm2806_vm2, %v4107_v47, 0.0 }
 0x49a   : > { %v4362_v38 = vadd.f32 %v4361_v12, %v4360_v45  ;;  %v4369_v26 = vsel %vm2806_vm2, %v4108_v32, 0.0  ;;  %v4370_v42 = vsel %vm2806_vm2, %v4109_v11, 0.0  ;;  %v4378_v55 = vsel %vm2806_vm2, %v4110_v9, 0.0 }
 0x49b   : > { %v4345_v59 = vrot.slane %v4344_v29, 4  ;;  %v4354_v18 = vrot.slane %v4353_v54, 4  ;;  %v4371_v43 = vadd.f32 %v4370_v42, %v4369_v26  ;;  %v4379_v22 = vsel %vm2806_vm2, %v4111_v1, 0.0 }
 0x49c   : > { %v4363_v20 = vrot.slane %v4362_v38, 4  ;;  %v4380_v16 = vadd.f32 %v4379_v22, %v4378_v55  ;;  %v4387_v34 = vsel %vm2806_vm2, %v4112_v8, 0.0  ;;  %v4388_v44 = vsel %vm2806_vm2, %v4113_v28, 0.0 }
 0x49d   : > { %v4346_v50 = vadd.f32 %v4345_v59, %v4344_v29  ;;  %v4355_v47 = vadd.f32 %v4354_v18, %v4353_v54  ;;  %v4372_v51 = vrot.slane %v4371_v43, 4  ;;  %v4389_v63 = vadd.f32 %v4388_v44, %v4387_v34 }
 0x49e   : > { %v4364_v32 = vadd.f32 %v4363_v20, %v4362_v38  ;;  %v4381_v13 = vrot.slane %v4380_v16, 4  ;;  %v4396_v11 = vsel %vm2806_vm2, %v4114_v31, 0.0  ;;  %v4397_v9 = vsel %vm2806_vm2, %v4115_v37, 0.0 }
 0x49f   : > { %v4347_v7 = vrot.slane %v4346_v50, 2  ;;  %v4356_v2 = vrot.slane %v4355_v47, 2  ;;  %v4373_v19 = vadd.f32 %v4372_v51, %v4371_v43  ;;  %v4390_v1 = vrot.slane %v4389_v63, 4 }
 0x4a0   : > { %v4365_v27 = vrot.slane %v4364_v32, 2  ;;  %v4382_v35 = vadd.f32 %v4381_v13, %v4380_v16  ;;  %v4398_v21 = vadd.f32 %v4397_v9, %v4396_v11  ;;  %v4405_v8 = vsel %vm2806_vm2, %v4116_v62, 0.0  ;;  %v10448_v13 = vld [vmem:[#allocation116_spill] sm:$0xff] }
 0x4a1   : > { %v4348_v28 = vadd.f32 %v4347_v7, %v4346_v50  ;;  %v4357_v10 = vadd.f32 %v4356_v2, %v4355_v47  ;;  %v4374_v29 = vrot.slane %v4373_v19, 2  ;;  %v4391_v54 = vadd.f32 %v4390_v1, %v4389_v63 }
 0x4a2   : > { %v4366_v45 = vadd.f32 %v4365_v27, %v4364_v32  ;;  %v4383_v12 = vrot.slane %v4382_v35, 2  ;;  %v4399_v38 = vrot.slane %v4398_v21, 4  ;;  %v4406_v31 = vsel %vm2806_vm2, %v4117_v17, 0.0 }
 0x4a3   : > { %v4349_v26 = vrot.slane %v4348_v28, 1  ;;  %v4358_v37 = vrot.slane %v4357_v10, 1  ;;  %v4375_v42 = vadd.f32 %v4374_v29, %v4373_v19  ;;  %v4392_v55 = vrot.slane %v4391_v54, 2 }
 0x4a4   : > { %v4367_v59 = vrot.slane %v4366_v45, 1  ;;  %v4384_v18 = vadd.f32 %v4383_v12, %v4382_v35  ;;  %v4400_v43 = vadd.f32 %v4399_v38, %v4398_v21  ;;  %v4407_v22 = vadd.f32 %v4406_v31, %v4405_v8  ;;  %v10449_v35 = vld [vmem:[#allocation23_spill] sm:$0xff]  ;;  %v10450_v8 = vld [vmem:[#allocation121_spill] sm:$0xff] }
 0x4a5   : > { %v4350_v20 = vadd.f32 %v4349_v26, %v4348_v28  ;;  %v4359_v16 = vadd.f32 %v4358_v37, %v4357_v10  ;;  %v4376_v62 = vrot.slane %v4375_v42, 1  ;;  %v4393_v34 = vadd.f32 %v4392_v55, %v4391_v54  ;;  %v10452_v31 = vld [vmem:[#allocation139_spill] sm:$0xff]  ;;  %v10453_v37 = vld [vmem:[#allocation32_spill] sm:$0xff] }
 0x4a6   : > { %v4368_v44 = vadd.f32 %v4367_v59, %v4366_v45  ;;  %v4385_v50 = vrot.slane %v4384_v18, 1  ;;  %v4401_v47 = vrot.slane %v4400_v43, 2  ;;  %v4408_v51 = vrot.slane %v4407_v22, 4  ;;  %v10451_v45 = vld [vmem:[#allocation119_spill] sm:$0xff] }
 0x4a7   : > { %v4377_v63 = vadd.f32 %v4376_v62, %v4375_v42  ;;  %v4394_v32 = vrot.slane %v4393_v34, 1  ;;  %v4852_v17 = vsel %vm3447_vm3, %v4359_v16, %v4350_v20  ;;  %v3862_v11 = vadd.f32 %v9122_v40, %v10448_v13  ;;  %v10454_v55 = vld [vmem:[#allocation151_spill] sm:$0xff]  ;;  %v10456_v16 = vld [vmem:[#allocation154_spill] sm:$0xff] }
 0x4a8   : > { %v4386_v9 = vadd.f32 %v4385_v50, %v4384_v18  ;;  %v4402_v7 = vadd.f32 %v4401_v47, %v4400_v43  ;;  %v4409_v2 = vadd.f32 %v4408_v51, %v4407_v22  ;;  %v4853_v19 = vsel %vm3449_vm4, %v4368_v44, %v4852_v17  ;;  %v10455_v22 = vld [vmem:[#allocation150_spill] sm:$0xff]  ;;  %v10458_v50 = vld [vmem:[#allocation164_spill] sm:$0xff]  ;;  %v10459_v51 = vld [vmem:[#allocation163_spill] sm:$0xff] }
 0x4a9   : > { %v4395_v1 = vadd.f32 %v4394_v32, %v4393_v34  ;;  %v4854_v27 = vsel %vm3451_vm5, %v4377_v63, %v4853_v19  ;;  %v3863_v21 = vadd.f32 %v9119_v25, %v10449_v35  ;;  %v3864_v28 = vadd.f32 %v9122_v40, %v10450_v8  ;;  %v10457_v34 = vld [vmem:[#allocation153_spill] sm:$0xff]  ;;  %v10460_v32 = vld [vmem:[#allocation79_spill] sm:$0xff]  ;;  %v10462_v19 = vld [vmem:[#allocation186_spill] sm:$0xff] }
 0x4aa   : > { %v4403_v10 = vrot.slane %v4402_v7, 1  ;;  %v4410_v29 = vrot.slane %v4409_v2, 2  ;;  %v4855_v54 = vsel %vm3453_vm6, %v4386_v9, %v4854_v27  ;;  %v3865_v12 = vadd.f32 %v9119_v25, %v10451_v45  ;;  %v10463_v27 = vld [vmem:[#allocation185_spill] sm:$0xff] }
 0x4ab   : > { %v4856_v38 = vsel %vm3455_vm7, %v4395_v1, %v4855_v54  ;;  %v3866_v26 = vadd.f32 %v9122_v40, %v10452_v31  ;;  %v3867_v42 = vadd.f32 %v9119_v25, %v10453_v37  ;;  %v3868_v59 = vadd.f32 %v9122_v40, %v10454_v55 }
 0x4ac   : > { %v4404_v18 = vadd.f32 %v4403_v10, %v4402_v7  ;;  %v4411_v43 = vadd.f32 %v4410_v29, %v4409_v2  ;;  %v3869_v20 = vadd.f32 %v9119_v25, %v10455_v22  ;;  %v3870_v62 = vadd.f32 %v9122_v40, %v10456_v16  ;;  %v10461_v7 = vld [vmem:[#allocation180_spill] sm:$0xff] }
 0x4ad   : > { %v3871_v44 = vadd.f32 %v9119_v25, %v10457_v34  ;;  %v3872_v47 = vadd.f32 %v9122_v40, %v10458_v50  ;;  %v3873_v63 = vadd.f32 %v9119_v25, %v10459_v51  ;;  %v3874_v17 = vadd.f32 %v9122_v40, %v10460_v32 }
 0x4ae   : > { %v4412_v13 = vrot.slane %v4411_v43, 1  ;;  %v4857_v9 = vsel %vm3457_vm8, %v4404_v18, %v4856_v38  ;;  %v3875_v2 = vadd.f32 %v9119_v25, %v10461_v7  ;;  %v3876_v1 = vadd.f32 %v9122_v40, %v10462_v19 }
 0x4af   : > { %v3877_v35 = vadd.f32 %v9119_v25, %v10463_v27  ;;  %v3990_v8 = vmax.f32 %v3862_v11, 0.0  ;;  %v3991_v10 = vmax.f32 %v3863_v21, 0.0  ;;  %v3992_v29 = vmax.f32 %v3864_v28, 0.0  ;;  %v10464_v21 = vld [vmem:[#allocation123_spill] sm:$0xff]  ;;  %v10473_v27 = vld [vmem:[#allocation172_spill] sm:$0xff] }
 0x4b0   : > { %v4413_v54 = vadd.f32 %v4412_v13, %v4411_v43  ;;  %v3993_v45 = vmax.f32 %v3865_v12, 0.0  ;;  %v3994_v31 = vmax.f32 %v3866_v26, 0.0  ;;  %v3995_v37 = vmax.f32 %v3867_v42, 0.0  ;;  %v10465_v43 = vld [vmem:[#allocation122_spill] sm:$0xff]  ;;  %v10466_v26 = vld [vmem:[#allocation125_spill] sm:$0xff] }
 0x4b1   : > { %v3996_v55 = vmax.f32 %v3868_v59, 0.0  ;;  %v3997_v22 = vmax.f32 %v3869_v20, 0.0  ;;  %v3998_v16 = vmax.f32 %v3870_v62, 0.0  ;;  %v3999_v38 = vmax.f32 %v3871_v44, 0.0  ;;  %v10467_v59 = vld [vmem:[#allocation124_spill] sm:$0xff]  ;;  %v10468_v62 = vld [vmem:[#allocation143_spill] sm:$0xff] }
 0x4b2   : > { %v4858_v18 = vsel %vm3459_vm9, %v4413_v54, %v4857_v9  ;;  %v4000_v34 = vmax.f32 %v3872_v47, 0.0  ;;  %v4001_v50 = vmax.f32 %v3873_v63, 0.0  ;;  %v4002_v51 = vmax.f32 %v3874_v17, 0.0  ;;  %v10469_v47 = vld [vmem:[#allocation142_spill] sm:$0xff]  ;;  %v10470_v17 = vld [vmem:[#allocation160_spill] sm:$0xff]  ;;  %v10475_v54 = vld [vmem:[#allocation187_spill] sm:$0xff] }
 0x4b3   : > { %v4904_v32 = vadd.f32 %v4858_v18, %v9122_v40  ;;  %v4003_v7 = vmax.f32 %v3875_v2, 0.0  ;;  %v4004_v19 = vmax.f32 %v3876_v1, 0.0  ;;  %v4005_v11 = vmax.f32 %v3877_v35, 0.0  ;;  %v10471_v40 = vld [vmem:[#allocation55_spill] sm:$0xff]  ;;  %v10472_v2 = vld [vmem:[#allocation173_spill] sm:$0xff]  ;;  %v10476_v18 = vld [vmem:[#allocation60_spill] sm:$0xff] }
 0x4b4   : > { %v4118_v28 = vmul.f32 %v3990_v8, %v10464_v21  ;;  %v4119_v12 = vmul.f32 %v3991_v10, %v10465_v43  ;;  %v4120_v42 = vmul.f32 %v3992_v29, %v10466_v26  ;;  %v4121_v20 = vmul.f32 %v3993_v45, %v10467_v59  ;;  %v10474_v8 = vld [vmem:[#allocation188_spill] sm:$0xff]  ;;  %v10477_v21 = vld [vmem:[#allocation113_spill] sm:$0xff] }
 0x4b5   : > { %5630 = vmatprep.mubr.msk.f32.mxu1 %vm2806_vm2, %v4904_v32  ;;  %v4122_v44 = vmul.f32 %v3994_v31, %v10468_v62  ;;  %v4123_v63 = vmul.f32 %v3995_v37, %v10469_v47  ;;  %v4124_v13 = vmul.f32 %v3996_v55, %v10470_v17  ;;  %v4125_v9 = vmul.f32 %v3997_v22, %v10471_v40  ;;  %v10478_v43 = vld [vmem:[#allocation133_spill] sm:$0xff] }
 0x4b6   : > { %v4126_v1 = vmul.f32 %v3998_v16, %v10472_v2  ;;  %v4127_v35 = vmul.f32 %v3999_v38, %v10473_v27  ;;  %v4128_v10 = vmul.f32 %v4000_v34, %v10474_v8  ;;  %v4129_v29 = vmul.f32 %v4001_v50, %v10475_v54  ;;  %v10479_v26 = vld [vmem:[#allocation29_spill] sm:$0xff] }
 0x4b7   : > { %v4130_v45 = vmul.f32 %v4002_v51, %v10476_v18  ;;  %v4131_v32 = vmul.f32 %v4003_v7, %v10477_v21  ;;  %v4132_v31 = vmul.f32 %v4004_v19, %v10478_v43  ;;  %v4133_v37 = vmul.f32 %v4005_v11, %v10479_v26 }
 0x4b8   : > { %v4414_v55 = vsel %vm2806_vm2, %v4118_v28, 0.0  ;;  %v4415_v22 = vsel %vm2806_vm2, %v4119_v12, 0.0  ;;  %v4423_v16 = vsel %vm2806_vm2, %v4120_v42, 0.0  ;;  %v4424_v38 = vsel %vm2806_vm2, %v4121_v20, 0.0 }
 0x4b9   : > { %v4416_v59 = vadd.f32 %v4415_v22, %v4414_v55  ;;  %v4425_v34 = vadd.f32 %v4424_v38, %v4423_v16  ;;  %v4432_v50 = vsel %vm2806_vm2, %v4122_v44, 0.0  ;;  %v4433_v51 = vsel %vm2806_vm2, %v4123_v63, 0.0 }
 0x4ba   : > { %v4434_v62 = vadd.f32 %v4433_v51, %v4432_v50  ;;  %v4441_v7 = vsel %vm2806_vm2, %v4124_v13, 0.0  ;;  %v4442_v19 = vsel %vm2806_vm2, %v4125_v9, 0.0  ;;  %v4450_v11 = vsel %vm2806_vm2, %v4126_v1, 0.0 }
 0x4bb   : > { %v4417_v28 = vrot.slane %v4416_v59, 4  ;;  %v4426_v47 = vrot.slane %v4425_v34, 4  ;;  %v4443_v12 = vadd.f32 %v4442_v19, %v4441_v7  ;;  %v4451_v42 = vsel %vm2806_vm2, %v4127_v35, 0.0 }
 0x4bc   : > { %v4435_v17 = vrot.slane %v4434_v62, 4  ;;  %v4452_v20 = vadd.f32 %v4451_v42, %v4450_v11  ;;  %v4459_v40 = vsel %vm2806_vm2, %v4128_v10, 0.0  ;;  %v4460_v44 = vsel %vm2806_vm2, %v4129_v29, 0.0 }
 0x4bd   : > { %v4418_v2 = vadd.f32 %v4417_v28, %v4416_v59  ;;  %v4427_v63 = vadd.f32 %v4426_v47, %v4425_v34  ;;  %v4444_v27 = vrot.slane %v4443_v12, 4  ;;  %v4461_v8 = vadd.f32 %v4460_v44, %v4459_v40 }
 0x4be   : > { %v4436_v13 = vadd.f32 %v4435_v17, %v4434_v62  ;;  %v4453_v54 = vrot.slane %v4452_v20, 4  ;;  %v4468_v9 = vsel %vm2806_vm2, %v4130_v45, 0.0  ;;  %v4469_v1 = vsel %vm2806_vm2, %v4131_v32, 0.0 }
 0x4bf   : > { %v4419_v18 = vrot.slane %v4418_v2, 2  ;;  %v4428_v21 = vrot.slane %v4427_v63, 2  ;;  %v4445_v43 = vadd.f32 %v4444_v27, %v4443_v12  ;;  %v4462_v35 = vrot.slane %v4461_v8, 4 }
 0x4c0   : > { %v4437_v26 = vrot.slane %v4436_v13, 2  ;;  %v4454_v55 = vadd.f32 %v4453_v54, %v4452_v20  ;;  %v4470_v22 = vadd.f32 %v4469_v1, %v4468_v9  ;;  %v4477_v10 = vsel %vm2806_vm2, %v4132_v31, 0.0 }
 0x4c1   : > { %v4420_v29 = vadd.f32 %v4419_v18, %v4418_v2  ;;  %v4429_v16 = vadd.f32 %v4428_v21, %v4427_v63  ;;  %v4446_v38 = vrot.slane %v4445_v43, 2  ;;  %v4463_v59 = vadd.f32 %v4462_v35, %v4461_v8 }
 0x4c2   : > { %v4438_v34 = vadd.f32 %v4437_v26, %v4436_v13  ;;  %v4455_v50 = vrot.slane %v4454_v55, 2  ;;  %v4471_v51 = vrot.slane %v4470_v22, 4  ;;  %v4478_v45 = vsel %vm2806_vm2, %v4133_v37, 0.0 }
 0x4c3   : > { %v4421_v62 = vrot.slane %v4420_v29, 1  ;;  %v4430_v32 = vrot.slane %v4429_v16, 1  ;;  %v4447_v7 = vadd.f32 %v4446_v38, %v4445_v43  ;;  %v4464_v19 = vrot.slane %v4463_v59, 2 }
 0x4c4   : > { %v4439_v11 = vrot.slane %v4438_v34, 1  ;;  %v4456_v28 = vadd.f32 %v4455_v50, %v4454_v55  ;;  %v4472_v47 = vadd.f32 %v4471_v51, %v4470_v22  ;;  %v4479_v12 = vadd.f32 %v4478_v45, %v4477_v10 }
 0x4c5   : > { %v4422_v42 = vadd.f32 %v4421_v62, %v4420_v29  ;;  %v4431_v17 = vadd.f32 %v4430_v32, %v4429_v16  ;;  %v4448_v31 = vrot.slane %v4447_v7, 1  ;;  %v4465_v20 = vadd.f32 %v4464_v19, %v4463_v59  ;;  %v9270_v59 = vld [vmem:[%s10351_s12] ss:$0 sm:$0xff]  ;;  %v10480_v62 = vld [vmem:[#allocation157_spill] sm:$0xff] }
 0x4c6   : > { %v4440_v40 = vadd.f32 %v4439_v11, %v4438_v34  ;;  %v4457_v44 = vrot.slane %v4456_v28, 1  ;;  %v4473_v2 = vrot.slane %v4472_v47, 2  ;;  %v4480_v63 = vrot.slane %v4479_v12, 4  ;;  %v10482_v11 = vld [vmem:[#allocation165_spill] sm:$0xff] }
 0x4c7   : > { %v4449_v27 = vadd.f32 %v4448_v31, %v4447_v7  ;;  %v4466_v8 = vrot.slane %v4465_v20, 1  ;;  %v4859_v37 = vsel %vm3447_vm3, %v4431_v17, %v4422_v42  ;;  %v10481_v7 = vld [vmem:[#allocation159_spill] sm:$0xff]  ;;  %v10484_v42 = vld [vmem:[#allocation68_spill] sm:$0xff]  ;;  %v10485_v31 = vld [vmem:[#allocation166_spill] sm:$0xff] }
 0x4c8   : > { %v4458_v13 = vadd.f32 %v4457_v44, %v4456_v28  ;;  %v4474_v54 = vadd.f32 %v4473_v2, %v4472_v47  ;;  %v4481_v9 = vadd.f32 %v4480_v63, %v4479_v12  ;;  %v4860_v1 = vsel %vm3449_vm4, %v4440_v40, %v4859_v37  ;;  %v10483_v47 = vld [vmem:[#allocation158_spill] sm:$0xff]  ;;  %v10487_v63 = vld [vmem:[#allocation181_spill] sm:$0xff] }
 0x4c9   : > { %v4467_v18 = vadd.f32 %v4466_v8, %v4465_v20  ;;  %v4861_v21 = vsel %vm3451_vm5, %v4449_v27, %v4860_v1  ;;  %v10486_v40 = vld [vmem:[#allocation82_spill] sm:$0xff]  ;;  %v10488_v8 = vld [vmem:[#allocation192_spill] sm:$0xff] }
 0x4ca   : > { %v4475_v43 = vrot.slane %v4474_v54, 1  ;;  %v4482_v35 = vrot.slane %v4481_v9, 2  ;;  %v4862_v26 = vsel %vm3453_vm6, %v4458_v13, %v4861_v21  ;;  %v10489_v13 = vld [vmem:[#allocation189_spill] sm:$0xff]  ;;  %v10490_v1 = vld [vmem:[#allocation108_spill] sm:$0xff] }
 0x4cb   : > { %v4863_v55 = vsel %vm3455_vm7, %v4467_v18, %v4862_v26  ;;  %v10491_v21 = vld [vmem:[#allocation197_spill] sm:$0xff] }
 0x4cc   : > { %v4476_v22 = vadd.f32 %v4475_v43, %v4474_v54  ;;  %v4483_v10 = vadd.f32 %v4482_v35, %v4481_v9  ;;  %v10492_v35 = vld [vmem:[#allocation128_spill] sm:$0xff] }
 0x4ce   : > { %v4484_v16 = vrot.slane %v4483_v10, 1  ;;  %v4864_v38 = vsel %vm3457_vm8, %v4476_v22, %v4863_v55  ;;  %v10493_v55 = vld [vmem:[#allocation201_spill] sm:$0xff] }
 0x4d0   : > { %v4485_v45 = vadd.f32 %v4484_v16, %v4483_v10  ;;  %v10494_v10 = vld [vmem:[#allocation147_spill] sm:$0xff] }
 0x4d1   : > { %v10495_v16 = vld [vmem:[#allocation207_spill] sm:$0xff] }
 0x4d2   : > { %v5615_v29 = vpop.f32.mrb[8].mxu0  ;;  %v4865_v2 = vsel %vm3459_vm9, %v4485_v45, %v4864_v38 }
 0x4d3   : > { %v9273_v34 = vadd.f32 %v9270_v59, %v5615_v29  ;;  %v3795_v50 = vpop.f32.mrb[9].mxu0  ;;  %v4905_v9 = vadd.f32 %v4865_v2, %v9119_v25 }
 0x4d4   : > { %v9276_v51 = vadd.f32 %v9270_v59, %v3795_v50 }
 0x4d5   : > { %v3879_v32 = vadd.f32 %v9273_v34, %v10480_v62  ;;  %v3881_v19 = vadd.f32 %v9273_v34, %v10481_v7  ;;  %v3883_v28 = vadd.f32 %v9273_v34, %v10482_v11  ;;  %v3885_v27 = vadd.f32 %v9273_v34, %v10487_v63  ;;  %5631 = vmatmul.mubr.msk.f32.gmra.mrb[14].mxu1 %vm2806_vm2, %v4905_v9  ;;  %v10498_v9 = vld [vmem:[#allocation179_spill] sm:$0xff] }
 0x4d6   : > { %v3878_v12 = vadd.f32 %v9276_v51, %v10483_v47  ;;  %v3880_v17 = vadd.f32 %v9276_v51, %v10484_v42  ;;  %v3882_v20 = vadd.f32 %v9276_v51, %v10485_v31  ;;  %v3884_v44 = vadd.f32 %v9276_v51, %v10486_v40 }
 0x4d7   : > { %v3886_v37 = vadd.f32 %v9276_v51, %v10488_v8  ;;  %v3887_v54 = vadd.f32 %v9273_v34, %v10489_v13  ;;  %v3888_v18 = vadd.f32 %v9276_v51, %v10490_v1  ;;  %v3889_v43 = vadd.f32 %v9273_v34, %v10491_v21 }
 0x4d8   : > { %v3890_v26 = vadd.f32 %v9276_v51, %v10492_v35  ;;  %v3891_v22 = vadd.f32 %v9273_v34, %v10493_v55  ;;  %v3892_v29 = vadd.f32 %v9276_v51, %v10494_v10  ;;  %v3893_v38 = vadd.f32 %v9273_v34, %v10495_v16  ;;  %v10496_v35 = vld [vmem:[#allocation175_spill] sm:$0xff] }
 0x4d9   : > { %v4006_v50 = vmax.f32 %v3878_v12, 0.0  ;;  %v4007_v25 = vmax.f32 %v3879_v32, 0.0  ;;  %v4008_v45 = vmax.f32 %v3880_v17, 0.0  ;;  %v4009_v62 = vmax.f32 %v3881_v19, 0.0  ;;  %v10497_v12 = vld [vmem:[#allocation174_spill] sm:$0xff] }
 0x4da   : > { %v4010_v7 = vmax.f32 %v3882_v20, 0.0  ;;  %v4011_v11 = vmax.f32 %v3883_v28, 0.0  ;;  %v4012_v47 = vmax.f32 %v3884_v44, 0.0  ;;  %v4013_v42 = vmax.f32 %v3885_v27, 0.0  ;;  %v10499_v17 = vld [vmem:[#allocation178_spill] sm:$0xff]  ;;  %v10500_v20 = vld [vmem:[#allocation191_spill] sm:$0xff] }
 0x4db   : > { %v4014_v31 = vmax.f32 %v3886_v37, 0.0  ;;  %v4015_v40 = vmax.f32 %v3887_v54, 0.0  ;;  %v4016_v2 = vmax.f32 %v3888_v18, 0.0  ;;  %v4017_v63 = vmax.f32 %v3889_v43, 0.0  ;;  %v10501_v44 = vld [vmem:[#allocation190_spill] sm:$0xff]  ;;  %v10502_v37 = vld [vmem:[#allocation127_spill] sm:$0xff] }
 0x4dc   : > { %v4018_v8 = vmax.f32 %v3890_v26, 0.0  ;;  %v4019_v13 = vmax.f32 %v3891_v22, 0.0  ;;  %v4020_v1 = vmax.f32 %v3892_v29, 0.0  ;;  %v4021_v21 = vmax.f32 %v3893_v38, 0.0  ;;  %v10503_v18 = vld [vmem:[#allocation126_spill] sm:$0xff]  ;;  %v10504_v26 = vld [vmem:[#allocation209_spill] sm:$0xff] }
 0x4dd   : > { %v4134_v55 = vmul.f32 %v4006_v50, %v10496_v35  ;;  %v4135_v10 = vmul.f32 %v4007_v25, %v10497_v12  ;;  %v4136_v32 = vmul.f32 %v4008_v45, %v10498_v9  ;;  %v4137_v19 = vmul.f32 %v4009_v62, %v10499_v17  ;;  %v10505_v29 = vld [vmem:[#allocation208_spill] sm:$0xff] }
 0x4de   : > { %v4138_v28 = vmul.f32 %v4010_v7, %v10500_v20  ;;  %v4139_v27 = vmul.f32 %v4011_v11, %v10501_v44  ;;  %v4140_v54 = vmul.f32 %v4012_v47, %v10502_v37  ;;  %v4141_v43 = vmul.f32 %v4013_v42, %v10503_v18 }
 0x4df   : > { %v4142_v22 = vmul.f32 %v4014_v31, %v10504_v26  ;;  %v4143_v16 = vmul.f32 %v4015_v40, %v10505_v29  ;;  %v4144_v38 = vmul.f32 %v4016_v2, %v8409_v61  ;;  %v4145_v50 = vmul.f32 %v4017_v63, %v8407_v57 }
 0x4e0   : > { %v4146_v25 = vmul.f32 %v4018_v8, %v8522_v23  ;;  %v4147_v45 = vmul.f32 %v4019_v13, %v8520_v15  ;;  %v4148_v62 = vmul.f32 %v4020_v1, %v8643_v5  ;;  %v4149_v7 = vmul.f32 %v4021_v21, %v8641_v24 }
 0x4e1   : > { %v4486_v11 = vsel %vm2806_vm2, %v4134_v55, 0.0  ;;  %v4487_v47 = vsel %vm2806_vm2, %v4135_v10, 0.0  ;;  %v4495_v42 = vsel %vm2806_vm2, %v4136_v32, 0.0  ;;  %v4496_v31 = vsel %vm2806_vm2, %v4137_v19, 0.0 }
 0x4e2   : > { %v4504_v61 = vsel %vm2806_vm2, %v4138_v28, 0.0  ;;  %v4488_v40 = vadd.f32 %v4487_v47, %v4486_v11  ;;  %v4497_v57 = vadd.f32 %v4496_v31, %v4495_v42  ;;  %v4505_v23 = vsel %vm2806_vm2, %v4139_v27, 0.0 }
 0x4e3   : > { %v4513_v15 = vsel %vm2806_vm2, %v4140_v54, 0.0  ;;  %v4506_v2 = vadd.f32 %v4505_v23, %v4504_v61  ;;  %v4514_v5 = vsel %vm2806_vm2, %v4141_v43, 0.0  ;;  %v4522_v24 = vsel %vm2806_vm2, %v4142_v22, 0.0 }
 0x4e4   : > { %v4523_v63 = vsel %vm2806_vm2, %v4143_v16, 0.0  ;;  %v4489_v8 = vrot.slane %v4488_v40, 4  ;;  %v4498_v13 = vrot.slane %v4497_v57, 4  ;;  %v4515_v1 = vadd.f32 %v4514_v5, %v4513_v15 }
 0x4e5   : > { %v4524_v21 = vadd.f32 %v4523_v63, %v4522_v24  ;;  %v4507_v35 = vrot.slane %v4506_v2, 4  ;;  %v4531_v55 = vsel %vm2806_vm2, %v4144_v38, 0.0  ;;  %v4532_v12 = vsel %vm2806_vm2, %v4145_v50, 0.0 }
 0x4e6   : > { %v4540_v10 = vsel %vm2806_vm2, %v4146_v25, 0.0  ;;  %v4490_v9 = vadd.f32 %v4489_v8, %v4488_v40  ;;  %v4499_v32 = vadd.f32 %v4498_v13, %v4497_v57  ;;  %v4516_v17 = vrot.slane %v4515_v1, 4 }
 0x4e7   : > { %v4525_v19 = vrot.slane %v4524_v21, 4  ;;  %v4508_v20 = vadd.f32 %v4507_v35, %v4506_v2  ;;  %v4533_v28 = vadd.f32 %v4532_v12, %v4531_v55  ;;  %v4541_v44 = vsel %vm2806_vm2, %v4147_v45, 0.0 }
 0x4e8   : > { %v4549_v27 = vsel %vm2806_vm2, %v4148_v62, 0.0  ;;  %v4491_v37 = vrot.slane %v4490_v9, 2  ;;  %v4500_v54 = vrot.slane %v4499_v32, 2  ;;  %v4517_v18 = vadd.f32 %v4516_v17, %v4515_v1 }
 0x4e9   : > { %v4526_v43 = vadd.f32 %v4525_v19, %v4524_v21  ;;  %v4509_v26 = vrot.slane %v4508_v20, 2  ;;  %v4534_v22 = vrot.slane %v4533_v28, 4  ;;  %v4542_v29 = vadd.f32 %v4541_v44, %v4540_v10 }
 0x4ea   : > { %v4550_v16 = vsel %vm2806_vm2, %v4149_v7, 0.0  ;;  %v4492_v38 = vadd.f32 %v4491_v37, %v4490_v9  ;;  %v4501_v50 = vadd.f32 %v4500_v54, %v4499_v32  ;;  %v4518_v25 = vrot.slane %v4517_v18, 2  ;;  %v10506_v9 = vld [vmem:[#allocation168_spill] sm:$0xff]  ;;  %v10508_v54 = vld [vmem:[#allocation45_spill] sm:$0xff] }
 0x4eb   : > { %v4527_v11 = vrot.slane %v4526_v43, 2  ;;  %v4510_v47 = vadd.f32 %v4509_v26, %v4508_v20  ;;  %v4535_v42 = vadd.f32 %v4534_v22, %v4533_v28  ;;  %v4543_v31 = vrot.slane %v4542_v29, 4 }
 0x4ec   : > { %v4551_v61 = vadd.f32 %v4550_v16, %v4549_v27  ;;  %v4493_v45 = vrot.slane %v4492_v38, 1  ;;  %v4502_v40 = vrot.slane %v4501_v50, 1  ;;  %v4519_v62 = vadd.f32 %v4518_v25, %v4517_v18  ;;  %v10507_v27 = vld [vmem:[#allocation167_spill] sm:$0xff] }
 0x4ed   : > { %v4528_v57 = vadd.f32 %v4527_v11, %v4526_v43  ;;  %v4511_v23 = vrot.slane %v4510_v47, 1  ;;  %v4536_v15 = vrot.slane %v4535_v42, 2  ;;  %v4544_v2 = vadd.f32 %v4543_v31, %v4542_v29  ;;  %v10509_v43 = vld [vmem:[#allocation72_spill] sm:$0xff]  ;;  %v10511_v11 = vld [vmem:[#allocation83_spill] sm:$0xff] }
 0x4ee   : > { %v4552_v5 = vrot.slane %v4551_v61, 4  ;;  %v4494_v24 = vadd.f32 %v4493_v45, %v4492_v38  ;;  %v4503_v63 = vadd.f32 %v4502_v40, %v4501_v50  ;;  %v4520_v8 = vrot.slane %v4519_v62, 1  ;;  %v10510_v50 = vld [vmem:[#allocation182_spill] sm:$0xff] }
 0x4ef   : > { %v4529_v7 = vrot.slane %v4528_v57, 1  ;;  %v4512_v13 = vadd.f32 %v4511_v23, %v4510_v47  ;;  %v4537_v1 = vadd.f32 %v4536_v15, %v4535_v42  ;;  %v4545_v21 = vrot.slane %v4544_v2, 2  ;;  %v10512_v42 = vld [vmem:[#allocation194_spill] sm:$0xff]  ;;  %v10514_v23 = vld [vmem:[#allocation17_spill] sm:$0xff] }
 0x4f0   : > { %v4553_v35 = vadd.f32 %v4552_v5, %v4551_v61  ;;  %v4521_v55 = vadd.f32 %v4520_v8, %v4519_v62  ;;  %v4866_v10 = vsel %vm3447_vm3, %v4503_v63, %v4494_v24  ;;  %v3894_v32 = vadd.f32 %v9276_v51, %v10506_v9  ;;  %v10513_v61 = vld [vmem:[#allocation193_spill] sm:$0xff]  ;;  %v10516_v63 = vld [vmem:[#allocation131_spill] sm:$0xff] }
 0x4f1   : > { %v4530_v12 = vadd.f32 %v4529_v7, %v4528_v57  ;;  %v4538_v17 = vrot.slane %v4537_v1, 1  ;;  %v4546_v19 = vadd.f32 %v4545_v21, %v4544_v2  ;;  %v4867_v28 = vsel %vm3449_vm4, %v4512_v13, %v4866_v10  ;;  %v10515_v5 = vld [vmem:[#allocation109_spill] sm:$0xff]  ;;  %v10517_v7 = vld [vmem:[#allocation130_spill] sm:$0xff] }
 0x4f2   : > { %v4554_v20 = vrot.slane %v4553_v35, 2  ;;  %v4868_v44 = vsel %vm3451_vm5, %v4521_v55, %v4867_v28  ;;  %v3895_v37 = vadd.f32 %v9273_v34, %v10507_v27  ;;  %v3896_v18 = vadd.f32 %v9276_v51, %v10508_v54  ;;  %v10519_v10 = vld [vmem:[#allocation210_spill] sm:$0xff] }
 0x4f3   : > { %v3897_v26 = vadd.f32 %v9273_v34, %v10509_v43  ;;  %v4539_v22 = vadd.f32 %v4538_v17, %v4537_v1  ;;  %v4547_v29 = vrot.slane %v4546_v19, 1  ;;  %v4869_v38 = vsel %vm3453_vm6, %v4530_v12, %v4868_v44  ;;  %v10518_v1 = vld [vmem:[#allocation213_spill] sm:$0xff] }
 0x4f4   : > { %v4555_v16 = vadd.f32 %v4554_v20, %v4553_v35  ;;  %v3898_v25 = vadd.f32 %v9276_v51, %v10510_v50  ;;  %v3899_v47 = vadd.f32 %v9273_v34, %v10511_v11  ;;  %v3900_v31 = vadd.f32 %v9276_v51, %v10512_v42 }
 0x4f5   : > { %v3901_v45 = vadd.f32 %v9273_v34, %v10513_v61  ;;  %v4548_v40 = vadd.f32 %v4547_v29, %v4546_v19  ;;  %v4870_v57 = vsel %vm3455_vm7, %v4539_v22, %v4869_v38  ;;  %v3902_v15 = vadd.f32 %v9276_v51, %v10514_v23  ;;  %v9368_v2 = vpop.f32.mrb[10].mxu0  ;;  %v10520_v19 = vld [vmem:[#allocation219_spill] sm:$0xff]  ;;  %v10522_v23 = vld [vmem:[#allocation94_spill] sm:$0xff] }
 0x4f6   : > { %v4556_v62 = vrot.slane %v4555_v16, 1  ;;  %v3903_v24 = vadd.f32 %v9273_v34, %v10515_v5  ;;  %v3904_v8 = vadd.f32 %v9276_v51, %v10516_v63  ;;  %v3905_v13 = vadd.f32 %v9273_v34, %v10517_v7  ;;  %v9378_v35 = vpop.f32.mrb[11].mxu0  ;;  %v10524_v5 = vld [vmem:[#allocation195_spill] sm:$0xff]  ;;  %v10527_v63 = vld [vmem:[#allocation212_spill] sm:$0xff] }
 0x4f7   : > { %v3906_v21 = vadd.f32 %v9276_v51, %v10518_v1  ;;  %v4871_v12 = vsel %vm3457_vm8, %v4548_v40, %v4870_v57  ;;  %v3907_v9 = vadd.f32 %v9273_v34, %v10519_v10  ;;  %v3908_v17 = vadd.f32 %v9276_v51, %v8482_v49  ;;  %v10528_v7 = vld [vmem:[#allocation211_spill] sm:$0xff]  ;;  %v10529_v1 = vld [vmem:[#allocation216_spill] sm:$0xff] }
 0x4f8   : > { %v4557_v55 = vadd.f32 %v4556_v62, %v4555_v16  ;;  %v3909_v20 = vadd.f32 %v9273_v34, %v10520_v19  ;;  %v4022_v28 = vmax.f32 %v3894_v32, 0.0  ;;  %v4023_v44 = vmax.f32 %v3895_v37, 0.0 }
 0x4f9   : > { %v4024_v27 = vmax.f32 %v3896_v18, 0.0  ;;  %v4025_v43 = vmax.f32 %v3897_v26, 0.0  ;;  %v4026_v22 = vmax.f32 %v3898_v25, 0.0  ;;  %v4027_v29 = vmax.f32 %v3899_v47, 0.0  ;;  %v10521_v18 = vld [vmem:[#allocation95_spill] sm:$0xff]  ;;  %v10523_v25 = vld [vmem:[#allocation196_spill] sm:$0xff] }
 0x4fa   : > { %v4872_v54 = vsel %vm3459_vm9, %v4557_v55, %v4871_v12  ;;  %v4028_v38 = vmax.f32 %v3900_v31, 0.0  ;;  %v4029_v50 = vmax.f32 %v3901_v45, 0.0  ;;  %v4030_v11 = vmax.f32 %v3902_v15, 0.0  ;;  %v10525_v31 = vld [vmem:[#allocation202_spill] sm:$0xff]  ;;  %v10526_v15 = vld [vmem:[#allocation129_spill] sm:$0xff] }
 0x4fb   : > { %v4906_v16 = vadd.f32 %v4872_v54, %v9276_v51  ;;  %v4031_v42 = vmax.f32 %v3903_v24, 0.0  ;;  %v4032_v61 = vmax.f32 %v3904_v8, 0.0  ;;  %v4033_v40 = vmax.f32 %v3905_v13, 0.0  ;;  %v10530_v55 = vld [vmem:[#allocation38_spill] sm:$0xff] }
 0x4fc   : > { %v4034_v49 = vmax.f32 %v3906_v21, 0.0  ;;  %v4035_v62 = vmax.f32 %v3907_v9, 0.0  ;;  %v4036_v32 = vmax.f32 %v3908_v17, 0.0  ;;  %v4037_v37 = vmax.f32 %v3909_v20, 0.0 }
 0x4fd   : > { %5633 = vmatprep.mubr.msk.f32.mxu1 %vm2806_vm2, %v4906_v16  ;;  %v4150_v57 = vmul.f32 %v4022_v28, %v10521_v18  ;;  %v4151_v26 = vmul.f32 %v4023_v44, %v10522_v23  ;;  %v4152_v47 = vmul.f32 %v4024_v27, %v10523_v25  ;;  %v4153_v51 = vmul.f32 %v4025_v43, %v10524_v5 }
 0x4fe   : > { %v4154_v45 = vmul.f32 %v4026_v22, %v10525_v31  ;;  %v4155_v24 = vmul.f32 %v4027_v29, %v10526_v15  ;;  %v4156_v8 = vmul.f32 %v4028_v38, %v10527_v63  ;;  %v4157_v13 = vmul.f32 %v4029_v50, %v10528_v7 }
 0x4ff   : > { %v4158_v21 = vmul.f32 %v4030_v11, %v10529_v1  ;;  %v4159_v12 = vmul.f32 %v4031_v42, %v10530_v55  ;;  %v4160_v10 = vmul.f32 %v4032_v61, %v8546_v58  ;;  %v4161_v9 = vmul.f32 %v4033_v40, %v8544_v39 }
 0x500   : > { %v4162_v17 = vmul.f32 %v4034_v49, %v8670_v60  ;;  %v4163_v19 = vmul.f32 %v4035_v62, %v8668_v33  ;;  %v4164_v20 = vmul.f32 %v4036_v32, %v8745_v6  ;;  %v4165_v28 = vmul.f32 %v4037_v37, %v8743_v4 }
 0x501   : > { %v4558_v44 = vsel %vm2806_vm2, %v4150_v57, 0.0  ;;  %v4559_v27 = vsel %vm2806_vm2, %v4151_v26, 0.0  ;;  %v4567_v54 = vsel %vm2806_vm2, %v4152_v47, 0.0  ;;  %v4568_v43 = vsel %vm2806_vm2, %v4153_v51, 0.0 }
 0x502   : > { %v4576_v58 = vsel %vm2806_vm2, %v4154_v45, 0.0  ;;  %v4560_v22 = vadd.f32 %v4559_v27, %v4558_v44  ;;  %v4569_v39 = vadd.f32 %v4568_v43, %v4567_v54  ;;  %v4577_v60 = vsel %vm2806_vm2, %v4155_v24, 0.0 }
 0x503   : > { %v4585_v33 = vsel %vm2806_vm2, %v4156_v8, 0.0  ;;  %v4578_v29 = vadd.f32 %v4577_v60, %v4576_v58  ;;  %v4586_v6 = vsel %vm2806_vm2, %v4157_v13, 0.0  ;;  %v4594_v4 = vsel %vm2806_vm2, %v4158_v21, 0.0 }
 0x504   : > { %v4595_v16 = vsel %vm2806_vm2, %v4159_v12, 0.0  ;;  %v4561_v38 = vrot.slane %v4560_v22, 4  ;;  %v4570_v50 = vrot.slane %v4569_v39, 4  ;;  %v4587_v11 = vadd.f32 %v4586_v6, %v4585_v33 }
 0x505   : > { %v4596_v42 = vadd.f32 %v4595_v16, %v4594_v4  ;;  %v4579_v61 = vrot.slane %v4578_v29, 4  ;;  %v4603_v40 = vsel %vm2806_vm2, %v4160_v10, 0.0  ;;  %v4604_v49 = vsel %vm2806_vm2, %v4161_v9, 0.0 }
 0x506   : > { %v4612_v62 = vsel %vm2806_vm2, %v4162_v17, 0.0  ;;  %v4562_v32 = vadd.f32 %v4561_v38, %v4560_v22  ;;  %v4571_v37 = vadd.f32 %v4570_v50, %v4569_v39  ;;  %v4588_v18 = vrot.slane %v4587_v11, 4 }
 0x507   : > { %v4597_v57 = vrot.slane %v4596_v42, 4  ;;  %v4580_v23 = vadd.f32 %v4579_v61, %v4578_v29  ;;  %v4605_v26 = vadd.f32 %v4604_v49, %v4603_v40  ;;  %v4613_v25 = vsel %vm2806_vm2, %v4163_v19, 0.0 }
 0x508   : > { %v4621_v47 = vsel %vm2806_vm2, %v4164_v20, 0.0  ;;  %v4563_v5 = vrot.slane %v4562_v32, 2  ;;  %v4572_v51 = vrot.slane %v4571_v37, 2  ;;  %v4589_v31 = vadd.f32 %v4588_v18, %v4587_v11 }
 0x509   : > { %v4598_v45 = vadd.f32 %v4597_v57, %v4596_v42  ;;  %v4581_v15 = vrot.slane %v4580_v23, 2  ;;  %v4606_v24 = vrot.slane %v4605_v26, 4  ;;  %v4614_v63 = vadd.f32 %v4613_v25, %v4612_v62  ;;  %v10532_v57 = vld [vmem:[#allocation200_spill] sm:$0xff] }
 0x50a   : > { %v4622_v8 = vsel %vm2806_vm2, %v4165_v28, 0.0  ;;  %v4564_v7 = vadd.f32 %v4563_v5, %v4562_v32  ;;  %v4573_v13 = vadd.f32 %v4572_v51, %v4571_v37  ;;  %v4590_v1 = vrot.slane %v4589_v31, 2  ;;  %v10531_v37 = vld [vmem:[#allocation110_spill] sm:$0xff]  ;;  %v10533_v5 = vld [vmem:[#allocation19_spill] sm:$0xff] }
 0x50b   : > { %v4599_v21 = vrot.slane %v4598_v45, 2  ;;  %v4582_v55 = vadd.f32 %v4581_v15, %v4580_v23  ;;  %v4607_v12 = vadd.f32 %v4606_v24, %v4605_v26  ;;  %v4615_v10 = vrot.slane %v4614_v63, 4  ;;  %v10535_v15 = vld [vmem:[#allocation205_spill] sm:$0xff] }
 0x50c   : > { %v4623_v9 = vadd.f32 %v4622_v8, %v4621_v47  ;;  %v4565_v17 = vrot.slane %v4564_v7, 1  ;;  %v4574_v19 = vrot.slane %v4573_v13, 1  ;;  %v4591_v20 = vadd.f32 %v4590_v1, %v4589_v31  ;;  %v10534_v31 = vld [vmem:[#allocation62_spill] sm:$0xff] }
 0x50d   : > { %v4600_v44 = vadd.f32 %v4599_v21, %v4598_v45  ;;  %v4583_v27 = vrot.slane %v4582_v55, 1  ;;  %v4608_v54 = vrot.slane %v4607_v12, 2  ;;  %v4616_v43 = vadd.f32 %v4615_v10, %v4614_v63  ;;  %v10538_v21 = vld [vmem:[#allocation214_spill] sm:$0xff] }
 0x50e   : > { %v4624_v58 = vrot.slane %v4623_v9, 4  ;;  %v4566_v22 = vadd.f32 %v4565_v17, %v4564_v7  ;;  %v4575_v39 = vadd.f32 %v4574_v19, %v4573_v13  ;;  %v4592_v60 = vrot.slane %v4591_v20, 1  ;;  %v10537_v13 = vld [vmem:[#allocation215_spill] sm:$0xff] }
 0x50f   : > { %v4601_v28 = vrot.slane %v4600_v44, 1  ;;  %v4584_v33 = vadd.f32 %v4583_v27, %v4582_v55  ;;  %v4609_v29 = vadd.f32 %v4608_v54, %v4607_v12  ;;  %v4617_v6 = vrot.slane %v4616_v43, 2  ;;  %v10539_v12 = vld [vmem:[#allocation221_spill] sm:$0xff] }
 0x510   : > { %v4625_v4 = vadd.f32 %v4624_v58, %v4623_v9  ;;  %v4593_v16 = vadd.f32 %v4592_v60, %v4591_v20  ;;  %v4873_v50 = vsel %vm3447_vm3, %v4575_v39, %v4566_v22  ;;  %v9425_v11 = vadd.f32 %v9270_v59, %v9368_v2  ;;  %v10540_v9 = vld [vmem:[#allocation220_spill] sm:$0xff] }
 0x511   : > { %v4602_v38 = vadd.f32 %v4601_v28, %v4600_v44  ;;  %v4610_v42 = vrot.slane %v4609_v29, 1  ;;  %v4618_v61 = vadd.f32 %v4617_v6, %v4616_v43  ;;  %v4874_v49 = vsel %vm3449_vm4, %v4584_v33, %v4873_v50 }
 0x512   : > { %v4626_v40 = vrot.slane %v4625_v4, 2  ;;  %v4875_v62 = vsel %vm3451_vm5, %v4593_v16, %v4874_v49  ;;  %v9431_v32 = vadd.f32 %v9270_v59, %v9378_v35  ;;  %v3911_v18 = vadd.f32 %v9425_v11, %v10531_v37  ;;  %v10536_v35 = vld [vmem:[#allocation204_spill] sm:$0xff] }
 0x513   : > { %v3913_v23 = vadd.f32 %v9425_v11, %v10532_v57  ;;  %v4611_v26 = vadd.f32 %v4610_v42, %v4609_v29  ;;  %v4619_v2 = vrot.slane %v4618_v61, 1  ;;  %v4876_v47 = vsel %vm3453_vm6, %v4602_v38, %v4875_v62  ;;  %v10542_v62 = vld [vmem:[#allocation67_spill] sm:$0xff]  ;;  %v10544_v57 = vld [vmem:[#allocation169_spill] sm:$0xff] }
 0x514   : > { %v4627_v25 = vadd.f32 %v4626_v40, %v4625_v4  ;;  %v3910_v51 = vadd.f32 %v9431_v32, %v10533_v5  ;;  %v3912_v45 = vadd.f32 %v9431_v32, %v10534_v31  ;;  %v3914_v59 = vadd.f32 %v9431_v32, %v10535_v15  ;;  %v10541_v40 = vld [vmem:[#allocation218_spill] sm:$0xff] }
 0x515   : > { %v3915_v24 = vadd.f32 %v9425_v11, %v10536_v35  ;;  %v4620_v63 = vadd.f32 %v4619_v2, %v4618_v61  ;;  %v4877_v7 = vsel %vm3455_vm7, %v4611_v26, %v4876_v47  ;;  %v3916_v1 = vadd.f32 %v9431_v32, %v10537_v13  ;;  %v10545_v26 = vld [vmem:[#allocation224_spill] sm:$0xff] }
 0x516   : > { %v4628_v8 = vrot.slane %v4627_v25, 1  ;;  %v3917_v55 = vadd.f32 %v9425_v11, %v10538_v21  ;;  %v3918_v10 = vadd.f32 %v9431_v32, %v10539_v12  ;;  %v3919_v17 = vadd.f32 %v9425_v11, %v10540_v9  ;;  %v10550_v13 = vld [vmem:[#allocation244_spill] sm:$0xff]  ;;  %v10551_v21 = vld [vmem:[#allocation243_spill] sm:$0xff] }
 0x517   : > { %v3920_v19 = vadd.f32 %v9431_v32, %v8633_v48  ;;  %v4878_v44 = vsel %vm3457_vm8, %v4620_v63, %v4877_v7  ;;  %v3921_v27 = vadd.f32 %v9425_v11, %v8608_v36  ;;  %v3922_v54 = vadd.f32 %v9431_v32, %v8712_v0 }
 0x518   : > { %v4629_v20 = vadd.f32 %v4628_v8, %v4627_v25  ;;  %v3923_v43 = vadd.f32 %v9425_v11, %v8709_v52  ;;  %v3924_v58 = vadd.f32 %v9431_v32, %v8819_v3  ;;  %v3925_v22 = vadd.f32 %v9425_v11, %v8809_v14  ;;  %v10546_v25 = vld [vmem:[#allocation223_spill] sm:$0xff] }
 0x519   : > { %v4038_v39 = vmax.f32 %v3910_v51, 0.0  ;;  %v4039_v60 = vmax.f32 %v3911_v18, 0.0  ;;  %v4040_v28 = vmax.f32 %v3912_v45, 0.0  ;;  %v4041_v33 = vmax.f32 %v3913_v23, 0.0  ;;  %v10543_v18 = vld [vmem:[#allocation170_spill] sm:$0xff]  ;;  %v10549_v8 = vld [vmem:[#allocation239_spill] sm:$0xff] }
 0x51a   : > { %v4879_v48 = vsel %vm3459_vm9, %v4629_v20, %v4878_v44  ;;  %v4042_v29 = vmax.f32 %v3914_v59, 0.0  ;;  %v4043_v6 = vmax.f32 %v3915_v24, 0.0  ;;  %v4044_v0 = vmax.f32 %v3916_v1, 0.0  ;;  %v10547_v59 = vld [vmem:[#allocation203_spill] sm:$0xff]  ;;  %v10548_v24 = vld [vmem:[#allocation240_spill] sm:$0xff] }
 0x51b   : > { %v4907_v36 = vadd.f32 %v4879_v48, %v9273_v34  ;;  %v4045_v4 = vmax.f32 %v3917_v55, 0.0  ;;  %v4046_v16 = vmax.f32 %v3918_v10, 0.0  ;;  %v4047_v52 = vmax.f32 %v3919_v17, 0.0 }
 0x51c   : > { %v4048_v38 = vmax.f32 %v3920_v19, 0.0  ;;  %v4049_v3 = vmax.f32 %v3921_v27, 0.0  ;;  %v4050_v50 = vmax.f32 %v3922_v54, 0.0  ;;  %v4051_v14 = vmax.f32 %v3923_v43, 0.0 }
 0x51d   : > { %5634 = vmatmul.mubr.msk.f32.gmra.mrb[16].mxu1 %vm2806_vm2, %v4907_v36  ;;  %v4052_v42 = vmax.f32 %v3924_v58, 0.0  ;;  %v4053_v61 = vmax.f32 %v3925_v22, 0.0  ;;  %v4166_v49 = vmul.f32 %v4038_v39, %v10541_v40  ;;  %v4167_v37 = vmul.f32 %v4039_v60, %v10542_v62 }
 0x51e   : > { %v4168_v34 = vmul.f32 %v4040_v28, %v10543_v18  ;;  %v4169_v23 = vmul.f32 %v4041_v33, %v10544_v57  ;;  %v4170_v2 = vmul.f32 %v4042_v29, %v10545_v26  ;;  %v4171_v47 = vmul.f32 %v4043_v6, %v10546_v25 }
 0x51f   : > { %v4172_v5 = vmul.f32 %v4044_v0, %v8697_v53  ;;  %v4173_v51 = vmul.f32 %v4045_v4, %v8695_v56  ;;  %v4174_v31 = vmul.f32 %v4046_v16, %v8769_v30  ;;  %v4175_v45 = vmul.f32 %v4047_v52, %v8767_v46 }
 0x520   : > { %v4176_v15 = vmul.f32 %v4048_v38, %v8816_v41  ;;  %v4177_v35 = vmul.f32 %v4049_v3, %v10547_v59  ;;  %v4178_v63 = vmul.f32 %v4050_v50, %v10548_v24  ;;  %v4179_v7 = vmul.f32 %v4051_v14, %v10549_v8 }
 0x521   : > { %v4180_v1 = vmul.f32 %v4052_v42, %v10550_v13  ;;  %v4181_v55 = vmul.f32 %v4053_v61, %v10551_v21  ;;  %v4630_v53 = vsel %vm2806_vm2, %v4166_v49, 0.0  ;;  %v4631_v56 = vsel %vm2806_vm2, %v4167_v37, 0.0 }
 0x522   : > { %v4639_v30 = vsel %vm2806_vm2, %v4168_v34, 0.0  ;;  %v4632_v12 = vadd.f32 %v4631_v56, %v4630_v53  ;;  %v4640_v46 = vsel %vm2806_vm2, %v4169_v23, 0.0  ;;  %v4648_v41 = vsel %vm2806_vm2, %v4170_v2, 0.0  ;;  %v10552_v53 = vld [vmem:[#allocation144_spill] sm:$0xff] }
 0x523   : > { %v4649_v10 = vsel %vm2806_vm2, %v4171_v47, 0.0  ;;  %v4641_v9 = vadd.f32 %v4640_v46, %v4639_v30  ;;  %v4657_v19 = vsel %vm2806_vm2, %v4172_v5, 0.0  ;;  %v4658_v20 = vsel %vm2806_vm2, %v4173_v51, 0.0 }
 0x524   : > { %v4650_v17 = vadd.f32 %v4649_v10, %v4648_v41  ;;  %v4633_v44 = vrot.slane %v4632_v12, 4  ;;  %v4659_v27 = vadd.f32 %v4658_v20, %v4657_v19  ;;  %v4666_v54 = vsel %vm2806_vm2, %v4174_v31, 0.0  ;;  %v10553_v41 = vld [vmem:[#allocation26_spill] sm:$0xff] }
 0x525   : > { %v4667_v43 = vsel %vm2806_vm2, %v4175_v45, 0.0  ;;  %v4642_v58 = vrot.slane %v4641_v9, 4  ;;  %v4675_v48 = vsel %vm2806_vm2, %v4176_v15, 0.0  ;;  %v4676_v33 = vsel %vm2806_vm2, %v4177_v35, 0.0  ;;  %v10554_v20 = vld [vmem:[#allocation146_spill] sm:$0xff] }
 0x526   : > { %v4651_v22 = vrot.slane %v4650_v17, 4  ;;  %v4668_v39 = vadd.f32 %v4667_v43, %v4666_v54  ;;  %v4634_v60 = vadd.f32 %v4633_v44, %v4632_v12  ;;  %v4660_v28 = vrot.slane %v4659_v27, 4  ;;  %v10555_v43 = vld [vmem:[#allocation145_spill] sm:$0xff] }
 0x527   : > { %v4684_v36 = vsel %vm2806_vm2, %v4178_v63, 0.0  ;;  %v4643_v29 = vadd.f32 %v4642_v58, %v4641_v9  ;;  %v4677_v4 = vadd.f32 %v4676_v33, %v4675_v48  ;;  %v4685_v38 = vsel %vm2806_vm2, %v4179_v7, 0.0  ;;  %v10557_v33 = vld [vmem:[#allocation37_spill] sm:$0xff] }
 0x528   : > { %v4652_v6 = vadd.f32 %v4651_v22, %v4650_v17  ;;  %v4669_v0 = vrot.slane %v4668_v39, 4  ;;  %v4635_v16 = vrot.slane %v4634_v60, 2  ;;  %v4661_v52 = vadd.f32 %v4660_v28, %v4659_v27  ;;  %v10556_v22 = vld [vmem:[#allocation217_spill] sm:$0xff] }
 0x529   : > { %v4693_v3 = vsel %vm2806_vm2, %v4180_v1, 0.0  ;;  %v4644_v50 = vrot.slane %v4643_v29, 2  ;;  %v4678_v61 = vrot.slane %v4677_v4, 4  ;;  %v4686_v62 = vadd.f32 %v4685_v38, %v4684_v36 }
 0x52a   : > { %v4653_v14 = vrot.slane %v4652_v6, 2  ;;  %v4670_v42 = vadd.f32 %v4669_v0, %v4668_v39  ;;  %v4636_v40 = vadd.f32 %v4635_v16, %v4634_v60  ;;  %v4662_v49 = vrot.slane %v4661_v52, 2 }
 0x52b   : > { %v4694_v37 = vsel %vm2806_vm2, %v4181_v55, 0.0  ;;  %v4645_v18 = vadd.f32 %v4644_v50, %v4643_v29  ;;  %v4679_v23 = vadd.f32 %v4678_v61, %v4677_v4  ;;  %v4687_v25 = vrot.slane %v4686_v62, 4  ;;  %v10559_v4 = vld [vmem:[#allocation71_spill] sm:$0xff]  ;;  %v10562_v61 = vld [vmem:[#allocation234_spill] sm:$0xff] }
 0x52c   : > { %v4654_v34 = vadd.f32 %v4653_v14, %v4652_v6  ;;  %v4671_v57 = vrot.slane %v4670_v42, 2  ;;  %v4637_v26 = vrot.slane %v4636_v40, 1  ;;  %v4663_v2 = vadd.f32 %v4662_v49, %v4661_v52  ;;  %v10558_v6 = vld [vmem:[#allocation222_spill] sm:$0xff]  ;;  %v10561_v14 = vld [vmem:[#allocation229_spill] sm:$0xff] }
 0x52d   : > { %v4695_v47 = vadd.f32 %v4694_v37, %v4693_v3  ;;  %v4646_v5 = vrot.slane %v4645_v18, 1  ;;  %v4680_v45 = vrot.slane %v4679_v23, 2  ;;  %v4688_v35 = vadd.f32 %v4687_v25, %v4686_v62  ;;  %v10560_v52 = vld [vmem:[#allocation230_spill] sm:$0xff]  ;;  %v10563_v49 = vld [vmem:[#allocation233_spill] sm:$0xff] }
 0x52e   : > { %v4655_v51 = vrot.slane %v4654_v34, 1  ;;  %v4672_v31 = vadd.f32 %v4671_v57, %v4670_v42  ;;  %v4638_v15 = vadd.f32 %v4637_v26, %v4636_v40  ;;  %v4664_v59 = vrot.slane %v4663_v2, 1  ;;  %v10564_v37 = vld [vmem:[#allocation238_spill] sm:$0xff] }
 0x52f   : > { %v4696_v24 = vrot.slane %v4695_v47, 4  ;;  %v4647_v63 = vadd.f32 %v4646_v5, %v4645_v18  ;;  %v4681_v13 = vadd.f32 %v4680_v45, %v4679_v23  ;;  %v4689_v21 = vrot.slane %v4688_v35, 2  ;;  %v10566_v23 = vld [vmem:[#allocation242_spill] sm:$0xff] }
 0x530   : > { %v4656_v8 = vadd.f32 %v4655_v51, %v4654_v34  ;;  %v4673_v7 = vrot.slane %v4672_v31, 1  ;;  %v4665_v1 = vadd.f32 %v4664_v59, %v4663_v2  ;;  %v3926_v56 = vadd.f32 %v9431_v32, %v10552_v53  ;;  %v10565_v34 = vld [vmem:[#allocation237_spill] sm:$0xff] }
 0x531   : > { %v4697_v55 = vadd.f32 %v4696_v24, %v4695_v47  ;;  %v4682_v12 = vrot.slane %v4681_v13, 1  ;;  %v4880_v46 = vsel %vm3447_vm3, %v4647_v63, %v4638_v15  ;;  %v3927_v10 = vadd.f32 %v9425_v11, %v10553_v41  ;;  %v10567_v47 = vld [vmem:[#allocation241_spill] sm:$0xff] }
 0x532   : > { %v4674_v30 = vadd.f32 %v4673_v7, %v4672_v31  ;;  %v4690_v9 = vadd.f32 %v4689_v21, %v4688_v35  ;;  %v4881_v19 = vsel %vm3449_vm4, %v4656_v8, %v4880_v46  ;;  %v3928_v44 = vadd.f32 %v9431_v32, %v10554_v20  ;;  %v10568_v46 = vld [vmem:[#allocation226_spill] sm:$0xff]  ;;  %v10571_v20 = vld [vmem:[#allocation227_spill] sm:$0xff] }
 0x533   : > { %v4698_v17 = vrot.slane %v4697_v55, 2  ;;  %v4683_v27 = vadd.f32 %v4682_v12, %v4681_v13  ;;  %v4882_v54 = vsel %vm3451_vm5, %v4665_v1, %v4881_v19  ;;  %v3929_v58 = vadd.f32 %v9425_v11, %v10555_v43 }
 0x534   : > { %v3930_v39 = vadd.f32 %v9431_v32, %v10556_v22  ;;  %v4691_v48 = vrot.slane %v4690_v9, 1  ;;  %v4883_v28 = vsel %vm3453_vm6, %v4674_v30, %v4882_v54  ;;  %v3931_v36 = vadd.f32 %v9425_v11, %v10557_v33  ;;  %v10573_v54 = vld [vmem:[#allocation231_spill] sm:$0xff]  ;;  %v10577_v33 = vld [vmem:[#allocation25_spill] sm:$0xff] }
 0x535   : > { %v4699_v60 = vadd.f32 %v4698_v17, %v4697_v55  ;;  %v4884_v29 = vsel %vm3455_vm7, %v4683_v27, %v4883_v28  ;;  %v3932_v0 = vadd.f32 %v9431_v32, %v10558_v6  ;;  %v3933_v16 = vadd.f32 %v9425_v11, %v10559_v4  ;;  %v10570_v17 = vld [vmem:[#allocation228_spill] sm:$0xff] }
 0x536   : > { %v3934_v38 = vadd.f32 %v9431_v32, %v10560_v52  ;;  %v4692_v3 = vadd.f32 %v4691_v48, %v4690_v9  ;;  %v3935_v42 = vadd.f32 %v9425_v11, %v10561_v14  ;;  %v3936_v40 = vadd.f32 %v9431_v32, %v10562_v61  ;;  %v10572_v27 = vld [vmem:[#allocation232_spill] sm:$0xff] }
 0x537   : > { %v4700_v50 = vrot.slane %v4699_v60, 1  ;;  %v3937_v62 = vadd.f32 %v9425_v11, %v10563_v49  ;;  %v3938_v18 = vadd.f32 %v9431_v32, %v10564_v37  ;;  %v3939_v57 = vadd.f32 %v9425_v11, %v10565_v34 }
 0x538   : > { %v3940_v26 = vadd.f32 %v9431_v32, %v10566_v23  ;;  %v4885_v25 = vsel %vm3457_vm8, %v4692_v3, %v4884_v29  ;;  %v3941_v5 = vadd.f32 %v9425_v11, %v10567_v47  ;;  %v4054_v51 = vmax.f32 %v3926_v56, 0.0  ;;  %v10578_v29 = vld [vmem:[#allocation34_spill] sm:$0xff] }
 0x539   : > { %v4701_v2 = vadd.f32 %v4700_v50, %v4699_v60  ;;  %v4055_v31 = vmax.f32 %v3927_v10, 0.0  ;;  %v4056_v45 = vmax.f32 %v3928_v44, 0.0  ;;  %v4057_v15 = vmax.f32 %v3929_v58, 0.0  ;;  %v10569_v10 = vld [vmem:[#allocation225_spill] sm:$0xff]  ;;  %v10574_v58 = vld [vmem:[#allocation236_spill] sm:$0xff]  ;;  %v10576_v60 = vld [vmem:[#allocation206_spill] sm:$0xff] }
 0x53a   : > { %v4058_v59 = vmax.f32 %v3930_v39, 0.0  ;;  %v4059_v24 = vmax.f32 %v3931_v36, 0.0  ;;  %v4060_v63 = vmax.f32 %v3932_v0, 0.0  ;;  %v4061_v8 = vmax.f32 %v3933_v16, 0.0  ;;  %v10575_v39 = vld [vmem:[#allocation235_spill] sm:$0xff]  ;;  %v10579_v0 = vld [vmem:[#allocation33_spill] sm:$0xff] }
 0x53b   : > { %v4886_v35 = vsel %vm3459_vm9, %v4701_v2, %v4885_v25  ;;  %v4062_v13 = vmax.f32 %v3934_v38, 0.0  ;;  %v4063_v1 = vmax.f32 %v3935_v42, 0.0  ;;  %v4064_v21 = vmax.f32 %v3936_v40, 0.0  ;;  %v10580_v16 = vld [vmem:[#allocation246_spill] sm:$0xff]  ;;  %v10581_v38 = vld [vmem:[#allocation245_spill] sm:$0xff]  ;;  %v10582_v50 = vld [vmem:[#allocation248_spill] sm:$0xff] }
 0x53c   : > { %v4908_v7 = vadd.f32 %v4886_v35, %v9431_v32  ;;  %v4065_v55 = vmax.f32 %v3937_v62, 0.0  ;;  %v4066_v53 = vmax.f32 %v3938_v18, 0.0  ;;  %v4067_v30 = vmax.f32 %v3939_v57, 0.0  ;;  %v10583_v42 = vld [vmem:[#allocation247_spill] sm:$0xff] }
 0x53d   : > { %v4068_v12 = vmax.f32 %v3940_v26, 0.0  ;;  %v4069_v56 = vmax.f32 %v3941_v5, 0.0  ;;  %v4182_v41 = vmul.f32 %v4054_v51, %v10568_v46  ;;  %v4183_v9 = vmul.f32 %v4055_v31, %v10569_v10 }
 0x53e   : > { %5636 = vmatprep.mubr.msk.f32.mxu1 %vm2806_vm2, %v4908_v7  ;;  %v4184_v19 = vmul.f32 %v4056_v45, %v10570_v17  ;;  %v4185_v44 = vmul.f32 %v4057_v15, %v10571_v20  ;;  %v4186_v32 = vmul.f32 %v4058_v59, %v10572_v27  ;;  %v4187_v43 = vmul.f32 %v4059_v24, %v10573_v54 }
 0x53f   : > { %v4188_v22 = vmul.f32 %v4060_v63, %v10574_v58  ;;  %v4189_v48 = vmul.f32 %v4061_v8, %v10575_v39  ;;  %v4190_v28 = vmul.f32 %v4062_v13, %v10576_v60  ;;  %v4191_v36 = vmul.f32 %v4063_v1, %v10577_v33 }
 0x540   : > { %v4192_v6 = vmul.f32 %v4064_v21, %v10578_v29  ;;  %v4193_v4 = vmul.f32 %v4065_v55, %v10579_v0  ;;  %v4194_v52 = vmul.f32 %v4066_v53, %v10580_v16  ;;  %v4195_v3 = vmul.f32 %v4067_v30, %v10581_v38  ;;  %v5061_v0 = vld [vmem:[#allocation11 + $0x20] sm:$0xff] }
 0x541   : > { %v4196_v14 = vmul.f32 %v4068_v12, %v10582_v50  ;;  %v4197_v61 = vmul.f32 %v4069_v56, %v10583_v42  ;;  %v4702_v40 = vsel %vm2806_vm2, %v4182_v41, 0.0  ;;  %v4703_v49 = vsel %vm2806_vm2, %v4183_v9, 0.0 }
 0x542   : > { %v4711_v62 = vsel %vm2806_vm2, %v4184_v19, 0.0  ;;  %v4704_v37 = vadd.f32 %v4703_v49, %v4702_v40  ;;  %v4712_v18 = vsel %vm2806_vm2, %v4185_v44, 0.0  ;;  %v4720_v34 = vsel %vm2806_vm2, %v4186_v32, 0.0  ;;  %v5629_v46 = vpop.f32.mrb[12].mxu1  ;;  %v9579_v40 = vld [vmem:[%s9649_s8 + $0x1] ss:$0 sm:$0xff] }
 0x543   : > { %v4721_v57 = vsel %vm2806_vm2, %v4187_v43, 0.0  ;;  %v4713_v23 = vadd.f32 %v4712_v18, %v4711_v62  ;;  %v4729_v2 = vsel %vm2806_vm2, %v4188_v22, 0.0  ;;  %v4730_v25 = vsel %vm2806_vm2, %v4189_v48, 0.0  ;;  %v5013_v19 = vpop.f32.mrb[13].mxu1  ;;  %v5063_v18 = vld [vmem:[#allocation11 + $0x30] sm:$0xff] }
 0x544   : > { %v4722_v26 = vadd.f32 %v4721_v57, %v4720_v34  ;;  %v4705_v47 = vrot.slane %v4704_v37, 4  ;;  %v4731_v5 = vadd.f32 %v4730_v25, %v4729_v2  ;;  %v4738_v51 = vsel %vm2806_vm2, %v4190_v28, 0.0  ;;  %v5064_v34 = vld [vmem:[#allocation11 + $0x38] sm:$0xff] }
 0x545   : > { %v4739_v31 = vsel %vm2806_vm2, %v4191_v36, 0.0  ;;  %v4714_v45 = vrot.slane %v4713_v23, 4  ;;  %v4747_v35 = vsel %vm2806_vm2, %v4192_v6, 0.0  ;;  %v4748_v8 = vsel %vm2806_vm2, %v4193_v4, 0.0  ;;  %v5062_v4 = vld [vmem:[#allocation11 + $0x28] sm:$0xff] }
 0x546   : > { %v4723_v15 = vrot.slane %v4722_v26, 4  ;;  %v4740_v59 = vadd.f32 %v4739_v31, %v4738_v51  ;;  %v4706_v24 = vadd.f32 %v4705_v47, %v4704_v37  ;;  %v4732_v63 = vrot.slane %v4731_v5, 4 }
 0x547   : > { %v4756_v7 = vsel %vm2806_vm2, %v4194_v52, 0.0  ;;  %v4715_v13 = vadd.f32 %v4714_v45, %v4713_v23  ;;  %v4749_v55 = vadd.f32 %v4748_v8, %v4747_v35  ;;  %v4757_v12 = vsel %vm2806_vm2, %v4195_v3, 0.0 }
 0x548   : > { %v4724_v1 = vadd.f32 %v4723_v15, %v4722_v26  ;;  %v4741_v21 = vrot.slane %v4740_v59, 4  ;;  %v4707_v53 = vrot.slane %v4706_v24, 2  ;;  %v4733_v30 = vadd.f32 %v4732_v63, %v4731_v5 }
 0x549   : > { %v4765_v56 = vsel %vm2806_vm2, %v4196_v14, 0.0  ;;  %v4716_v41 = vrot.slane %v4715_v13, 2  ;;  %v4750_v17 = vrot.slane %v4749_v55, 4  ;;  %v4758_v27 = vadd.f32 %v4757_v12, %v4756_v7 }
 0x54a   : > { %v4725_v10 = vrot.slane %v4724_v1, 2  ;;  %v4742_v9 = vadd.f32 %v4741_v21, %v4740_v59  ;;  %v4708_v20 = vadd.f32 %v4707_v53, %v4706_v24  ;;  %v4734_v44 = vrot.slane %v4733_v30, 2 }
 0x54b   : > { %v4766_v32 = vsel %vm2806_vm2, %v4197_v61, 0.0  ;;  %v4717_v54 = vadd.f32 %v4716_v41, %v4715_v13  ;;  %v4751_v22 = vadd.f32 %v4750_v17, %v4749_v55  ;;  %v4759_v60 = vrot.slane %v4758_v27, 4 }
 0x54c   : > { %v4726_v43 = vadd.f32 %v4725_v10, %v4724_v1  ;;  %v4743_v58 = vrot.slane %v4742_v9, 2  ;;  %v4709_v39 = vrot.slane %v4708_v20, 1  ;;  %v4735_v48 = vadd.f32 %v4734_v44, %v4733_v30 }
 0x54d   : > { %v4767_v28 = vadd.f32 %v4766_v32, %v4765_v56  ;;  %v4718_v33 = vrot.slane %v4717_v54, 1  ;;  %v4752_v6 = vrot.slane %v4751_v22, 2  ;;  %v4760_v38 = vadd.f32 %v4759_v60, %v4758_v27 }
 0x54e   : > { %v4727_v36 = vrot.slane %v4726_v43, 1  ;;  %v4744_v29 = vadd.f32 %v4743_v58, %v4742_v9  ;;  %v4710_v16 = vadd.f32 %v4709_v39, %v4708_v20  ;;  %v4736_v52 = vrot.slane %v4735_v48, 1 }
 0x54f   : > { %v4768_v3 = vrot.slane %v4767_v28, 4  ;;  %v4719_v50 = vadd.f32 %v4718_v33, %v4717_v54  ;;  %v4753_v61 = vadd.f32 %v4752_v6, %v4751_v22  ;;  %v4761_v49 = vrot.slane %v4760_v38, 2  ;;  %v5491_v54 = vld [vmem:[%s10351_s12 + $0x1] ss:$0 sm:$0xff] }
 0x550   : > { %v4728_v14 = vadd.f32 %v4727_v36, %v4726_v43  ;;  %v4745_v42 = vrot.slane %v4744_v29, 1  ;;  %v5683_v37 = vpack.c.bf16 %v5062_v4, %v5061_v0  ;;  %v4737_v57 = vadd.f32 %v4736_v52, %v4735_v48 }
 0x551   : > { %v4769_v62 = vadd.f32 %v4768_v3, %v4767_v28  ;;  %v4754_v26 = vrot.slane %v4753_v61, 1  ;;  %v4887_v2 = vsel %vm3447_vm3, %v4719_v50, %v4710_v16  ;;  %v4762_v25 = vadd.f32 %v4761_v49, %v4760_v38 }
 0x552   : > { %v4746_v23 = vadd.f32 %v4745_v42, %v4744_v29  ;;  %v4888_v5 = vsel %vm3449_vm4, %v4728_v14, %v4887_v2  ;;  %5684 = vmatprep.subr.bf16.mxu0 %v5683_v37  ;;  %v5014_v51 = vadd.f32 %v9579_v40, %v5013_v19  ;;  %v5019_v15 = vadd.f32 %v5629_v46, %v9579_v40 }
 0x553   : > { %v4770_v47 = vrot.slane %v4769_v62, 2  ;;  %v4755_v31 = vadd.f32 %v4754_v26, %v4753_v61  ;;  %v4889_v45 = vsel %vm3451_vm5, %v4737_v57, %v4888_v5  ;;  %5686 = vmatpush3.bf16.msra.mxu0 %v5683_v37  ;;  %v5687_v59 = vpack.c.bf16 %v5064_v34, %v5063_v18 }
 0x554   : > { %v4763_v35 = vrot.slane %v4762_v25, 1  ;;  %v4890_v63 = vsel %vm3453_vm6, %v4746_v23, %v4889_v45  ;;  %v5052_v8 = vmax.f32 %v5014_v51, 0.0  ;;  %v5053_v53 = vmax.f32 %v5019_v15, 0.0  ;;  %v5500_v51 = vld [vmem:[%s10584_s10] ss:$0 sm:$0xff] }
 0x555   : > { %v4771_v24 = vadd.f32 %v4770_v47, %v4769_v62  ;;  %v4891_v7 = vsel %vm3455_vm7, %v4755_v31, %v4890_v63  ;;  %5688 = vmatprep.subr.bf16.mxu0 %v5687_v59 }
 0x556   : > { %v4764_v13 = vadd.f32 %v4763_v35, %v4762_v25  ;;  %5647 = vmatprep.mubr.msk.f32.mxu0 %vm2806_vm2, %v5052_v8 }
 0x557   : > { %v4772_v1 = vrot.slane %v4771_v24, 1  ;;  %5690 = vmatpush3.bf16.msra.mxu0 %v5687_v59 }
 0x558   : > { %v4892_v55 = vsel %vm3457_vm8, %v4764_v13, %v4891_v7 }
 0x559   : > { %v4773_v21 = vadd.f32 %v4772_v1, %v4771_v24 }
 0x55a   : > { %5648 = vmatmul.mubr.msk.f32.vlgmr.msra.gmra.mrb[12].mxu0 %vm2806_vm2, %v5053_v53 }
 0x55b   : > { %v4893_v30 = vsel %vm3459_vm9, %v4773_v21, %v4892_v55 }
 0x55c   : > { %v4909_v12 = vadd.f32 %v4893_v30, %v9425_v11 }
 0x55e   : > { %5637 = vmatmul.mubr.msk.f32.gmra.mrb[18].mxu1 %vm2806_vm2, %v4909_v12 }
 0x5a8   : > { %v5632_v56 = vpop.f32.mrb[14].mxu1 }
 0x5a9   : > { %v5029_v46 = vadd.f32 %v5632_v56, %v9579_v40  ;;  %v5023_v41 = vpop.f32.mrb[15].mxu1 }
 0x5aa   : > { %v5024_v10 = vadd.f32 %v9579_v40, %v5023_v41 }
 0x5ab   : > { %v5055_v17 = vmax.f32 %v5029_v46, 0.0 }
 0x5ac   : > { %v5054_v9 = vmax.f32 %v5024_v10, 0.0 }
 0x5ae   : > { %5650 = vmatprep.mubr.msk.f32.mxu0 %vm2806_vm2, %v5054_v9 }
 0x5af   : > { %5651 = vmatmul.mubr.msk.f32.gmra.mrb[14].mxu0 %vm2806_vm2, %v5055_v17 }
 0x5f0   : > { %v5635_v19 = vpop.f32.mrb[16].mxu1 }
 0x5f1   : > { %v5039_v20 = vadd.f32 %v5635_v19, %v9579_v40  ;;  %v5033_v44 = vpop.f32.mrb[17].mxu1 }
 0x5f2   : > { %v5034_v11 = vadd.f32 %v9579_v40, %v5033_v44 }
 0x5f3   : > { %v5057_v32 = vmax.f32 %v5039_v20, 0.0 }
 0x5f4   : > { %v5056_v27 = vmax.f32 %v5034_v11, 0.0 }
 0x5f6   : > { %5653 = vmatprep.mubr.msk.f32.mxu0 %vm2806_vm2, %v5056_v27 }
 0x5f7   : > { %5654 = vmatmul.mubr.msk.f32.gmra.mrb[16].mxu0 %vm2806_vm2, %v5057_v32 }
 0x62d   : > { %v5649_v43 = vpop.f32.mrb[12].mxu0 }
 0x62e   : > { %v5169_v58 = vadd.f32 %v5649_v43, %v5491_v54  ;;  %v5163_v22 = vpop.f32.mrb[13].mxu0 }
 0x62f   : > { %v5164_v39 = vadd.f32 %v5491_v54, %v5163_v22 }
 0x630   : > { %v5203_v60 = vsel %vm2806_vm2, %v5169_v58, 0.0 }
 0x631   : > { %v5638_v48 = vpop.f32.mrb[18].mxu1  ;;  %v5202_v36 = vsel %vm2806_vm2, %v5164_v39, 0.0 }
 0x632   : > { %v5049_v28 = vadd.f32 %v5638_v48, %v9579_v40  ;;  %v5043_v33 = vpop.f32.mrb[19].mxu1  ;;  %v5204_v6 = vadd.f32 %v5203_v60, %v5202_v36 }
 0x633   : > { %v5044_v29 = vadd.f32 %v9579_v40, %v5043_v33 }
 0x634   : > { %v5059_v4 = vmax.f32 %v5049_v28, 0.0  ;;  %v5205_v16 = vrot.slane %v5204_v6, 4 }
 0x635   : > { %v5058_v0 = vmax.f32 %v5044_v29, 0.0 }
 0x636   : > { %v5206_v52 = vadd.f32 %v5205_v16, %v5204_v6  ;;  %v5501_v6 = vld [vmem:[#allocation2] ss:$0 sm:$0xff] }
 0x637   : > { %5656 = vmatprep.mubr.msk.f32.mxu0 %vm2806_vm2, %v5058_v0 }
 0x638   : > { %5657 = vmatmul.mubr.msk.f32.gmra.mrb[18].mxu0 %vm2806_vm2, %v5059_v4  ;;  %v5207_v42 = vrot.slane %v5206_v52, 2 }
 0x63a   : > { %v5208_v40 = vadd.f32 %v5207_v42, %v5206_v52 }
 0x63c   : > { %v5209_v34 = vrot.slane %v5208_v40, 1 }
 0x63e   : > { %v5210_v26 = vadd.f32 %v5209_v34, %v5208_v40 }
 0x640   : > { %v5239_v47 = vmul.f32 0.0625, %v5210_v26 }
 0x642   : > { %v5250_v45 = vmul.f32 %v5500_v51, %v5239_v47 }
 0x682   : > { %v5652_v38 = vpop.f32.mrb[14].mxu0 }
 0x683   : > { %v5179_v3 = vadd.f32 %v5652_v38, %v5491_v54  ;;  %v5173_v50 = vpop.f32.mrb[15].mxu0 }
 0x684   : > { %v5174_v14 = vadd.f32 %v5491_v54, %v5173_v50 }
 0x685   : > { %v5212_v61 = vsel %vm2806_vm2, %v5179_v3, 0.0 }
 0x686   : > { %v5211_v49 = vsel %vm2806_vm2, %v5174_v14, 0.0 }
 0x687   : > { %v5213_v62 = vadd.f32 %v5212_v61, %v5211_v49 }
 0x689   : > { %v5214_v37 = vrot.slane %v5213_v62, 4 }
 0x68b   : > { %v5215_v18 = vadd.f32 %v5214_v37, %v5213_v62 }
 0x68d   : > { %v5216_v57 = vrot.slane %v5215_v18, 2 }
 0x68f   : > { %v5217_v23 = vadd.f32 %v5216_v57, %v5215_v18 }
 0x691   : > { %v5218_v2 = vrot.slane %v5217_v23, 1 }
 0x693   : > { %v5219_v25 = vadd.f32 %v5218_v2, %v5217_v23 }
 0x695   : > { %v5240_v5 = vmul.f32 0.0625, %v5219_v25 }
 0x697   : > { %v5251_v31 = vmul.f32 %v5500_v51, %v5240_v5 }
 0x699   : > { %v5258_v15 = vrot.slane %v5251_v31, 7 }
 0x69b   : > { %v5259_v59 = vsel %vm3447_vm3, %v5258_v15, %v5250_v45 }
 0x6ca   : > { %v5655_v35 = vpop.f32.mrb[16].mxu0 }
 0x6cb   : > { %v5189_v24 = vadd.f32 %v5655_v35, %v5491_v54  ;;  %v5183_v63 = vpop.f32.mrb[17].mxu0 }
 0x6cc   : > { %v5184_v8 = vadd.f32 %v5491_v54, %v5183_v63 }
 0x6cd   : > { %v5221_v7 = vsel %vm2806_vm2, %v5189_v24, 0.0 }
 0x6ce   : > { %v5220_v13 = vsel %vm2806_vm2, %v5184_v8, 0.0 }
 0x6cf   : > { %v5222_v1 = vadd.f32 %v5221_v7, %v5220_v13 }
 0x6d1   : > { %v5223_v21 = vrot.slane %v5222_v1, 4 }
 0x6d3   : > { %v5224_v55 = vadd.f32 %v5223_v21, %v5222_v1 }
 0x6d5   : > { %v5225_v53 = vrot.slane %v5224_v55, 2 }
 0x6d7   : > { %v5226_v30 = vadd.f32 %v5225_v53, %v5224_v55 }
 0x6d9   : > { %v5227_v12 = vrot.slane %v5226_v30, 1 }
 0x6db   : > { %v5228_v56 = vadd.f32 %v5227_v12, %v5226_v30 }
 0x6dd   : > { %v5241_v46 = vmul.f32 0.0625, %v5228_v56 }
 0x6df   : > { %v5252_v41 = vmul.f32 %v5500_v51, %v5241_v46 }
 0x6e1   : > { %v5260_v10 = vrot.slane %v5252_v41, 6 }
 0x6e3   : > { %v5261_v9 = vsel %vm3449_vm4, %v5260_v10, %v5259_v59 }
 0x70b   : > { %v5658_v17 = vpop.f32.mrb[18].mxu0 }
 0x70c   : > { %v5199_v19 = vadd.f32 %v5658_v17, %v5491_v54  ;;  %v5193_v20 = vpop.f32.mrb[19].mxu0 }
 0x70d   : > { %v5194_v44 = vadd.f32 %v5491_v54, %v5193_v20 }
 0x70e   : > { %v5230_v11 = vsel %vm2806_vm2, %v5199_v19, 0.0 }
 0x70f   : > { %v5229_v27 = vsel %vm2806_vm2, %v5194_v44, 0.0 }
 0x710   : > { %v5231_v32 = vadd.f32 %v5230_v11, %v5229_v27 }
 0x712   : > { %v5232_v43 = vrot.slane %v5231_v32, 4 }
 0x714   : > { %v5233_v58 = vadd.f32 %v5232_v43, %v5231_v32 }
 0x716   : > { %v5234_v22 = vrot.slane %v5233_v58, 2 }
 0x718   : > { %v5235_v39 = vadd.f32 %v5234_v22, %v5233_v58 }
 0x71a   : > { %v5236_v48 = vrot.slane %v5235_v39, 1 }
 0x71c   : > { %v5237_v60 = vadd.f32 %v5236_v48, %v5235_v39 }
 0x71e   : > { %v5242_v28 = vmul.f32 0.0625, %v5237_v60 }
 0x720   : > { %v5253_v33 = vmul.f32 %v5500_v51, %v5242_v28 }
 0x722   : > { %v5262_v36 = vrot.slane %v5253_v33, 5 }
 0x724   : > { %v5263_v29 = vsel %vm3451_vm5, %v5262_v36, %v5261_v9 }
 0x725   : > { %v5266_v54 = vsel %vm5265_vm10, %v5263_v29, 0.0 }
 0x726   : > { %5267 = vadd.xlane.f32.xlu0 %v5266_v54 }
 0x7b3   : > { %v5268_v0 = vpop.xlane.xlu0 %5267 }
 0x7b4   : > { %v5276_v4 = vadd.f32 %v5501_v6, %v5268_v0 }
 0x7b6   : > { %vm5277_vm11 = vcmp.gt.f32.partialorder %v5276_v4, 0.0  ;;  %v5278_v16 = vmul.f32 0.01, %v5276_v4 }
 0x7b8   : > { %v5279_v52 = vsel %vm5277_vm11, %v5276_v4, %v5278_v16 }
 0x7b9   : > { %v5280_v38 = vadd.f32 1.0, %v5279_v52 }
 0x7bb   : > { %5282 = vst.msk [vmem:[%s577_s17] sm:$0xf] %vm5281_vm12, %v5280_v38 }
 0x7bc PF: > { %p28_p8 = scmp.ge.s32.totalorder %s6260_s13, 4   ;;  %s10586_s27 = smov %s6005_s28 }
 0x7bd   : > { %s10587_s28 = smov %s6009_s29  ;;  %s10588_s29 = smov %s6271_s22 }
 0x7be   : > { %s10589_s30 = smov %s6260_s13  ;;  %30 = sbr.rel (!%p28_p8) target bundleno = 10 (0xa), region = 142 }
 0x7c5   :  { %5302 = vsyncpa [#allocation4], 1 }
 0x7c6   :  { %5304 = vsyncpa [#allocation4 + $0x1], 1 }
 0x7c7   :  { %5305 = vsyncpa [#allocation6], 1 }
 0x7c8   :  { %5306 = vsyncpa [#allocation9], 1 }
 0x7c9   :  { %5307 = vsyncpa [#allocation12], 1 }

</bundles_post_ra>
